<compile_context>
chip_gen: v7x
topology: tpu7x:2x2x1
jax: 0.10.0
libtpu: 0.0.40
codegen_flags: <defaults>
</compile_context>

<pallas_src>
import functools
import math

import jax
import jax.numpy as jnp
from jax.experimental import pallas as pl
from jax.experimental.pallas import tpu as pltpu


def transformer_block_kernel(x_ref,
                             ln1_w_ref, ln1_b_ref,
                             w_q_ref, b_q_ref, w_k_ref, b_k_ref, w_v_ref, b_v_ref,
                             w_proj_ref, b_proj_ref,
                             ln2_w_ref, ln2_b_ref,
                             w_fc1_ref, b_fc1_ref, w_fc2_ref, b_fc2_ref,
                             out_ref,
                             k_scr, v_scr, m_scr, l_scr, acc_scr,
                             *, n_heads, head_dim, q_tile, kv_tile):
    f32 = jnp.float32
    bf16 = jnp.bfloat16
    H, hd = n_heads, head_dim
    E = H * hd
    TQ = q_tile
    TK = kv_tile
    S = x_ref.shape[0]          # full sequence length (x block is the whole sequence)
    n_kv = S // TK
    eps = f32(1e-5)
    scale = f32(1.0 / math.sqrt(head_dim))

    def layer_norm(v, w, b):
        mu = jnp.mean(v, axis=-1, keepdims=True)
        var = jnp.mean((v - mu) ** 2, axis=-1, keepdims=True)   # biased var (PyTorch LayerNorm)
        return (v - mu) * jax.lax.rsqrt(var + eps) * w + b

    ln1_w = ln1_w_ref[...].astype(f32)
    ln1_b = ln1_b_ref[...].astype(f32)

    qi = pl.program_id(1)

    # ---------------- K/V: computed ONCE per batch element, persisted in VMEM ----------------
    @pl.when(qi == 0)
    def _():
        xn_full = layer_norm(x_ref[...].astype(f32), ln1_w, ln1_b).astype(bf16)     # (S, E)
        k = jnp.dot(xn_full, w_k_ref[...], preferred_element_type=f32) + b_k_ref[...]
        v = jnp.dot(xn_full, w_v_ref[...], preferred_element_type=f32) + b_v_ref[...]
        # head-major, bf16 in scratch: (H, S, hd)
        k_scr[...] = jnp.transpose(k.reshape(S, H, hd), (1, 0, 2)).astype(bf16)
        v_scr[...] = jnp.transpose(v.reshape(S, H, hd), (1, 0, 2)).astype(bf16)

    # ---------------- query tile (sliced from the resident full-sequence block) ----------------
    q_start = pl.multiple_of(qi * TQ, TQ)
    x_q = x_ref[pl.ds(q_start, TQ), :].astype(f32)                                   # (TQ, E)
    xn_q = layer_norm(x_q, ln1_w, ln1_b).astype(bf16)
    # fold the 1/sqrt(hd) score scale into q (after the bias, matching PyTorch)
    q = (jnp.dot(xn_q, w_q_ref[...], preferred_element_type=f32) + b_q_ref[...]) * scale
    q_h = jnp.transpose(q.reshape(TQ, H, hd), (1, 0, 2)).astype(bf16)                # (H, TQ, hd)

    # ---------------- flash-style online softmax over KV blocks ----------------
    m_scr[...] = jnp.full(m_scr.shape, -jnp.inf, dtype=f32)
    l_scr[...] = jnp.zeros(l_scr.shape, dtype=f32)
    acc_scr[...] = jnp.zeros(acc_scr.shape, dtype=f32)

    @pl.loop(0, n_kv)
    def _(kb):
        ks = pl.multiple_of(kb * TK, TK)
        k_blk = k_scr[:, pl.ds(ks, TK), :]                                           # (H, TK, hd) bf16
        v_blk = v_scr[:, pl.ds(ks, TK), :]                                           # (H, TK, hd) bf16
        s = jnp.einsum('hqd,hkd->hqk', q_h, k_blk,
                       preferred_element_type=f32)                                   # (H, TQ, TK) f32
        m_new = jnp.maximum(m_scr[...], jnp.max(s, axis=-1, keepdims=True))
        alpha = jnp.exp(m_scr[...] - m_new)
        p = jnp.exp(s - m_new)
        l_scr[...] = alpha * l_scr[...] + jnp.sum(p, axis=-1, keepdims=True)
        pv = jnp.einsum('hqk,hkd->hqd', p.astype(bf16), v_blk,
                        preferred_element_type=f32)                                  # (H, TQ, hd)
        acc_scr[...] = alpha * acc_scr[...] + pv
        m_scr[...] = m_new

    # softmax normalization via EUP reciprocal (approx; documented small deviation)
    o_h = acc_scr[...] * pl.reciprocal(l_scr[...], approx=True)                      # (H, TQ, hd) f32
    # "concat heads": single transpose + reshape, then 2-D output projection
    o = jnp.transpose(o_h, (1, 0, 2)).reshape(TQ, E).astype(bf16)
    attn = jnp.dot(o, w_proj_ref[...], preferred_element_type=f32) + b_proj_ref[...]
    x1 = x_q + attn                                                                  # residual 1

    # ---------------- MLP branch (pre-norm) ----------------
    xn2 = layer_norm(x1, ln2_w_ref[...].astype(f32), ln2_b_ref[...].astype(f32)).astype(bf16)
    h1 = jnp.dot(xn2, w_fc1_ref[...], preferred_element_type=f32) + b_fc1_ref[...]   # (TQ, mlp)
    # exact GELU (PyTorch nn.GELU default), kept in f32
    h1 = 0.5 * h1 * (1.0 + jax.lax.erf(h1 * f32(1.0 / math.sqrt(2.0))))
    h2 = jnp.dot(h1.astype(bf16), w_fc2_ref[...], preferred_element_type=f32) + b_fc2_ref[...]

    out_ref[...] = (x1 + h2).astype(out_ref.dtype)                                   # residual 2


def prepare_kernel_params(params):
    """One-time conversion of the f32 reference params into kernel layout:
    bf16 matmul weights, QKV pre-split into separate q/k/v weights & biases.
    Do this ONCE at init so no per-call f32->bf16 convert traffic is added."""
    bf16 = jnp.bfloat16
    E = params["w_qkv"].shape[0]
    w_qkv, b_qkv = params["w_qkv"], params["b_qkv"]
    return {
        "ln1_w": params["ln1_w"], "ln1_b": params["ln1_b"],
        "w_q": w_qkv[:, 0:E].astype(bf16),         "b_q": b_qkv[:, 0:E],
        "w_k": w_qkv[:, E:2 * E].astype(bf16),     "b_k": b_qkv[:, E:2 * E],
        "w_v": w_qkv[:, 2 * E:3 * E].astype(bf16), "b_v": b_qkv[:, 2 * E:3 * E],
        "w_proj": params["w_proj"].astype(bf16),   "b_proj": params["b_proj"],
        "ln2_w": params["ln2_w"], "ln2_b": params["ln2_b"],
        "w_fc1": params["w_fc1"].astype(bf16),     "b_fc1": params["b_fc1"],
        "w_fc2": params["w_fc2"].astype(bf16),     "b_fc2": params["b_fc2"],
    }


def transformer_block(x, kparams, n_heads, *, q_tile=None, kv_tile=None,
                      vmem_limit_bytes=64 * 1024 * 1024, single_buffer_weights=True):
    """x: (B, S, E) float32.  kparams: output of prepare_kernel_params()."""
    B, S, E = x.shape
    head_dim = E // n_heads
    mlp_dim = kparams["w_fc1"].shape[1]

    # NOTE: v6e/v5e (128 MiB VMEM) can use q_tile=512 and vmem_limit ~96 MiB; the
    # defaults below are sized for v7x's 64 MiB VMEM per TensorCore.
    if q_tile is None:
        q_tile = min(S, 256)
    if kv_tile is None:
        kv_tile = min(S, 512)
    assert S % q_tile == 0 and S % kv_tile == 0
    n_q = S // q_tile

    param_order = ("ln1_w", "ln1_b",
                   "w_q", "b_q", "w_k", "b_k", "w_v", "b_v",
                   "w_proj", "b_proj", "ln2_w", "ln2_b",
                   "w_fc1", "b_fc1", "w_fc2", "b_fc2")
    param_list = [kparams[name] for name in param_order]

    kernel = functools.partial(transformer_block_kernel,
                               n_heads=n_heads, head_dim=head_dim,
                               q_tile=q_tile, kv_tile=kv_tile)

    H = n_heads
    scratch_shapes = [
        pltpu.VMEM((H, S, head_dim), jnp.bfloat16),       # K (head-major, per batch element)
        pltpu.VMEM((H, S, head_dim), jnp.bfloat16),       # V
        pltpu.VMEM((H, q_tile, 1), jnp.float32),          # online-softmax m
        pltpu.VMEM((H, q_tile, 1), jnp.float32),          # online-softmax l
        pltpu.VMEM((H, q_tile, head_dim), jnp.float32),   # online-softmax acc
    ]

    # Advisory cost estimate for XLA's scheduler (non-redundant FLOP count).
    flops = int(2 * B * S * E * (4 * E)                    # q + k + v + out-proj
                + 4 * B * n_heads * S * S * head_dim       # scores + PV
                + 4 * B * S * E * mlp_dim)                 # fc1 + fc2
    transcendentals = int(B * n_heads * S * S + B * S * mlp_dim)
    bytes_accessed = int(2 * x.size * x.dtype.itemsize
                         + sum(int(p.size) * p.dtype.itemsize for p in param_list))
    ce = pl.CostEstimate(flops=flops, transcendentals=transcendentals,
                         bytes_accessed=bytes_accessed)

    def weight_spec(p, single_buffer):
        nd = p.ndim
        idx_map = lambda b, qi, _nd=nd: (0,) * _nd        # constant across the grid
        if single_buffer:
            # constant index_map -> double buffering buys nothing; halve weight VMEM.
            return pl.BlockSpec(p.shape, idx_map, pipeline_mode=pl.Buffered(1))
        return pl.BlockSpec(p.shape, idx_map)

    def run(single_buffer):
        return pl.pallas_call(
            kernel,
            out_shape=jax.ShapeDtypeStruct((B, S, E), x.dtype),
            grid=(B, n_q),
            in_specs=[pl.BlockSpec((None, S, E), lambda b, qi: (b, 0, 0))]    # full seq, resident over qi
                     + [weight_spec(p, single_buffer) for p in param_list],
            out_specs=pl.BlockSpec((None, q_tile, E), lambda b, qi: (b, qi, 0)),
            scratch_shapes=scratch_shapes,
            compiler_params=pltpu.CompilerParams(
                # qi must be "arbitrary": KV scratch carries state across query tiles.
                dimension_semantics=("parallel", "arbitrary"),
                vmem_limit_bytes=vmem_limit_bytes),
            cost_estimate=ce,
        )(x, *param_list)

    if single_buffer_weights:
        try:
            return jax.block_until_ready(run(True))
        except Exception:
            # TODO(synk): pl.Buffered(1) (single-buffered constant weights) rejected by
            # this jax/Mosaic version; fall back to default double-buffering.
            pass
    return run(False)


def reference_block(x, params, n_heads):
    """Pure-JAX f32 reference matching the PyTorch forward (dropout = identity)."""
    B, S, E = x.shape
    hd = E // n_heads
    eps = 1e-5

    def ln(v, w, b):
        mu = jnp.mean(v, axis=-1, keepdims=True)
        var = jnp.mean((v - mu) ** 2, axis=-1, keepdims=True)
        return (v - mu) / jnp.sqrt(var + eps) * w[0] + b[0]

    xn = ln(x, params["ln1_w"], params["ln1_b"])
    qkv = xn @ params["w_qkv"] + params["b_qkv"][0]                # (B, S, 3E)
    qkv = qkv.reshape(B, S, 3, n_heads, hd).transpose(2, 0, 3, 1, 4)
    q, k, v = qkv[0], qkv[1], qkv[2]                               # (B, H, S, hd)
    s = jnp.einsum("bhqd,bhkd->bhqk", q, k) / math.sqrt(hd)
    p = jax.nn.softmax(s, axis=-1)
    o = jnp.einsum("bhqk,bhkd->bhqd", p, v)
    o = o.transpose(0, 2, 1, 3).reshape(B, S, E)
    o = o @ params["w_proj"] + params["b_proj"][0]
    x = x + o
    xn2 = ln(x, params["ln2_w"], params["ln2_b"])
    h1 = xn2 @ params["w_fc1"] + params["b_fc1"][0]
    h1 = jax.nn.gelu(h1, approximate=False)
    h2 = h1 @ params["w_fc2"] + params["b_fc2"][0]
    return x + h2


def init_params(key, embed_dim, mlp_dim):
    ks = jax.random.split(key, 8)
    std = 0.02
    return {
        "ln1_w": jnp.ones((1, embed_dim), jnp.float32),
        "ln1_b": jnp.zeros((1, embed_dim), jnp.float32),
        "w_qkv": std * jax.random.normal(ks[0], (embed_dim, 3 * embed_dim), jnp.float32),
        "b_qkv": std * jax.random.normal(ks[1], (1, 3 * embed_dim), jnp.float32),
        "w_proj": std * jax.random.normal(ks[2], (embed_dim, embed_dim), jnp.float32),
        "b_proj": std * jax.random.normal(ks[3], (1, embed_dim), jnp.float32),
        "ln2_w": jnp.ones((1, embed_dim), jnp.float32),
        "ln2_b": jnp.zeros((1, embed_dim), jnp.float32),
        "w_fc1": std * jax.random.normal(ks[4], (embed_dim, mlp_dim), jnp.float32),
        "b_fc1": std * jax.random.normal(ks[5], (1, mlp_dim), jnp.float32),
        "w_fc2": std * jax.random.normal(ks[6], (mlp_dim, embed_dim), jnp.float32),
        "b_fc2": std * jax.random.normal(ks[7], (1, embed_dim), jnp.float32),
    }


if __name__ == "__main__":
    # Small shapes consistent with the module: (B, S, E) with E divisible by n_heads.
    B, S, E = 2, 8, 32
    n_heads = 4
    mlp_ratio = 4
    mlp_dim = E * mlp_ratio

    key = jax.random.PRNGKey(0)
    k_x, k_p = jax.random.split(key)
    x = jax.random.normal(k_x, (B, S, E), jnp.float32)
    params = init_params(k_p, E, mlp_dim)
    kparams = prepare_kernel_params(params)   # one-time bf16 cast / QKV split

    out = transformer_block(x, kparams, n_heads)
    out = jax.block_until_ready(out)

    ref = reference_block(x, params, n_heads)
    assert out.shape == (B, S, E)
    err = float(jnp.max(jnp.abs(out - ref)))
    # bf16 matmul operands (f32 accumulation) + approx softmax reciprocal -> loosened tolerance.
    assert jnp.allclose(out, ref, atol=3e-2, rtol=3e-2), f"mismatch vs reference, max abs err={err}"

    print("KERNEL_OK")
</pallas_src>

<mosaic_0001>
module attributes {stable_mosaic.version = 11 : i64} {
  func.func @transformer_block_kernel(%arg0: i32, %arg1: i32, %arg2: memref<1x8x32xf32, #tpu.memory_space<vmem>>, %arg3: memref<1x32xf32, #tpu.memory_space<vmem>>, %arg4: memref<1x32xf32, #tpu.memory_space<vmem>>, %arg5: memref<32x32xbf16, #tpu.memory_space<vmem>>, %arg6: memref<1x32xf32, #tpu.memory_space<vmem>>, %arg7: memref<32x32xbf16, #tpu.memory_space<vmem>>, %arg8: memref<1x32xf32, #tpu.memory_space<vmem>>, %arg9: memref<32x32xbf16, #tpu.memory_space<vmem>>, %arg10: memref<1x32xf32, #tpu.memory_space<vmem>>, %arg11: memref<32x32xbf16, #tpu.memory_space<vmem>>, %arg12: memref<1x32xf32, #tpu.memory_space<vmem>>, %arg13: memref<1x32xf32, #tpu.memory_space<vmem>>, %arg14: memref<1x32xf32, #tpu.memory_space<vmem>>, %arg15: memref<32x128xbf16, #tpu.memory_space<vmem>>, %arg16: memref<1x128xf32, #tpu.memory_space<vmem>>, %arg17: memref<128x32xbf16, #tpu.memory_space<vmem>>, %arg18: memref<1x32xf32, #tpu.memory_space<vmem>>, %arg19: memref<1x8x32xf32, #tpu.memory_space<vmem>>, %arg20: memref<4x8x8xbf16, #tpu.memory_space<vmem>>, %arg21: memref<4x8x8xbf16, #tpu.memory_space<vmem>>, %arg22: memref<4x8x1xf32, #tpu.memory_space<vmem>>, %arg23: memref<4x8x1xf32, #tpu.memory_space<vmem>>, %arg24: memref<4x8x8xf32, #tpu.memory_space<vmem>>) attributes {dimension_semantics = [#tpu.dimension_semantics<parallel>, #tpu.dimension_semantics<arbitrary>], iteration_bounds = array<i64: 2, 1>, scalar_prefetch = 0 : i64, scratch_operands = 5 : i64, tpu.core_type = #tpu.core_type<tc>, window_params = [{transform_indices = @transform_0, window_bounds = array<i64: 1, 8, 32>}, {pipeline_mode = #tpu.pipeline_mode<synchronous>, transform_indices = @transform_1, window_bounds = array<i64: 1, 32>}, {pipeline_mode = #tpu.pipeline_mode<synchronous>, transform_indices = @transform_2, window_bounds = array<i64: 1, 32>}, {pipeline_mode = #tpu.pipeline_mode<synchronous>, transform_indices = @transform_3, window_bounds = array<i64: 32, 32>}, {pipeline_mode = #tpu.pipeline_mode<synchronous>, transform_indices = @transform_4, window_bounds = array<i64: 1, 32>}, {pipeline_mode = #tpu.pipeline_mode<synchronous>, transform_indices = @transform_5, window_bounds = array<i64: 32, 32>}, {pipeline_mode = #tpu.pipeline_mode<synchronous>, transform_indices = @transform_6, window_bounds = array<i64: 1, 32>}, {pipeline_mode = #tpu.pipeline_mode<synchronous>, transform_indices = @transform_7, window_bounds = array<i64: 32, 32>}, {pipeline_mode = #tpu.pipeline_mode<synchronous>, transform_indices = @transform_8, window_bounds = array<i64: 1, 32>}, {pipeline_mode = #tpu.pipeline_mode<synchronous>, transform_indices = @transform_9, window_bounds = array<i64: 32, 32>}, {pipeline_mode = #tpu.pipeline_mode<synchronous>, transform_indices = @transform_10, window_bounds = array<i64: 1, 32>}, {pipeline_mode = #tpu.pipeline_mode<synchronous>, transform_indices = @transform_11, window_bounds = array<i64: 1, 32>}, {pipeline_mode = #tpu.pipeline_mode<synchronous>, transform_indices = @transform_12, window_bounds = array<i64: 1, 32>}, {pipeline_mode = #tpu.pipeline_mode<synchronous>, transform_indices = @transform_13, window_bounds = array<i64: 32, 128>}, {pipeline_mode = #tpu.pipeline_mode<synchronous>, transform_indices = @transform_14, window_bounds = array<i64: 1, 128>}, {pipeline_mode = #tpu.pipeline_mode<synchronous>, transform_indices = @transform_15, window_bounds = array<i64: 128, 32>}, {pipeline_mode = #tpu.pipeline_mode<synchronous>, transform_indices = @transform_16, window_bounds = array<i64: 1, 32>}, {transform_indices = @transform_17, window_bounds = array<i64: 1, 8, 32>}]} {
    %c0 = arith.constant 0 : index
    %c0_0 = arith.constant 0 : index
    %0 = vector.load %arg3[%c0, %c0_0] : memref<1x32xf32, #tpu.memory_space<vmem>>, vector<1x32xf32>
    %c0_1 = arith.constant 0 : index
    %c0_2 = arith.constant 0 : index
    %1 = vector.load %arg4[%c0_1, %c0_2] : memref<1x32xf32, #tpu.memory_space<vmem>>, vector<1x32xf32>
    %c0_i32 = arith.constant 0 : i32
    %2 = arith.cmpi eq, %arg1, %c0_i32 : i32
    %3 = arith.extui %2 : i1 to i32
    %cst = arith.constant 9.99999974E-6 : f32
    %c0_i32_3 = arith.constant 0 : i32
    %4 = arith.cmpi ne, %3, %c0_i32_3 : i32
    scf.if %4 {
      %c0_98 = arith.constant 0 : index
      %c0_99 = arith.constant 0 : index
      %c0_100 = arith.constant 0 : index
      %144 = vector.load %arg2[%c0_98, %c0_99, %c0_100] : memref<1x8x32xf32, #tpu.memory_space<vmem>>, vector<1x8x32xf32>
      %145 = vector.shape_cast %144 : vector<1x8x32xf32> to vector<8x32xf32>
      %cst_101 = arith.constant dense<0.000000e+00> : vector<8xf32>
      %146 = vector.multi_reduction <add>, %145, %cst_101 [1] : vector<8x32xf32> to vector<8xf32>
      %147 = vector.shape_cast %146 : vector<8xf32> to vector<8x1xf32>
      %cst_102 = arith.constant 3.200000e+01 : f32
      %148 = vector.broadcast %cst_102 : f32 to vector<8x1xf32>
      %149 = arith.divf %147, %148 : vector<8x1xf32>
      %150 = vector.broadcast %149 : vector<8x1xf32> to vector<8x32xf32>
      %151 = arith.subf %145, %150 : vector<8x32xf32>
      %152 = arith.mulf %151, %151 : vector<8x32xf32>
      %cst_103 = arith.constant dense<0.000000e+00> : vector<8xf32>
      %153 = vector.multi_reduction <add>, %152, %cst_103 [1] : vector<8x32xf32> to vector<8xf32>
      %154 = vector.shape_cast %153 : vector<8xf32> to vector<8x1xf32>
      %cst_104 = arith.constant 3.200000e+01 : f32
      %155 = vector.broadcast %cst_104 : f32 to vector<8x1xf32>
      %156 = arith.divf %154, %155 : vector<8x1xf32>
      %157 = vector.broadcast %149 : vector<8x1xf32> to vector<8x32xf32>
      %158 = arith.subf %145, %157 : vector<8x32xf32>
      %159 = vector.broadcast %cst : f32 to vector<8x1xf32>
      %160 = arith.addf %156, %159 : vector<8x1xf32>
      %161 = math.rsqrt %160 : vector<8x1xf32>
      %162 = vector.broadcast %161 : vector<8x1xf32> to vector<8x32xf32>
      %163 = arith.mulf %158, %162 : vector<8x32xf32>
      %164 = vector.broadcast %0 : vector<1x32xf32> to vector<8x32xf32>
      %165 = arith.mulf %163, %164 : vector<8x32xf32>
      %166 = vector.broadcast %1 : vector<1x32xf32> to vector<8x32xf32>
      %167 = arith.addf %165, %166 : vector<8x32xf32>
      %168 = arith.truncf %167 : vector<8x32xf32> to vector<8x32xbf16>
      %c0_105 = arith.constant 0 : index
      %c0_106 = arith.constant 0 : index
      %169 = vector.load %arg7[%c0_105, %c0_106] : memref<32x32xbf16, #tpu.memory_space<vmem>>, vector<32x32xbf16>
      %cst_107 = arith.constant dense<0.000000e+00> : vector<8x32xf32>
      %170 = tpu.matmul %168, %169, %cst_107 {dimension_numbers = #tpu.dot_dimension_numbers<[1], [0], [0], [1], [0, 0, 1, 1], [], []>} : vector<8x32xbf16>, vector<32x32xbf16>, vector<8x32xf32> -> vector<8x32xf32>
      %c0_108 = arith.constant 0 : index
      %c0_109 = arith.constant 0 : index
      %171 = vector.load %arg8[%c0_108, %c0_109] : memref<1x32xf32, #tpu.memory_space<vmem>>, vector<1x32xf32>
      %172 = vector.broadcast %171 : vector<1x32xf32> to vector<8x32xf32>
      %173 = arith.addf %170, %172 : vector<8x32xf32>
      %c0_110 = arith.constant 0 : index
      %c0_111 = arith.constant 0 : index
      %174 = vector.load %arg9[%c0_110, %c0_111] : memref<32x32xbf16, #tpu.memory_space<vmem>>, vector<32x32xbf16>
      %cst_112 = arith.constant dense<0.000000e+00> : vector<8x32xf32>
      %175 = tpu.matmul %168, %174, %cst_112 {dimension_numbers = #tpu.dot_dimension_numbers<[1], [0], [0], [1], [0, 0, 1, 1], [], []>} : vector<8x32xbf16>, vector<32x32xbf16>, vector<8x32xf32> -> vector<8x32xf32>
      %c0_113 = arith.constant 0 : index
      %c0_114 = arith.constant 0 : index
      %176 = vector.load %arg10[%c0_113, %c0_114] : memref<1x32xf32, #tpu.memory_space<vmem>>, vector<1x32xf32>
      %177 = vector.broadcast %176 : vector<1x32xf32> to vector<8x32xf32>
      %178 = arith.addf %175, %177 : vector<8x32xf32>
      %179 = vector.shape_cast %173 : vector<8x32xf32> to vector<8x4x8xf32>
      %180 = tpu.transpose %179, [1, 0, 2] : vector<8x4x8xf32> -> vector<4x8x8xf32>
      %181 = arith.truncf %180 : vector<4x8x8xf32> to vector<4x8x8xbf16>
      %c0_115 = arith.constant 0 : index
      %c0_116 = arith.constant 0 : index
      %c0_117 = arith.constant 0 : index
      %182 = vector.load %arg20[%c0_115, %c0_116, %c0_117] : memref<4x8x8xbf16, #tpu.memory_space<vmem>>, vector<4x8x8xbf16>
      tpu.vector_store %arg20[%c0_115, %c0_116, %c0_117], %181 {strides = array<i32>} : memref<4x8x8xbf16, #tpu.memory_space<vmem>>, vector<4x8x8xbf16>,
      %183 = vector.shape_cast %178 : vector<8x32xf32> to vector<8x4x8xf32>
      %184 = tpu.transpose %183, [1, 0, 2] : vector<8x4x8xf32> -> vector<4x8x8xf32>
      %185 = arith.truncf %184 : vector<4x8x8xf32> to vector<4x8x8xbf16>
      %c0_118 = arith.constant 0 : index
      %c0_119 = arith.constant 0 : index
      %c0_120 = arith.constant 0 : index
      %186 = vector.load %arg21[%c0_118, %c0_119, %c0_120] : memref<4x8x8xbf16, #tpu.memory_space<vmem>>, vector<4x8x8xbf16>
      tpu.vector_store %arg21[%c0_118, %c0_119, %c0_120], %185 {strides = array<i32>} : memref<4x8x8xbf16, #tpu.memory_space<vmem>>, vector<4x8x8xbf16>,
    } else {
    }
    %c8_i32 = arith.constant 8 : i32
    %5 = arith.muli %arg1, %c8_i32 : i32
    %6 = tpu.assume_multiple %5, 8 : i32
    %c0_4 = arith.constant 0 : index
    %7 = arith.index_cast %6 : i32 to index
    %c0_5 = arith.constant 0 : index
    %8 = vector.load %arg2[%c0_4, %7, %c0_5] : memref<1x8x32xf32, #tpu.memory_space<vmem>>, vector<1x8x32xf32>
    %9 = vector.shape_cast %8 : vector<1x8x32xf32> to vector<8x32xf32>
    %cst_6 = arith.constant dense<0.000000e+00> : vector<8xf32>
    %10 = vector.multi_reduction <add>, %9, %cst_6 [1] : vector<8x32xf32> to vector<8xf32>
    %11 = vector.shape_cast %10 : vector<8xf32> to vector<8x1xf32>
    %cst_7 = arith.constant 3.200000e+01 : f32
    %12 = vector.broadcast %cst_7 : f32 to vector<8x1xf32>
    %13 = arith.divf %11, %12 : vector<8x1xf32>
    %14 = vector.broadcast %13 : vector<8x1xf32> to vector<8x32xf32>
    %15 = arith.subf %9, %14 : vector<8x32xf32>
    %16 = arith.mulf %15, %15 : vector<8x32xf32>
    %cst_8 = arith.constant dense<0.000000e+00> : vector<8xf32>
    %17 = vector.multi_reduction <add>, %16, %cst_8 [1] : vector<8x32xf32> to vector<8xf32>
    %18 = vector.shape_cast %17 : vector<8xf32> to vector<8x1xf32>
    %cst_9 = arith.constant 3.200000e+01 : f32
    %19 = vector.broadcast %cst_9 : f32 to vector<8x1xf32>
    %20 = arith.divf %18, %19 : vector<8x1xf32>
    %21 = vector.broadcast %13 : vector<8x1xf32> to vector<8x32xf32>
    %22 = arith.subf %9, %21 : vector<8x32xf32>
    %cst_10 = arith.constant 9.99999974E-6 : f32
    %23 = vector.broadcast %cst_10 : f32 to vector<8x1xf32>
    %24 = arith.addf %20, %23 : vector<8x1xf32>
    %25 = math.rsqrt %24 : vector<8x1xf32>
    %26 = vector.broadcast %25 : vector<8x1xf32> to vector<8x32xf32>
    %27 = arith.mulf %22, %26 : vector<8x32xf32>
    %28 = vector.broadcast %0 : vector<1x32xf32> to vector<8x32xf32>
    %29 = arith.mulf %27, %28 : vector<8x32xf32>
    %30 = vector.broadcast %1 : vector<1x32xf32> to vector<8x32xf32>
    %31 = arith.addf %29, %30 : vector<8x32xf32>
    %32 = arith.truncf %31 : vector<8x32xf32> to vector<8x32xbf16>
    %c0_11 = arith.constant 0 : index
    %c0_12 = arith.constant 0 : index
    %33 = vector.load %arg5[%c0_11, %c0_12] : memref<32x32xbf16, #tpu.memory_space<vmem>>, vector<32x32xbf16>
    %cst_13 = arith.constant dense<0.000000e+00> : vector<8x32xf32>
    %34 = tpu.matmul %32, %33, %cst_13 {dimension_numbers = #tpu.dot_dimension_numbers<[1], [0], [0], [1], [0, 0, 1, 1], [], []>} : vector<8x32xbf16>, vector<32x32xbf16>, vector<8x32xf32> -> vector<8x32xf32>
    %c0_14 = arith.constant 0 : index
    %c0_15 = arith.constant 0 : index
    %35 = vector.load %arg6[%c0_14, %c0_15] : memref<1x32xf32, #tpu.memory_space<vmem>>, vector<1x32xf32>
    %36 = vector.broadcast %35 : vector<1x32xf32> to vector<8x32xf32>
    %37 = arith.addf %34, %36 : vector<8x32xf32>
    %cst_16 = arith.constant 0.353553385 : f32
    %38 = vector.broadcast %cst_16 : f32 to vector<8x32xf32>
    %39 = arith.mulf %37, %38 : vector<8x32xf32>
    %40 = vector.shape_cast %39 : vector<8x32xf32> to vector<8x4x8xf32>
    %41 = tpu.transpose %40, [1, 0, 2] : vector<8x4x8xf32> -> vector<4x8x8xf32>
    %42 = arith.truncf %41 : vector<4x8x8xf32> to vector<4x8x8xbf16>
    %cst_17 = arith.constant 0xFF800000 : f32
    %43 = vector.broadcast %cst_17 : f32 to vector<4x8x1xf32>
    %c0_18 = arith.constant 0 : index
    %c0_19 = arith.constant 0 : index
    %c0_20 = arith.constant 0 : index
    %44 = vector.load %arg22[%c0_18, %c0_19, %c0_20] : memref<4x8x1xf32, #tpu.memory_space<vmem>>, vector<4x8x1xf32>
    tpu.vector_store %arg22[%c0_18, %c0_19, %c0_20], %43 {strides = array<i32>} : memref<4x8x1xf32, #tpu.memory_space<vmem>>, vector<4x8x1xf32>,
    %cst_21 = arith.constant 0.000000e+00 : f32
    %45 = vector.broadcast %cst_21 : f32 to vector<4x8x1xf32>
    %c0_22 = arith.constant 0 : index
    %c0_23 = arith.constant 0 : index
    %c0_24 = arith.constant 0 : index
    %46 = vector.load %arg23[%c0_22, %c0_23, %c0_24] : memref<4x8x1xf32, #tpu.memory_space<vmem>>, vector<4x8x1xf32>
    tpu.vector_store %arg23[%c0_22, %c0_23, %c0_24], %45 {strides = array<i32>} : memref<4x8x1xf32, #tpu.memory_space<vmem>>, vector<4x8x1xf32>,
    %cst_25 = arith.constant 0.000000e+00 : f32
    %47 = vector.broadcast %cst_25 : f32 to vector<4x8x8xf32>
    %c0_26 = arith.constant 0 : index
    %c0_27 = arith.constant 0 : index
    %c0_28 = arith.constant 0 : index
    %48 = vector.load %arg24[%c0_26, %c0_27, %c0_28] : memref<4x8x8xf32, #tpu.memory_space<vmem>>, vector<4x8x8xf32>
    tpu.vector_store %arg24[%c0_26, %c0_27, %c0_28], %47 {strides = array<i32>} : memref<4x8x8xf32, #tpu.memory_space<vmem>>, vector<4x8x8xf32>,
    %c0_i32_29 = arith.constant 0 : i32
    %c1_i32 = arith.constant 1 : i32
    %49 = arith.muli %c0_i32_29, %c1_i32 : i32
    %c0_i32_30 = arith.constant 0 : i32
    %50 = arith.addi %c0_i32_30, %49 : i32
    %c8_i32_31 = arith.constant 8 : i32
    %51 = arith.muli %50, %c8_i32_31 : i32
    %52 = tpu.assume_multiple %51, 8 : i32
    %c0_32 = arith.constant 0 : index
    %53 = arith.index_cast %52 : i32 to index
    %c0_33 = arith.constant 0 : index
    %54 = vector.load %arg20[%c0_32, %53, %c0_33] : memref<4x8x8xbf16, #tpu.memory_space<vmem>>, vector<4x8x8xbf16>
    %c0_34 = arith.constant 0 : index
    %55 = arith.index_cast %52 : i32 to index
    %c0_35 = arith.constant 0 : index
    %56 = vector.load %arg21[%c0_34, %55, %c0_35] : memref<4x8x8xbf16, #tpu.memory_space<vmem>>, vector<4x8x8xbf16>
    "tpu.trace_start"() <{level = 10 : i32, message = "hqd,hkd->hqk"}> : () -> ()
    %cst_36 = arith.constant dense<0.000000e+00> : vector<4x8x8xf32>
    %57 = tpu.matmul %42, %54, %cst_36 {dimension_numbers = #tpu.dot_dimension_numbers<[2], [2], [1], [1], [0, 0, 0, 1, 1, 1], [0], [0]>} : vector<4x8x8xbf16>, vector<4x8x8xbf16>, vector<4x8x8xf32> -> vector<4x8x8xf32>
    "tpu.trace_stop"() : () -> ()
    %c0_37 = arith.constant 0 : index
    %c0_38 = arith.constant 0 : index
    %c0_39 = arith.constant 0 : index
    %58 = vector.load %arg22[%c0_37, %c0_38, %c0_39] : memref<4x8x1xf32, #tpu.memory_space<vmem>>, vector<4x8x1xf32>
    %cst_40 = arith.constant dense<0xFF800000> : vector<4x8xf32>
    %59 = vector.multi_reduction <maximumf>, %57, %cst_40 [2] : vector<4x8x8xf32> to vector<4x8xf32>
    %60 = vector.shape_cast %59 : vector<4x8xf32> to vector<4x8x1xf32>
    %61 = arith.maximumf %58, %60 : vector<4x8x1xf32>
    %c0_41 = arith.constant 0 : index
    %c0_42 = arith.constant 0 : index
    %c0_43 = arith.constant 0 : index
    %62 = vector.load %arg22[%c0_41, %c0_42, %c0_43] : memref<4x8x1xf32, #tpu.memory_space<vmem>>, vector<4x8x1xf32>
    %63 = arith.subf %62, %61 : vector<4x8x1xf32>
    %64 = math.exp %63 : vector<4x8x1xf32>
    %65 = vector.broadcast %61 : vector<4x8x1xf32> to vector<4x8x8xf32>
    %66 = arith.subf %57, %65 : vector<4x8x8xf32>
    %67 = math.exp %66 : vector<4x8x8xf32>
    %c0_44 = arith.constant 0 : index
    %c0_45 = arith.constant 0 : index
    %c0_46 = arith.constant 0 : index
    %68 = vector.load %arg23[%c0_44, %c0_45, %c0_46] : memref<4x8x1xf32, #tpu.memory_space<vmem>>, vector<4x8x1xf32>
    %69 = arith.mulf %64, %68 : vector<4x8x1xf32>
    %cst_47 = arith.constant dense<0.000000e+00> : vector<4x8xf32>
    %70 = vector.multi_reduction <add>, %67, %cst_47 [2] : vector<4x8x8xf32> to vector<4x8xf32>
    %71 = vector.shape_cast %70 : vector<4x8xf32> to vector<4x8x1xf32>
    %72 = arith.addf %69, %71 : vector<4x8x1xf32>
    %c0_48 = arith.constant 0 : index
    %c0_49 = arith.constant 0 : index
    %c0_50 = arith.constant 0 : index
    %73 = vector.load %arg23[%c0_48, %c0_49, %c0_50] : memref<4x8x1xf32, #tpu.memory_space<vmem>>, vector<4x8x1xf32>
    tpu.vector_store %arg23[%c0_48, %c0_49, %c0_50], %72 {strides = array<i32>} : memref<4x8x1xf32, #tpu.memory_space<vmem>>, vector<4x8x1xf32>,
    %74 = arith.truncf %67 : vector<4x8x8xf32> to vector<4x8x8xbf16>
    "tpu.trace_start"() <{level = 10 : i32, message = "hqk,hkd->hqd"}> : () -> ()
    %cst_51 = arith.constant dense<0.000000e+00> : vector<4x8x8xf32>
    %75 = tpu.matmul %74, %56, %cst_51 {dimension_numbers = #tpu.dot_dimension_numbers<[2], [1], [1], [2], [0, 0, 0, 1, 1, 2], [0], [0]>} : vector<4x8x8xbf16>, vector<4x8x8xbf16>, vector<4x8x8xf32> -> vector<4x8x8xf32>
    "tpu.trace_stop"() : () -> ()
    %c0_52 = arith.constant 0 : index
    %c0_53 = arith.constant 0 : index
    %c0_54 = arith.constant 0 : index
    %76 = vector.load %arg24[%c0_52, %c0_53, %c0_54] : memref<4x8x8xf32, #tpu.memory_space<vmem>>, vector<4x8x8xf32>
    %77 = vector.broadcast %64 : vector<4x8x1xf32> to vector<4x8x8xf32>
    %78 = arith.mulf %77, %76 : vector<4x8x8xf32>
    %79 = arith.addf %78, %75 : vector<4x8x8xf32>
    %c0_55 = arith.constant 0 : index
    %c0_56 = arith.constant 0 : index
    %c0_57 = arith.constant 0 : index
    %80 = vector.load %arg24[%c0_55, %c0_56, %c0_57] : memref<4x8x8xf32, #tpu.memory_space<vmem>>, vector<4x8x8xf32>
    tpu.vector_store %arg24[%c0_55, %c0_56, %c0_57], %79 {strides = array<i32>} : memref<4x8x8xf32, #tpu.memory_space<vmem>>, vector<4x8x8xf32>,
    %c0_58 = arith.constant 0 : index
    %c0_59 = arith.constant 0 : index
    %c0_60 = arith.constant 0 : index
    %81 = vector.load %arg22[%c0_58, %c0_59, %c0_60] : memref<4x8x1xf32, #tpu.memory_space<vmem>>, vector<4x8x1xf32>
    tpu.vector_store %arg22[%c0_58, %c0_59, %c0_60], %61 {strides = array<i32>} : memref<4x8x1xf32, #tpu.memory_space<vmem>>, vector<4x8x1xf32>,
    %c1_i32_61 = arith.constant 1 : i32
    %c0_62 = arith.constant 0 : index
    %c0_63 = arith.constant 0 : index
    %c0_64 = arith.constant 0 : index
    %82 = vector.load %arg24[%c0_62, %c0_63, %c0_64] : memref<4x8x8xf32, #tpu.memory_space<vmem>>, vector<4x8x8xf32>
    %c0_65 = arith.constant 0 : index
    %c0_66 = arith.constant 0 : index
    %c0_67 = arith.constant 0 : index
    %83 = vector.load %arg23[%c0_65, %c0_66, %c0_67] : memref<4x8x1xf32, #tpu.memory_space<vmem>>, vector<4x8x1xf32>
    %84 = tpu.reciprocal %83 {approx = true} : vector<4x8x1xf32> -> vector<4x8x1xf32>
    %85 = vector.broadcast %84 : vector<4x8x1xf32> to vector<4x8x8xf32>
    %86 = arith.mulf %82, %85 : vector<4x8x8xf32>
    %87 = tpu.transpose %86, [1, 0, 2] : vector<4x8x8xf32> -> vector<8x4x8xf32>
    %88 = vector.shape_cast %87 : vector<8x4x8xf32> to vector<8x32xf32>
    %89 = arith.truncf %88 : vector<8x32xf32> to vector<8x32xbf16>
    %c0_68 = arith.constant 0 : index
    %c0_69 = arith.constant 0 : index
    %90 = vector.load %arg11[%c0_68, %c0_69] : memref<32x32xbf16, #tpu.memory_space<vmem>>, vector<32x32xbf16>
    %cst_70 = arith.constant dense<0.000000e+00> : vector<8x32xf32>
    %91 = tpu.matmul %89, %90, %cst_70 {dimension_numbers = #tpu.dot_dimension_numbers<[1], [0], [0], [1], [0, 0, 1, 1], [], []>} : vector<8x32xbf16>, vector<32x32xbf16>, vector<8x32xf32> -> vector<8x32xf32>
    %c0_71 = arith.constant 0 : index
    %c0_72 = arith.constant 0 : index
    %92 = vector.load %arg12[%c0_71, %c0_72] : memref<1x32xf32, #tpu.memory_space<vmem>>, vector<1x32xf32>
    %93 = vector.broadcast %92 : vector<1x32xf32> to vector<8x32xf32>
    %94 = arith.addf %91, %93 : vector<8x32xf32>
    %95 = arith.addf %9, %94 : vector<8x32xf32>
    %c0_73 = arith.constant 0 : index
    %c0_74 = arith.constant 0 : index
    %96 = vector.load %arg13[%c0_73, %c0_74] : memref<1x32xf32, #tpu.memory_space<vmem>>, vector<1x32xf32>
    %c0_75 = arith.constant 0 : index
    %c0_76 = arith.constant 0 : index
    %97 = vector.load %arg14[%c0_75, %c0_76] : memref<1x32xf32, #tpu.memory_space<vmem>>, vector<1x32xf32>
    %cst_77 = arith.constant dense<0.000000e+00> : vector<8xf32>
    %98 = vector.multi_reduction <add>, %95, %cst_77 [1] : vector<8x32xf32> to vector<8xf32>
    %99 = vector.shape_cast %98 : vector<8xf32> to vector<8x1xf32>
    %cst_78 = arith.constant 3.200000e+01 : f32
    %100 = vector.broadcast %cst_78 : f32 to vector<8x1xf32>
    %101 = arith.divf %99, %100 : vector<8x1xf32>
    %102 = vector.broadcast %101 : vector<8x1xf32> to vector<8x32xf32>
    %103 = arith.subf %95, %102 : vector<8x32xf32>
    %104 = arith.mulf %103, %103 : vector<8x32xf32>
    %cst_79 = arith.constant dense<0.000000e+00> : vector<8xf32>
    %105 = vector.multi_reduction <add>, %104, %cst_79 [1] : vector<8x32xf32> to vector<8xf32>
    %106 = vector.shape_cast %105 : vector<8xf32> to vector<8x1xf32>
    %cst_80 = arith.constant 3.200000e+01 : f32
    %107 = vector.broadcast %cst_80 : f32 to vector<8x1xf32>
    %108 = arith.divf %106, %107 : vector<8x1xf32>
    %109 = vector.broadcast %101 : vector<8x1xf32> to vector<8x32xf32>
    %110 = arith.subf %95, %109 : vector<8x32xf32>
    %cst_81 = arith.constant 9.99999974E-6 : f32
    %111 = vector.broadcast %cst_81 : f32 to vector<8x1xf32>
    %112 = arith.addf %108, %111 : vector<8x1xf32>
    %113 = math.rsqrt %112 : vector<8x1xf32>
    %114 = vector.broadcast %113 : vector<8x1xf32> to vector<8x32xf32>
    %115 = arith.mulf %110, %114 : vector<8x32xf32>
    %116 = vector.broadcast %96 : vector<1x32xf32> to vector<8x32xf32>
    %117 = arith.mulf %115, %116 : vector<8x32xf32>
    %118 = vector.broadcast %97 : vector<1x32xf32> to vector<8x32xf32>
    %119 = arith.addf %117, %118 : vector<8x32xf32>
    %120 = arith.truncf %119 : vector<8x32xf32> to vector<8x32xbf16>
    %c0_82 = arith.constant 0 : index
    %c0_83 = arith.constant 0 : index
    %121 = vector.load %arg15[%c0_82, %c0_83] : memref<32x128xbf16, #tpu.memory_space<vmem>>, vector<32x128xbf16>
    %cst_84 = arith.constant dense<0.000000e+00> : vector<8x128xf32>
    %122 = tpu.matmul %120, %121, %cst_84 {dimension_numbers = #tpu.dot_dimension_numbers<[1], [0], [0], [1], [0, 0, 1, 1], [], []>} : vector<8x32xbf16>, vector<32x128xbf16>, vector<8x128xf32> -> vector<8x128xf32>
    %c0_85 = arith.constant 0 : index
    %c0_86 = arith.constant 0 : index
    %123 = vector.load %arg16[%c0_85, %c0_86] : memref<1x128xf32, #tpu.memory_space<vmem>>, vector<1x128xf32>
    %124 = vector.broadcast %123 : vector<1x128xf32> to vector<8x128xf32>
    %125 = arith.addf %122, %124 : vector<8x128xf32>
    %cst_87 = arith.constant 5.000000e-01 : f32
    %126 = vector.broadcast %cst_87 : f32 to vector<8x128xf32>
    %127 = arith.mulf %126, %125 : vector<8x128xf32>
    %cst_88 = arith.constant 0.707106769 : f32
    %128 = vector.broadcast %cst_88 : f32 to vector<8x128xf32>
    %129 = arith.mulf %125, %128 : vector<8x128xf32>
    %130 = math.erf %129 : vector<8x128xf32>
    %cst_89 = arith.constant 1.000000e+00 : f32
    %131 = vector.broadcast %cst_89 : f32 to vector<8x128xf32>
    %132 = arith.addf %131, %130 : vector<8x128xf32>
    %133 = arith.mulf %127, %132 : vector<8x128xf32>
    %134 = arith.truncf %133 : vector<8x128xf32> to vector<8x128xbf16>
    %c0_90 = arith.constant 0 : index
    %c0_91 = arith.constant 0 : index
    %135 = vector.load %arg17[%c0_90, %c0_91] : memref<128x32xbf16, #tpu.memory_space<vmem>>, vector<128x32xbf16>
    %cst_92 = arith.constant dense<0.000000e+00> : vector<8x32xf32>
    %136 = tpu.matmul %134, %135, %cst_92 {dimension_numbers = #tpu.dot_dimension_numbers<[1], [0], [0], [1], [0, 0, 1, 1], [], []>} : vector<8x128xbf16>, vector<128x32xbf16>, vector<8x32xf32> -> vector<8x32xf32>
    %c0_93 = arith.constant 0 : index
    %c0_94 = arith.constant 0 : index
    %137 = vector.load %arg18[%c0_93, %c0_94] : memref<1x32xf32, #tpu.memory_space<vmem>>, vector<1x32xf32>
    %138 = vector.broadcast %137 : vector<1x32xf32> to vector<8x32xf32>
    %139 = arith.addf %136, %138 : vector<8x32xf32>
    %140 = arith.addf %95, %139 : vector<8x32xf32>
    %c0_95 = arith.constant 0 : index
    %c0_96 = arith.constant 0 : index
    %c0_97 = arith.constant 0 : index
    %141 = vector.load %arg19[%c0_95, %c0_96, %c0_97] : memref<1x8x32xf32, #tpu.memory_space<vmem>>, vector<1x8x32xf32>
    %142 = vector.shape_cast %141 : vector<1x8x32xf32> to vector<8x32xf32>
    %143 = vector.shape_cast %140 : vector<8x32xf32> to vector<1x8x32xf32>
    tpu.vector_store %arg19[%c0_95, %c0_96, %c0_97], %143 {strides = array<i32>} : memref<1x8x32xf32, #tpu.memory_space<vmem>>, vector<1x8x32xf32>,
    return
  }
  func.func @transform_0(%arg0: i32, %arg1: i32) -> (i32, i32, i32) {
    %c0_i32 = arith.constant 0 : i32
    %c0_i32_0 = arith.constant 0 : i32
    %c0_i32_1 = arith.constant 0 : i32
    return %arg0, %c0_i32, %c0_i32_0 : i32, i32, i32
  }
  func.func @transform_1(%arg0: i32, %arg1: i32) -> (i32, i32) {
    %c0_i32 = arith.constant 0 : i32
    %c0_i32_0 = arith.constant 0 : i32
    %c0_i32_1 = arith.constant 0 : i32
    return %c0_i32, %c0_i32_0 : i32, i32
  }
  func.func @transform_2(%arg0: i32, %arg1: i32) -> (i32, i32) {
    %c0_i32 = arith.constant 0 : i32
    %c0_i32_0 = arith.constant 0 : i32
    %c0_i32_1 = arith.constant 0 : i32
    return %c0_i32, %c0_i32_0 : i32, i32
  }
  func.func @transform_3(%arg0: i32, %arg1: i32) -> (i32, i32) {
    %c0_i32 = arith.constant 0 : i32
    %c0_i32_0 = arith.constant 0 : i32
    %c0_i32_1 = arith.constant 0 : i32
    return %c0_i32, %c0_i32_0 : i32, i32
  }
  func.func @transform_4(%arg0: i32, %arg1: i32) -> (i32, i32) {
    %c0_i32 = arith.constant 0 : i32
    %c0_i32_0 = arith.constant 0 : i32
    %c0_i32_1 = arith.constant 0 : i32
    return %c0_i32, %c0_i32_0 : i32, i32
  }
  func.func @transform_5(%arg0: i32, %arg1: i32) -> (i32, i32) {
    %c0_i32 = arith.constant 0 : i32
    %c0_i32_0 = arith.constant 0 : i32
    %c0_i32_1 = arith.constant 0 : i32
    return %c0_i32, %c0_i32_0 : i32, i32
  }
  func.func @transform_6(%arg0: i32, %arg1: i32) -> (i32, i32) {
    %c0_i32 = arith.constant 0 : i32
    %c0_i32_0 = arith.constant 0 : i32
    %c0_i32_1 = arith.constant 0 : i32
    return %c0_i32, %c0_i32_0 : i32, i32
  }
  func.func @transform_7(%arg0: i32, %arg1: i32) -> (i32, i32) {
    %c0_i32 = arith.constant 0 : i32
    %c0_i32_0 = arith.constant 0 : i32
    %c0_i32_1 = arith.constant 0 : i32
    return %c0_i32, %c0_i32_0 : i32, i32
  }
  func.func @transform_8(%arg0: i32, %arg1: i32) -> (i32, i32) {
    %c0_i32 = arith.constant 0 : i32
    %c0_i32_0 = arith.constant 0 : i32
    %c0_i32_1 = arith.constant 0 : i32
    return %c0_i32, %c0_i32_0 : i32, i32
  }
  func.func @transform_9(%arg0: i32, %arg1: i32) -> (i32, i32) {
    %c0_i32 = arith.constant 0 : i32
    %c0_i32_0 = arith.constant 0 : i32
    %c0_i32_1 = arith.constant 0 : i32
    return %c0_i32, %c0_i32_0 : i32, i32
  }
  func.func @transform_10(%arg0: i32, %arg1: i32) -> (i32, i32) {
    %c0_i32 = arith.constant 0 : i32
    %c0_i32_0 = arith.constant 0 : i32
    %c0_i32_1 = arith.constant 0 : i32
    return %c0_i32, %c0_i32_0 : i32, i32
  }
  func.func @transform_11(%arg0: i32, %arg1: i32) -> (i32, i32) {
    %c0_i32 = arith.constant 0 : i32
    %c0_i32_0 = arith.constant 0 : i32
    %c0_i32_1 = arith.constant 0 : i32
    return %c0_i32, %c0_i32_0 : i32, i32
  }
  func.func @transform_12(%arg0: i32, %arg1: i32) -> (i32, i32) {
    %c0_i32 = arith.constant 0 : i32
    %c0_i32_0 = arith.constant 0 : i32
    %c0_i32_1 = arith.constant 0 : i32
    return %c0_i32, %c0_i32_0 : i32, i32
  }
  func.func @transform_13(%arg0: i32, %arg1: i32) -> (i32, i32) {
    %c0_i32 = arith.constant 0 : i32
    %c0_i32_0 = arith.constant 0 : i32
    %c0_i32_1 = arith.constant 0 : i32
    return %c0_i32, %c0_i32_0 : i32, i32
  }
  func.func @transform_14(%arg0: i32, %arg1: i32) -> (i32, i32) {
    %c0_i32 = arith.constant 0 : i32
    %c0_i32_0 = arith.constant 0 : i32
    %c0_i32_1 = arith.constant 0 : i32
    return %c0_i32, %c0_i32_0 : i32, i32
  }
  func.func @transform_15(%arg0: i32, %arg1: i32) -> (i32, i32) {
    %c0_i32 = arith.constant 0 : i32
    %c0_i32_0 = arith.constant 0 : i32
    %c0_i32_1 = arith.constant 0 : i32
    return %c0_i32, %c0_i32_0 : i32, i32
  }
  func.func @transform_16(%arg0: i32, %arg1: i32) -> (i32, i32) {
    %c0_i32 = arith.constant 0 : i32
    %c0_i32_0 = arith.constant 0 : i32
    %c0_i32_1 = arith.constant 0 : i32
    return %c0_i32, %c0_i32_0 : i32, i32
  }
  func.func @transform_17(%arg0: i32, %arg1: i32) -> (i32, i32, i32) {
    %c0_i32 = arith.constant 0 : i32
    %c0_i32_0 = arith.constant 0 : i32
    return %arg0, %arg1, %c0_i32 : i32, i32, i32
  }
}

module attributes {stable_mosaic.version = 11 : i64} {
  func.func @transformer_block_kernel(%arg0: i32, %arg1: i32, %arg2: memref<1x8x32xf32, #tpu.memory_space<vmem>>, %arg3: memref<1x32xf32, #tpu.memory_space<vmem>>, %arg4: memref<1x32xf32, #tpu.memory_space<vmem>>, %arg5: memref<32x32xbf16, #tpu.memory_space<vmem>>, %arg6: memref<1x32xf32, #tpu.memory_space<vmem>>, %arg7: memref<32x32xbf16, #tpu.memory_space<vmem>>, %arg8: memref<1x32xf32, #tpu.memory_space<vmem>>, %arg9: memref<32x32xbf16, #tpu.memory_space<vmem>>, %arg10: memref<1x32xf32, #tpu.memory_space<vmem>>, %arg11: memref<32x32xbf16, #tpu.memory_space<vmem>>, %arg12: memref<1x32xf32, #tpu.memory_space<vmem>>, %arg13: memref<1x32xf32, #tpu.memory_space<vmem>>, %arg14: memref<1x32xf32, #tpu.memory_space<vmem>>, %arg15: memref<32x128xbf16, #tpu.memory_space<vmem>>, %arg16: memref<1x128xf32, #tpu.memory_space<vmem>>, %arg17: memref<128x32xbf16, #tpu.memory_space<vmem>>, %arg18: memref<1x32xf32, #tpu.memory_space<vmem>>, %arg19: memref<1x8x32xf32, #tpu.memory_space<vmem>>, %arg20: memref<4x8x8xbf16, #tpu.memory_space<vmem>>, %arg21: memref<4x8x8xbf16, #tpu.memory_space<vmem>>, %arg22: memref<4x8x1xf32, #tpu.memory_space<vmem>>, %arg23: memref<4x8x1xf32, #tpu.memory_space<vmem>>, %arg24: memref<4x8x8xf32, #tpu.memory_space<vmem>>) attributes {dimension_semantics = [#tpu.dimension_semantics<parallel>, #tpu.dimension_semantics<arbitrary>], iteration_bounds = array<i64: 2, 1>, scalar_prefetch = 0 : i64, scratch_operands = 5 : i64, tpu.core_type = #tpu.core_type<tc>, window_params = [{transform_indices = @transform_0, window_bounds = array<i64: 1, 8, 32>}, {pipeline_mode = #tpu.pipeline_mode<synchronous>, transform_indices = @transform_1, window_bounds = array<i64: 1, 32>}, {pipeline_mode = #tpu.pipeline_mode<synchronous>, transform_indices = @transform_2, window_bounds = array<i64: 1, 32>}, {pipeline_mode = #tpu.pipeline_mode<synchronous>, transform_indices = @transform_3, window_bounds = array<i64: 32, 32>}, {pipeline_mode = #tpu.pipeline_mode<synchronous>, transform_indices = @transform_4, window_bounds = array<i64: 1, 32>}, {pipeline_mode = #tpu.pipeline_mode<synchronous>, transform_indices = @transform_5, window_bounds = array<i64: 32, 32>}, {pipeline_mode = #tpu.pipeline_mode<synchronous>, transform_indices = @transform_6, window_bounds = array<i64: 1, 32>}, {pipeline_mode = #tpu.pipeline_mode<synchronous>, transform_indices = @transform_7, window_bounds = array<i64: 32, 32>}, {pipeline_mode = #tpu.pipeline_mode<synchronous>, transform_indices = @transform_8, window_bounds = array<i64: 1, 32>}, {pipeline_mode = #tpu.pipeline_mode<synchronous>, transform_indices = @transform_9, window_bounds = array<i64: 32, 32>}, {pipeline_mode = #tpu.pipeline_mode<synchronous>, transform_indices = @transform_10, window_bounds = array<i64: 1, 32>}, {pipeline_mode = #tpu.pipeline_mode<synchronous>, transform_indices = @transform_11, window_bounds = array<i64: 1, 32>}, {pipeline_mode = #tpu.pipeline_mode<synchronous>, transform_indices = @transform_12, window_bounds = array<i64: 1, 32>}, {pipeline_mode = #tpu.pipeline_mode<synchronous>, transform_indices = @transform_13, window_bounds = array<i64: 32, 128>}, {pipeline_mode = #tpu.pipeline_mode<synchronous>, transform_indices = @transform_14, window_bounds = array<i64: 1, 128>}, {pipeline_mode = #tpu.pipeline_mode<synchronous>, transform_indices = @transform_15, window_bounds = array<i64: 128, 32>}, {pipeline_mode = #tpu.pipeline_mode<synchronous>, transform_indices = @transform_16, window_bounds = array<i64: 1, 32>}, {transform_indices = @transform_17, window_bounds = array<i64: 1, 8, 32>}]} {
    %c0 = arith.constant 0 : index
    %c0_0 = arith.constant 0 : index
    %0 = vector.load %arg3[%c0, %c0_0] : memref<1x32xf32, #tpu.memory_space<vmem>>, vector<1x32xf32>
    %c0_1 = arith.constant 0 : index
    %c0_2 = arith.constant 0 : index
    %1 = vector.load %arg4[%c0_1, %c0_2] : memref<1x32xf32, #tpu.memory_space<vmem>>, vector<1x32xf32>
    %c0_i32 = arith.constant 0 : i32
    %2 = arith.cmpi eq, %arg1, %c0_i32 : i32
    %3 = arith.extui %2 : i1 to i32
    %cst = arith.constant 9.99999974E-6 : f32
    %c0_i32_3 = arith.constant 0 : i32
    %4 = arith.cmpi ne, %3, %c0_i32_3 : i32
    scf.if %4 {
      %c0_98 = arith.constant 0 : index
      %c0_99 = arith.constant 0 : index
      %c0_100 = arith.constant 0 : index
      %144 = vector.load %arg2[%c0_98, %c0_99, %c0_100] : memref<1x8x32xf32, #tpu.memory_space<vmem>>, vector<1x8x32xf32>
      %145 = vector.shape_cast %144 : vector<1x8x32xf32> to vector<8x32xf32>
      %cst_101 = arith.constant dense<0.000000e+00> : vector<8xf32>
      %146 = vector.multi_reduction <add>, %145, %cst_101 [1] : vector<8x32xf32> to vector<8xf32>
      %147 = vector.shape_cast %146 : vector<8xf32> to vector<8x1xf32>
      %cst_102 = arith.constant 3.200000e+01 : f32
      %148 = vector.broadcast %cst_102 : f32 to vector<8x1xf32>
      %149 = arith.divf %147, %148 : vector<8x1xf32>
      %150 = vector.broadcast %149 : vector<8x1xf32> to vector<8x32xf32>
      %151 = arith.subf %145, %150 : vector<8x32xf32>
      %152 = arith.mulf %151, %151 : vector<8x32xf32>
      %cst_103 = arith.constant dense<0.000000e+00> : vector<8xf32>
      %153 = vector.multi_reduction <add>, %152, %cst_103 [1] : vector<8x32xf32> to vector<8xf32>
      %154 = vector.shape_cast %153 : vector<8xf32> to vector<8x1xf32>
      %cst_104 = arith.constant 3.200000e+01 : f32
      %155 = vector.broadcast %cst_104 : f32 to vector<8x1xf32>
      %156 = arith.divf %154, %155 : vector<8x1xf32>
      %157 = vector.broadcast %149 : vector<8x1xf32> to vector<8x32xf32>
      %158 = arith.subf %145, %157 : vector<8x32xf32>
      %159 = vector.broadcast %cst : f32 to vector<8x1xf32>
      %160 = arith.addf %156, %159 : vector<8x1xf32>
      %161 = math.rsqrt %160 : vector<8x1xf32>
      %162 = vector.broadcast %161 : vector<8x1xf32> to vector<8x32xf32>
      %163 = arith.mulf %158, %162 : vector<8x32xf32>
      %164 = vector.broadcast %0 : vector<1x32xf32> to vector<8x32xf32>
      %165 = arith.mulf %163, %164 : vector<8x32xf32>
      %166 = vector.broadcast %1 : vector<1x32xf32> to vector<8x32xf32>
      %167 = arith.addf %165, %166 : vector<8x32xf32>
      %168 = arith.truncf %167 : vector<8x32xf32> to vector<8x32xbf16>
      %c0_105 = arith.constant 0 : index
      %c0_106 = arith.constant 0 : index
      %169 = vector.load %arg7[%c0_105, %c0_106] : memref<32x32xbf16, #tpu.memory_space<vmem>>, vector<32x32xbf16>
      %cst_107 = arith.constant dense<0.000000e+00> : vector<8x32xf32>
      %170 = tpu.matmul %168, %169, %cst_107 {dimension_numbers = #tpu.dot_dimension_numbers<[1], [0], [0], [1], [0, 0, 1, 1], [], []>} : vector<8x32xbf16>, vector<32x32xbf16>, vector<8x32xf32> -> vector<8x32xf32>
      %c0_108 = arith.constant 0 : index
      %c0_109 = arith.constant 0 : index
      %171 = vector.load %arg8[%c0_108, %c0_109] : memref<1x32xf32, #tpu.memory_space<vmem>>, vector<1x32xf32>
      %172 = vector.broadcast %171 : vector<1x32xf32> to vector<8x32xf32>
      %173 = arith.addf %170, %172 : vector<8x32xf32>
      %c0_110 = arith.constant 0 : index
      %c0_111 = arith.constant 0 : index
      %174 = vector.load %arg9[%c0_110, %c0_111] : memref<32x32xbf16, #tpu.memory_space<vmem>>, vector<32x32xbf16>
      %cst_112 = arith.constant dense<0.000000e+00> : vector<8x32xf32>
      %175 = tpu.matmul %168, %174, %cst_112 {dimension_numbers = #tpu.dot_dimension_numbers<[1], [0], [0], [1], [0, 0, 1, 1], [], []>} : vector<8x32xbf16>, vector<32x32xbf16>, vector<8x32xf32> -> vector<8x32xf32>
      %c0_113 = arith.constant 0 : index
      %c0_114 = arith.constant 0 : index
      %176 = vector.load %arg10[%c0_113, %c0_114] : memref<1x32xf32, #tpu.memory_space<vmem>>, vector<1x32xf32>
      %177 = vector.broadcast %176 : vector<1x32xf32> to vector<8x32xf32>
      %178 = arith.addf %175, %177 : vector<8x32xf32>
      %179 = vector.shape_cast %173 : vector<8x32xf32> to vector<8x4x8xf32>
      %180 = tpu.transpose %179, [1, 0, 2] : vector<8x4x8xf32> -> vector<4x8x8xf32>
      %181 = arith.truncf %180 : vector<4x8x8xf32> to vector<4x8x8xbf16>
      %c0_115 = arith.constant 0 : index
      %c0_116 = arith.constant 0 : index
      %c0_117 = arith.constant 0 : index
      %182 = vector.load %arg20[%c0_115, %c0_116, %c0_117] : memref<4x8x8xbf16, #tpu.memory_space<vmem>>, vector<4x8x8xbf16>
      tpu.vector_store %arg20[%c0_115, %c0_116, %c0_117], %181 {strides = array<i32>} : memref<4x8x8xbf16, #tpu.memory_space<vmem>>, vector<4x8x8xbf16>,
      %183 = vector.shape_cast %178 : vector<8x32xf32> to vector<8x4x8xf32>
      %184 = tpu.transpose %183, [1, 0, 2] : vector<8x4x8xf32> -> vector<4x8x8xf32>
      %185 = arith.truncf %184 : vector<4x8x8xf32> to vector<4x8x8xbf16>
      %c0_118 = arith.constant 0 : index
      %c0_119 = arith.constant 0 : index
      %c0_120 = arith.constant 0 : index
      %186 = vector.load %arg21[%c0_118, %c0_119, %c0_120] : memref<4x8x8xbf16, #tpu.memory_space<vmem>>, vector<4x8x8xbf16>
      tpu.vector_store %arg21[%c0_118, %c0_119, %c0_120], %185 {strides = array<i32>} : memref<4x8x8xbf16, #tpu.memory_space<vmem>>, vector<4x8x8xbf16>,
    } else {
    }
    %c8_i32 = arith.constant 8 : i32
    %5 = arith.muli %arg1, %c8_i32 : i32
    %6 = tpu.assume_multiple %5, 8 : i32
    %c0_4 = arith.constant 0 : index
    %7 = arith.index_cast %6 : i32 to index
    %c0_5 = arith.constant 0 : index
    %8 = vector.load %arg2[%c0_4, %7, %c0_5] : memref<1x8x32xf32, #tpu.memory_space<vmem>>, vector<1x8x32xf32>
    %9 = vector.shape_cast %8 : vector<1x8x32xf32> to vector<8x32xf32>
    %cst_6 = arith.constant dense<0.000000e+00> : vector<8xf32>
    %10 = vector.multi_reduction <add>, %9, %cst_6 [1] : vector<8x32xf32> to vector<8xf32>
    %11 = vector.shape_cast %10 : vector<8xf32> to vector<8x1xf32>
    %cst_7 = arith.constant 3.200000e+01 : f32
    %12 = vector.broadcast %cst_7 : f32 to vector<8x1xf32>
    %13 = arith.divf %11, %12 : vector<8x1xf32>
    %14 = vector.broadcast %13 : vector<8x1xf32> to vector<8x32xf32>
    %15 = arith.subf %9, %14 : vector<8x32xf32>
    %16 = arith.mulf %15, %15 : vector<8x32xf32>
    %cst_8 = arith.constant dense<0.000000e+00> : vector<8xf32>
    %17 = vector.multi_reduction <add>, %16, %cst_8 [1] : vector<8x32xf32> to vector<8xf32>
    %18 = vector.shape_cast %17 : vector<8xf32> to vector<8x1xf32>
    %cst_9 = arith.constant 3.200000e+01 : f32
    %19 = vector.broadcast %cst_9 : f32 to vector<8x1xf32>
    %20 = arith.divf %18, %19 : vector<8x1xf32>
    %21 = vector.broadcast %13 : vector<8x1xf32> to vector<8x32xf32>
    %22 = arith.subf %9, %21 : vector<8x32xf32>
    %cst_10 = arith.constant 9.99999974E-6 : f32
    %23 = vector.broadcast %cst_10 : f32 to vector<8x1xf32>
    %24 = arith.addf %20, %23 : vector<8x1xf32>
    %25 = math.rsqrt %24 : vector<8x1xf32>
    %26 = vector.broadcast %25 : vector<8x1xf32> to vector<8x32xf32>
    %27 = arith.mulf %22, %26 : vector<8x32xf32>
    %28 = vector.broadcast %0 : vector<1x32xf32> to vector<8x32xf32>
    %29 = arith.mulf %27, %28 : vector<8x32xf32>
    %30 = vector.broadcast %1 : vector<1x32xf32> to vector<8x32xf32>
    %31 = arith.addf %29, %30 : vector<8x32xf32>
    %32 = arith.truncf %31 : vector<8x32xf32> to vector<8x32xbf16>
    %c0_11 = arith.constant 0 : index
    %c0_12 = arith.constant 0 : index
    %33 = vector.load %arg5[%c0_11, %c0_12] : memref<32x32xbf16, #tpu.memory_space<vmem>>, vector<32x32xbf16>
    %cst_13 = arith.constant dense<0.000000e+00> : vector<8x32xf32>
    %34 = tpu.matmul %32, %33, %cst_13 {dimension_numbers = #tpu.dot_dimension_numbers<[1], [0], [0], [1], [0, 0, 1, 1], [], []>} : vector<8x32xbf16>, vector<32x32xbf16>, vector<8x32xf32> -> vector<8x32xf32>
    %c0_14 = arith.constant 0 : index
    %c0_15 = arith.constant 0 : index
    %35 = vector.load %arg6[%c0_14, %c0_15] : memref<1x32xf32, #tpu.memory_space<vmem>>, vector<1x32xf32>
    %36 = vector.broadcast %35 : vector<1x32xf32> to vector<8x32xf32>
    %37 = arith.addf %34, %36 : vector<8x32xf32>
    %cst_16 = arith.constant 0.353553385 : f32
    %38 = vector.broadcast %cst_16 : f32 to vector<8x32xf32>
    %39 = arith.mulf %37, %38 : vector<8x32xf32>
    %40 = vector.shape_cast %39 : vector<8x32xf32> to vector<8x4x8xf32>
    %41 = tpu.transpose %40, [1, 0, 2] : vector<8x4x8xf32> -> vector<4x8x8xf32>
    %42 = arith.truncf %41 : vector<4x8x8xf32> to vector<4x8x8xbf16>
    %cst_17 = arith.constant 0xFF800000 : f32
    %43 = vector.broadcast %cst_17 : f32 to vector<4x8x1xf32>
    %c0_18 = arith.constant 0 : index
    %c0_19 = arith.constant 0 : index
    %c0_20 = arith.constant 0 : index
    %44 = vector.load %arg22[%c0_18, %c0_19, %c0_20] : memref<4x8x1xf32, #tpu.memory_space<vmem>>, vector<4x8x1xf32>
    tpu.vector_store %arg22[%c0_18, %c0_19, %c0_20], %43 {strides = array<i32>} : memref<4x8x1xf32, #tpu.memory_space<vmem>>, vector<4x8x1xf32>,
    %cst_21 = arith.constant 0.000000e+00 : f32
    %45 = vector.broadcast %cst_21 : f32 to vector<4x8x1xf32>
    %c0_22 = arith.constant 0 : index
    %c0_23 = arith.constant 0 : index
    %c0_24 = arith.constant 0 : index
    %46 = vector.load %arg23[%c0_22, %c0_23, %c0_24] : memref<4x8x1xf32, #tpu.memory_space<vmem>>, vector<4x8x1xf32>
    tpu.vector_store %arg23[%c0_22, %c0_23, %c0_24], %45 {strides = array<i32>} : memref<4x8x1xf32, #tpu.memory_space<vmem>>, vector<4x8x1xf32>,
    %cst_25 = arith.constant 0.000000e+00 : f32
    %47 = vector.broadcast %cst_25 : f32 to vector<4x8x8xf32>
    %c0_26 = arith.constant 0 : index
    %c0_27 = arith.constant 0 : index
    %c0_28 = arith.constant 0 : index
    %48 = vector.load %arg24[%c0_26, %c0_27, %c0_28] : memref<4x8x8xf32, #tpu.memory_space<vmem>>, vector<4x8x8xf32>
    tpu.vector_store %arg24[%c0_26, %c0_27, %c0_28], %47 {strides = array<i32>} : memref<4x8x8xf32, #tpu.memory_space<vmem>>, vector<4x8x8xf32>,
    %c0_i32_29 = arith.constant 0 : i32
    %c1_i32 = arith.constant 1 : i32
    %49 = arith.muli %c0_i32_29, %c1_i32 : i32
    %c0_i32_30 = arith.constant 0 : i32
    %50 = arith.addi %c0_i32_30, %49 : i32
    %c8_i32_31 = arith.constant 8 : i32
    %51 = arith.muli %50, %c8_i32_31 : i32
    %52 = tpu.assume_multiple %51, 8 : i32
    %c0_32 = arith.constant 0 : index
    %53 = arith.index_cast %52 : i32 to index
    %c0_33 = arith.constant 0 : index
    %54 = vector.load %arg20[%c0_32, %53, %c0_33] : memref<4x8x8xbf16, #tpu.memory_space<vmem>>, vector<4x8x8xbf16>
    %c0_34 = arith.constant 0 : index
    %55 = arith.index_cast %52 : i32 to index
    %c0_35 = arith.constant 0 : index
    %56 = vector.load %arg21[%c0_34, %55, %c0_35] : memref<4x8x8xbf16, #tpu.memory_space<vmem>>, vector<4x8x8xbf16>
    "tpu.trace_start"() <{level = 10 : i32, message = "hqd,hkd->hqk"}> : () -> ()
    %cst_36 = arith.constant dense<0.000000e+00> : vector<4x8x8xf32>
    %57 = tpu.matmul %42, %54, %cst_36 {dimension_numbers = #tpu.dot_dimension_numbers<[2], [2], [1], [1], [0, 0, 0, 1, 1, 1], [0], [0]>} : vector<4x8x8xbf16>, vector<4x8x8xbf16>, vector<4x8x8xf32> -> vector<4x8x8xf32>
    "tpu.trace_stop"() : () -> ()
    %c0_37 = arith.constant 0 : index
    %c0_38 = arith.constant 0 : index
    %c0_39 = arith.constant 0 : index
    %58 = vector.load %arg22[%c0_37, %c0_38, %c0_39] : memref<4x8x1xf32, #tpu.memory_space<vmem>>, vector<4x8x1xf32>
    %cst_40 = arith.constant dense<0xFF800000> : vector<4x8xf32>
    %59 = vector.multi_reduction <maximumf>, %57, %cst_40 [2] : vector<4x8x8xf32> to vector<4x8xf32>
    %60 = vector.shape_cast %59 : vector<4x8xf32> to vector<4x8x1xf32>
    %61 = arith.maximumf %58, %60 : vector<4x8x1xf32>
    %c0_41 = arith.constant 0 : index
    %c0_42 = arith.constant 0 : index
    %c0_43 = arith.constant 0 : index
    %62 = vector.load %arg22[%c0_41, %c0_42, %c0_43] : memref<4x8x1xf32, #tpu.memory_space<vmem>>, vector<4x8x1xf32>
    %63 = arith.subf %62, %61 : vector<4x8x1xf32>
    %64 = math.exp %63 : vector<4x8x1xf32>
    %65 = vector.broadcast %61 : vector<4x8x1xf32> to vector<4x8x8xf32>
    %66 = arith.subf %57, %65 : vector<4x8x8xf32>
    %67 = math.exp %66 : vector<4x8x8xf32>
    %c0_44 = arith.constant 0 : index
    %c0_45 = arith.constant 0 : index
    %c0_46 = arith.constant 0 : index
    %68 = vector.load %arg23[%c0_44, %c0_45, %c0_46] : memref<4x8x1xf32, #tpu.memory_space<vmem>>, vector<4x8x1xf32>
    %69 = arith.mulf %64, %68 : vector<4x8x1xf32>
    %cst_47 = arith.constant dense<0.000000e+00> : vector<4x8xf32>
    %70 = vector.multi_reduction <add>, %67, %cst_47 [2] : vector<4x8x8xf32> to vector<4x8xf32>
    %71 = vector.shape_cast %70 : vector<4x8xf32> to vector<4x8x1xf32>
    %72 = arith.addf %69, %71 : vector<4x8x1xf32>
    %c0_48 = arith.constant 0 : index
    %c0_49 = arith.constant 0 : index
    %c0_50 = arith.constant 0 : index
    %73 = vector.load %arg23[%c0_48, %c0_49, %c0_50] : memref<4x8x1xf32, #tpu.memory_space<vmem>>, vector<4x8x1xf32>
    tpu.vector_store %arg23[%c0_48, %c0_49, %c0_50], %72 {strides = array<i32>} : memref<4x8x1xf32, #tpu.memory_space<vmem>>, vector<4x8x1xf32>,
    %74 = arith.truncf %67 : vector<4x8x8xf32> to vector<4x8x8xbf16>
    "tpu.trace_start"() <{level = 10 : i32, message = "hqk,hkd->hqd"}> : () -> ()
    %cst_51 = arith.constant dense<0.000000e+00> : vector<4x8x8xf32>
    %75 = tpu.matmul %74, %56, %cst_51 {dimension_numbers = #tpu.dot_dimension_numbers<[2], [1], [1], [2], [0, 0, 0, 1, 1, 2], [0], [0]>} : vector<4x8x8xbf16>, vector<4x8x8xbf16>, vector<4x8x8xf32> -> vector<4x8x8xf32>
    "tpu.trace_stop"() : () -> ()
    %c0_52 = arith.constant 0 : index
    %c0_53 = arith.constant 0 : index
    %c0_54 = arith.constant 0 : index
    %76 = vector.load %arg24[%c0_52, %c0_53, %c0_54] : memref<4x8x8xf32, #tpu.memory_space<vmem>>, vector<4x8x8xf32>
    %77 = vector.broadcast %64 : vector<4x8x1xf32> to vector<4x8x8xf32>
    %78 = arith.mulf %77, %76 : vector<4x8x8xf32>
    %79 = arith.addf %78, %75 : vector<4x8x8xf32>
    %c0_55 = arith.constant 0 : index
    %c0_56 = arith.constant 0 : index
    %c0_57 = arith.constant 0 : index
    %80 = vector.load %arg24[%c0_55, %c0_56, %c0_57] : memref<4x8x8xf32, #tpu.memory_space<vmem>>, vector<4x8x8xf32>
    tpu.vector_store %arg24[%c0_55, %c0_56, %c0_57], %79 {strides = array<i32>} : memref<4x8x8xf32, #tpu.memory_space<vmem>>, vector<4x8x8xf32>,
    %c0_58 = arith.constant 0 : index
    %c0_59 = arith.constant 0 : index
    %c0_60 = arith.constant 0 : index
    %81 = vector.load %arg22[%c0_58, %c0_59, %c0_60] : memref<4x8x1xf32, #tpu.memory_space<vmem>>, vector<4x8x1xf32>
    tpu.vector_store %arg22[%c0_58, %c0_59, %c0_60], %61 {strides = array<i32>} : memref<4x8x1xf32, #tpu.memory_space<vmem>>, vector<4x8x1xf32>,
    %c1_i32_61 = arith.constant 1 : i32
    %c0_62 = arith.constant 0 : index
    %c0_63 = arith.constant 0 : index
    %c0_64 = arith.constant 0 : index
    %82 = vector.load %arg24[%c0_62, %c0_63, %c0_64] : memref<4x8x8xf32, #tpu.memory_space<vmem>>, vector<4x8x8xf32>
    %c0_65 = arith.constant 0 : index
    %c0_66 = arith.constant 0 : index
    %c0_67 = arith.constant 0 : index
    %83 = vector.load %arg23[%c0_65, %c0_66, %c0_67] : memref<4x8x1xf32, #tpu.memory_space<vmem>>, vector<4x8x1xf32>
    %84 = tpu.reciprocal %83 {approx = true} : vector<4x8x1xf32> -> vector<4x8x1xf32>
    %85 = vector.broadcast %84 : vector<4x8x1xf32> to vector<4x8x8xf32>
    %86 = arith.mulf %82, %85 : vector<4x8x8xf32>
    %87 = tpu.transpose %86, [1, 0, 2] : vector<4x8x8xf32> -> vector<8x4x8xf32>
    %88 = vector.shape_cast %87 : vector<8x4x8xf32> to vector<8x32xf32>
    %89 = arith.truncf %88 : vector<8x32xf32> to vector<8x32xbf16>
    %c0_68 = arith.constant 0 : index
    %c0_69 = arith.constant 0 : index
    %90 = vector.load %arg11[%c0_68, %c0_69] : memref<32x32xbf16, #tpu.memory_space<vmem>>, vector<32x32xbf16>
    %cst_70 = arith.constant dense<0.000000e+00> : vector<8x32xf32>
    %91 = tpu.matmul %89, %90, %cst_70 {dimension_numbers = #tpu.dot_dimension_numbers<[1], [0], [0], [1], [0, 0, 1, 1], [], []>} : vector<8x32xbf16>, vector<32x32xbf16>, vector<8x32xf32> -> vector<8x32xf32>
    %c0_71 = arith.constant 0 : index
    %c0_72 = arith.constant 0 : index
    %92 = vector.load %arg12[%c0_71, %c0_72] : memref<1x32xf32, #tpu.memory_space<vmem>>, vector<1x32xf32>
    %93 = vector.broadcast %92 : vector<1x32xf32> to vector<8x32xf32>
    %94 = arith.addf %91, %93 : vector<8x32xf32>
    %95 = arith.addf %9, %94 : vector<8x32xf32>
    %c0_73 = arith.constant 0 : index
    %c0_74 = arith.constant 0 : index
    %96 = vector.load %arg13[%c0_73, %c0_74] : memref<1x32xf32, #tpu.memory_space<vmem>>, vector<1x32xf32>
    %c0_75 = arith.constant 0 : index
    %c0_76 = arith.constant 0 : index
    %97 = vector.load %arg14[%c0_75, %c0_76] : memref<1x32xf32, #tpu.memory_space<vmem>>, vector<1x32xf32>
    %cst_77 = arith.constant dense<0.000000e+00> : vector<8xf32>
    %98 = vector.multi_reduction <add>, %95, %cst_77 [1] : vector<8x32xf32> to vector<8xf32>
    %99 = vector.shape_cast %98 : vector<8xf32> to vector<8x1xf32>
    %cst_78 = arith.constant 3.200000e+01 : f32
    %100 = vector.broadcast %cst_78 : f32 to vector<8x1xf32>
    %101 = arith.divf %99, %100 : vector<8x1xf32>
    %102 = vector.broadcast %101 : vector<8x1xf32> to vector<8x32xf32>
    %103 = arith.subf %95, %102 : vector<8x32xf32>
    %104 = arith.mulf %103, %103 : vector<8x32xf32>
    %cst_79 = arith.constant dense<0.000000e+00> : vector<8xf32>
    %105 = vector.multi_reduction <add>, %104, %cst_79 [1] : vector<8x32xf32> to vector<8xf32>
    %106 = vector.shape_cast %105 : vector<8xf32> to vector<8x1xf32>
    %cst_80 = arith.constant 3.200000e+01 : f32
    %107 = vector.broadcast %cst_80 : f32 to vector<8x1xf32>
    %108 = arith.divf %106, %107 : vector<8x1xf32>
    %109 = vector.broadcast %101 : vector<8x1xf32> to vector<8x32xf32>
    %110 = arith.subf %95, %109 : vector<8x32xf32>
    %cst_81 = arith.constant 9.99999974E-6 : f32
    %111 = vector.broadcast %cst_81 : f32 to vector<8x1xf32>
    %112 = arith.addf %108, %111 : vector<8x1xf32>
    %113 = math.rsqrt %112 : vector<8x1xf32>
    %114 = vector.broadcast %113 : vector<8x1xf32> to vector<8x32xf32>
    %115 = arith.mulf %110, %114 : vector<8x32xf32>
    %116 = vector.broadcast %96 : vector<1x32xf32> to vector<8x32xf32>
    %117 = arith.mulf %115, %116 : vector<8x32xf32>
    %118 = vector.broadcast %97 : vector<1x32xf32> to vector<8x32xf32>
    %119 = arith.addf %117, %118 : vector<8x32xf32>
    %120 = arith.truncf %119 : vector<8x32xf32> to vector<8x32xbf16>
    %c0_82 = arith.constant 0 : index
    %c0_83 = arith.constant 0 : index
    %121 = vector.load %arg15[%c0_82, %c0_83] : memref<32x128xbf16, #tpu.memory_space<vmem>>, vector<32x128xbf16>
    %cst_84 = arith.constant dense<0.000000e+00> : vector<8x128xf32>
    %122 = tpu.matmul %120, %121, %cst_84 {dimension_numbers = #tpu.dot_dimension_numbers<[1], [0], [0], [1], [0, 0, 1, 1], [], []>} : vector<8x32xbf16>, vector<32x128xbf16>, vector<8x128xf32> -> vector<8x128xf32>
    %c0_85 = arith.constant 0 : index
    %c0_86 = arith.constant 0 : index
    %123 = vector.load %arg16[%c0_85, %c0_86] : memref<1x128xf32, #tpu.memory_space<vmem>>, vector<1x128xf32>
    %124 = vector.broadcast %123 : vector<1x128xf32> to vector<8x128xf32>
    %125 = arith.addf %122, %124 : vector<8x128xf32>
    %cst_87 = arith.constant 5.000000e-01 : f32
    %126 = vector.broadcast %cst_87 : f32 to vector<8x128xf32>
    %127 = arith.mulf %126, %125 : vector<8x128xf32>
    %cst_88 = arith.constant 0.707106769 : f32
    %128 = vector.broadcast %cst_88 : f32 to vector<8x128xf32>
    %129 = arith.mulf %125, %128 : vector<8x128xf32>
    %130 = math.erf %129 : vector<8x128xf32>
    %cst_89 = arith.constant 1.000000e+00 : f32
    %131 = vector.broadcast %cst_89 : f32 to vector<8x128xf32>
    %132 = arith.addf %131, %130 : vector<8x128xf32>
    %133 = arith.mulf %127, %132 : vector<8x128xf32>
    %134 = arith.truncf %133 : vector<8x128xf32> to vector<8x128xbf16>
    %c0_90 = arith.constant 0 : index
    %c0_91 = arith.constant 0 : index
    %135 = vector.load %arg17[%c0_90, %c0_91] : memref<128x32xbf16, #tpu.memory_space<vmem>>, vector<128x32xbf16>
    %cst_92 = arith.constant dense<0.000000e+00> : vector<8x32xf32>
    %136 = tpu.matmul %134, %135, %cst_92 {dimension_numbers = #tpu.dot_dimension_numbers<[1], [0], [0], [1], [0, 0, 1, 1], [], []>} : vector<8x128xbf16>, vector<128x32xbf16>, vector<8x32xf32> -> vector<8x32xf32>
    %c0_93 = arith.constant 0 : index
    %c0_94 = arith.constant 0 : index
    %137 = vector.load %arg18[%c0_93, %c0_94] : memref<1x32xf32, #tpu.memory_space<vmem>>, vector<1x32xf32>
    %138 = vector.broadcast %137 : vector<1x32xf32> to vector<8x32xf32>
    %139 = arith.addf %136, %138 : vector<8x32xf32>
    %140 = arith.addf %95, %139 : vector<8x32xf32>
    %c0_95 = arith.constant 0 : index
    %c0_96 = arith.constant 0 : index
    %c0_97 = arith.constant 0 : index
    %141 = vector.load %arg19[%c0_95, %c0_96, %c0_97] : memref<1x8x32xf32, #tpu.memory_space<vmem>>, vector<1x8x32xf32>
    %142 = vector.shape_cast %141 : vector<1x8x32xf32> to vector<8x32xf32>
    %143 = vector.shape_cast %140 : vector<8x32xf32> to vector<1x8x32xf32>
    tpu.vector_store %arg19[%c0_95, %c0_96, %c0_97], %143 {strides = array<i32>} : memref<1x8x32xf32, #tpu.memory_space<vmem>>, vector<1x8x32xf32>,
    return
  }
  func.func @transform_0(%arg0: i32, %arg1: i32) -> (i32, i32, i32) {
    %c0_i32 = arith.constant 0 : i32
    %c0_i32_0 = arith.constant 0 : i32
    %c0_i32_1 = arith.constant 0 : i32
    return %arg0, %c0_i32, %c0_i32_0 : i32, i32, i32
  }
  func.func @transform_1(%arg0: i32, %arg1: i32) -> (i32, i32) {
    %c0_i32 = arith.constant 0 : i32
    %c0_i32_0 = arith.constant 0 : i32
    %c0_i32_1 = arith.constant 0 : i32
    return %c0_i32, %c0_i32_0 : i32, i32
  }
  func.func @transform_2(%arg0: i32, %arg1: i32) -> (i32, i32) {
    %c0_i32 = arith.constant 0 : i32
    %c0_i32_0 = arith.constant 0 : i32
    %c0_i32_1 = arith.constant 0 : i32
    return %c0_i32, %c0_i32_0 : i32, i32
  }
  func.func @transform_3(%arg0: i32, %arg1: i32) -> (i32, i32) {
    %c0_i32 = arith.constant 0 : i32
    %c0_i32_0 = arith.constant 0 : i32
    %c0_i32_1 = arith.constant 0 : i32
    return %c0_i32, %c0_i32_0 : i32, i32
  }
  func.func @transform_4(%arg0: i32, %arg1: i32) -> (i32, i32) {
    %c0_i32 = arith.constant 0 : i32
    %c0_i32_0 = arith.constant 0 : i32
    %c0_i32_1 = arith.constant 0 : i32
    return %c0_i32, %c0_i32_0 : i32, i32
  }
  func.func @transform_5(%arg0: i32, %arg1: i32) -> (i32, i32) {
    %c0_i32 = arith.constant 0 : i32
    %c0_i32_0 = arith.constant 0 : i32
    %c0_i32_1 = arith.constant 0 : i32
    return %c0_i32, %c0_i32_0 : i32, i32
  }
  func.func @transform_6(%arg0: i32, %arg1: i32) -> (i32, i32) {
    %c0_i32 = arith.constant 0 : i32
    %c0_i32_0 = arith.constant 0 : i32
    %c0_i32_1 = arith.constant 0 : i32
    return %c0_i32, %c0_i32_0 : i32, i32
  }
  func.func @transform_7(%arg0: i32, %arg1: i32) -> (i32, i32) {
    %c0_i32 = arith.constant 0 : i32
    %c0_i32_0 = arith.constant 0 : i32
    %c0_i32_1 = arith.constant 0 : i32
    return %c0_i32, %c0_i32_0 : i32, i32
  }
  func.func @transform_8(%arg0: i32, %arg1: i32) -> (i32, i32) {
    %c0_i32 = arith.constant 0 : i32
    %c0_i32_0 = arith.constant 0 : i32
    %c0_i32_1 = arith.constant 0 : i32
    return %c0_i32, %c0_i32_0 : i32, i32
  }
  func.func @transform_9(%arg0: i32, %arg1: i32) -> (i32, i32) {
    %c0_i32 = arith.constant 0 : i32
    %c0_i32_0 = arith.constant 0 : i32
    %c0_i32_1 = arith.constant 0 : i32
    return %c0_i32, %c0_i32_0 : i32, i32
  }
  func.func @transform_10(%arg0: i32, %arg1: i32) -> (i32, i32) {
    %c0_i32 = arith.constant 0 : i32
    %c0_i32_0 = arith.constant 0 : i32
    %c0_i32_1 = arith.constant 0 : i32
    return %c0_i32, %c0_i32_0 : i32, i32
  }
  func.func @transform_11(%arg0: i32, %arg1: i32) -> (i32, i32) {
    %c0_i32 = arith.constant 0 : i32
    %c0_i32_0 = arith.constant 0 : i32
    %c0_i32_1 = arith.constant 0 : i32
    return %c0_i32, %c0_i32_0 : i32, i32
  }
  func.func @transform_12(%arg0: i32, %arg1: i32) -> (i32, i32) {
    %c0_i32 = arith.constant 0 : i32
    %c0_i32_0 = arith.constant 0 : i32
    %c0_i32_1 = arith.constant 0 : i32
    return %c0_i32, %c0_i32_0 : i32, i32
  }
  func.func @transform_13(%arg0: i32, %arg1: i32) -> (i32, i32) {
    %c0_i32 = arith.constant 0 : i32
    %c0_i32_0 = arith.constant 0 : i32
    %c0_i32_1 = arith.constant 0 : i32
    return %c0_i32, %c0_i32_0 : i32, i32
  }
  func.func @transform_14(%arg0: i32, %arg1: i32) -> (i32, i32) {
    %c0_i32 = arith.constant 0 : i32
    %c0_i32_0 = arith.constant 0 : i32
    %c0_i32_1 = arith.constant 0 : i32
    return %c0_i32, %c0_i32_0 : i32, i32
  }
  func.func @transform_15(%arg0: i32, %arg1: i32) -> (i32, i32) {
    %c0_i32 = arith.constant 0 : i32
    %c0_i32_0 = arith.constant 0 : i32
    %c0_i32_1 = arith.constant 0 : i32
    return %c0_i32, %c0_i32_0 : i32, i32
  }
  func.func @transform_16(%arg0: i32, %arg1: i32) -> (i32, i32) {
    %c0_i32 = arith.constant 0 : i32
    %c0_i32_0 = arith.constant 0 : i32
    %c0_i32_1 = arith.constant 0 : i32
    return %c0_i32, %c0_i32_0 : i32, i32
  }
  func.func @transform_17(%arg0: i32, %arg1: i32) -> (i32, i32, i32) {
    %c0_i32 = arith.constant 0 : i32
    %c0_i32_0 = arith.constant 0 : i32
    return %arg0, %arg1, %c0_i32 : i32, i32, i32
  }
}

</mosaic_0001>

<bundles_post_ra>
// kernel: tpu_custom_call.1
= control target key start
LH: loop header
LB: loop body
LE: loop exit
PB: predicated region body
PF: predicated region fallthrough
CT: control target
= control target key end

     0   :  { %s4851_s0 = inlined_call_operand.hbm [shape: f32[2,8,32], index: 0, kind: input, shape index: {}]   ;;  %s4852_s1 = inlined_call_operand.hbm [shape: f32[1,32], index: 1, kind: input, shape index: {}]   ;;  %s4853_s2 = inlined_call_operand.hbm [shape: f32[1,32], index: 2, kind: input, shape index: {}]   ;;  %s4854_s3 = inlined_call_operand.hbm [shape: bf16[32,32], index: 3, kind: input, shape index: {}]   ;;  %s4855_s4 = inlined_call_operand.hbm [shape: f32[1,32], index: 4, kind: input, shape index: {}]   ;;  %s4856_s5 = inlined_call_operand.hbm [shape: bf16[32,32], index: 5, kind: input, shape index: {}]   ;;  %s4857_s6 = inlined_call_operand.hbm [shape: f32[1,32], index: 6, kind: input, shape index: {}]   ;;  %s4858_s7 = inlined_call_operand.hbm [shape: bf16[32,32], index: 7, kind: input, shape index: {}]   ;;  %s4859_s8 = inlined_call_operand.hbm [shape: f32[1,32], index: 8, kind: input, shape index: {}]   ;;  %s4860_s9 = inlined_call_operand.hbm [shape: bf16[32,32], index: 9, kind: input, shape index: {}]   ;;  %s4861_s10 = inlined_call_operand.hbm [shape: f32[1,32], index: 10, kind: input, shape index: {}]   ;;  %s4862_s11 = inlined_call_operand.hbm [shape: f32[1,32], index: 11, kind: input, shape index: {}]   ;;  %s4863_s12 = inlined_call_operand.hbm [shape: f32[1,32], index: 12, kind: input, shape index: {}]   ;;  %s4864_s13 = inlined_call_operand.hbm [shape: bf16[32,128], index: 13, kind: input, shape index: {}]   ;;  %s4865_s14 = inlined_call_operand.hbm [shape: f32[1,128], index: 14, kind: input, shape index: {}]   ;;  %s4866_s15 = inlined_call_operand.hbm [shape: bf16[128,32], index: 15, kind: input, shape index: {}]   ;;  %s4867_s16 = inlined_call_operand.hbm [shape: f32[1,32], index: 16, kind: input, shape index: {}]   ;;  %s4868_s17 = inlined_call_operand.hbm [shape: f32[2,8,32], index: 17, kind: output, shape index: {}]  }
   0x1   :  { %4887 = sst [smem:[#allocation53_spill]] %s4851_s0 }
   0x2   :  { %4888 = sst [smem:[#allocation54_spill]] %s4852_s1 }
   0x3   :  { %4889 = sst [smem:[#allocation55_spill]] %s4853_s2 }
   0x4   :  { %4890 = sst [smem:[#allocation56_spill]] %s4854_s3 }
   0x5   :  { %4891 = sst [smem:[#allocation57_spill]] %s4855_s4 }
   0x6   :  { %4892 = sst [smem:[#allocation58_spill]] %s4856_s5 }
   0x7   :  { %4893 = sst [smem:[#allocation59_spill]] %s4868_s17 }
   0x8   :  { %22 = vsyncpa [#allocation8], 0 }
   0x9   :  { %24 = vsyncpa [#allocation8 + $0x1], 0 }
   0xa   :  { %25 = vsyncpa [#allocation11], 0 }
   0xb   :  { %26 = vsyncpa [#allocation14], 0 }
   0xc   :  { %27 = vsyncpa [#allocation17], 0 }
   0xd   :  { %28 = vsyncpa [#allocation20], 0 }
   0xe   :  { %29 = vsyncpa [#allocation23], 0 }
   0xf   :  { %30 = vsyncpa [#allocation26], 0 }
  0x10   :  { %31 = vsyncpa [#allocation29], 0 }
  0x11   :  { %32 = vsyncpa [#allocation32], 0 }
  0x12   :  { %33 = vsyncpa [#allocation9], 0 }
  0x13   :  { %35 = vsyncpa [#allocation9 + $0x1], 0  ;;  %s4011_s24 = smov 0   ;;  %s4013_s25 = smov 0  }
  0x14   :  { %s4015_s26 = smov 0   ;;  %s4017_s27 = smov 0  }
  0x15   :  { %s4019_s28 = smov 0   ;;  %s4021_s29 = smov 0  }
  0x16 LB: > { %4894 = sst [smem:[#allocation45_spill]] %s3867_s24  ;;  %s4871_s0 = sadd.s32 4294967295, %s3887_s29   ;;  %s3887_s29 = sphi %s4021_s29, %s41_s29   ;;  %s3883_s28 = sphi %s4019_s28, %s4943_s28   ;;  %s3879_s27 = sphi %s4017_s27, %s4942_s27   ;;  %s3875_s26 = sphi %s4015_s26, %s4941_s26   ;;  %s3871_s25 = sphi %s4013_s25, %s4939_s25   ;;  %s3867_s24 = sphi %s4011_s24, %s4938_s24  }
  0x17   : > { %4895 = sst [smem:[#allocation46_spill]] %s3871_s25  ;;  %p2765_p0 = scmp.ge.s32.totalorder %s3887_s29, 1 }
  0x18   : > { %4896 = sst [smem:[#allocation47_spill]] %s3875_s26  ;;  %p4045_p1 = scmp.eq.s32.totalorder %s4871_s0, 0 }
  0x19   : > { %4897 = sst [smem:[#allocation48_spill]] %s3879_s27  ;;  %p448_p2 = scmp.lt.s32.totalorder %s3887_s29, 3 }
  0x1a   : > { %4898 = sst [smem:[#allocation49_spill]] %s3883_s28  ;;  %s3889_s19 = smov [#allocation10]  }
  0x1b   : > { %4899 = sst [smem:[#allocation50_spill]] %s3887_s29  ;;  %p4050_p3 = pnand %p2765_p0, %p448_p2 }
  0x1c   : > { %s4900_s30 = scalar_select %p4045_p1, 1, 0 }
  0x1d   : > { %s4902_s18 = scalar_select %p4050_p3, 1, 0 }
  0x1e   : > { %4901 = sst [smem:[#allocation51_spill]] %s4900_s30  ;;  %s461_s1 = sshll.u32 %s3889_s19, 4  ;;  %s462_s1 = int_to_ptr.vmem [resolvable:$true] %s461_s1 }
  0x1f   : > { %4903 = sst [smem:[#allocation52_spill]] %s4902_s18  ;;  %p3073_p5 = pneg %p4050_p3 }
  0x20   : > { %s3890_s20 = smov [#allocation13]   ;;  %s3891_s23 = smov [#allocation16]  }
  0x21   : > { %s482_s21 = sshll.u32 %s3890_s20, 4  ;;  %p4059_p6 = pnand %p3073_p5, %p4045_p1  ;;  %s4063_s21 = int_to_ptr.vmem [resolvable:$true] %s482_s21 }
  0x22   : > { %s4065_s0 = sshll.u32 %s3891_s23, 4  ;;  %s4905_s19 = sld [smem:[#allocation54_spill]]  ;;  %s507_s0 = int_to_ptr.vmem [resolvable:$true] %s4065_s0 }
  0x23   : > { %p4075_p8 = pneg %p4059_p6 }
  0x28   : > { %s3295_s24 = scalar_lea.hbm %s4905_s19, 16 }
  0x29   : > { %p3296_p7 = scmp.ne.s32.totalorder %s4905_s19, %s3295_s24  ;;  %p3302_p11 = scmp.lt.u32.totalorder %s3295_s24, %s4905_s19 }
  0x2b   : > { %p3298_p9 = pnand %p4075_p8, %p3296_p7 }
  0x2d   : > { %p3299_p10 = pneg %p3298_p9 }
  0x2f   : > { %p3304_p12 = pnand %p3302_p11, %p3299_p10 }
  0x31   : > { %3307 = shalt.err (!%p3304_p12)
}
  0x32   : > { %s3308_s17 = scalar_lea.vmem %s462_s1, 16  ;;  %s3315_s25 = scalar_lea.vmem %s462_s1, 32 }
  0x33   : > { %p3309_p13 = scmp.ne.s32.totalorder %s462_s1, %s3308_s17  ;;  %p3316_p5 = scmp.lt.s32.totalorder %s462_s1, %s462_s1 }
  0x34   : > { %p3317_p4 = scmp.lt.s32.totalorder %s3315_s25, %s3308_s17 }
  0x35   : > { %p3311_p0 = pnand %p3309_p13, %p4075_p8 }
  0x36   : > { %p3318_p3 = por %p3317_p4, %p3316_p5 }
  0x37   : > { %p3312_p2 = pneg %p3311_p0 }
  0x39   : > { %p3319_p1 = pnand %p3318_p3, %p3312_p2 }
  0x3b   : > { %3322 = shalt.err (!%p3319_p1)
}
  0x3c   : > { %3076 = dma.hbm_to_vmem [thread:$0]  (!%p4059_p6), %s4905_s19, 16, %s462_s1, [#allocation11]  }
  0x3d   : > { %s4907_s3 = sld [smem:[#allocation56_spill]] }
  0x43   : > { %s3323_s23 = scalar_lea.hbm %s4907_s3, 256 }
  0x44   : > { %p3324_p7 = scmp.ne.s32.totalorder %s4907_s3, %s3323_s23  ;;  %p3330_p1 = scmp.lt.u32.totalorder %s3323_s23, %s4907_s3 }
  0x46   : > { %p3326_p9 = pnand %p3324_p7, %p4075_p8 }
  0x48   : > { %p3327_p4 = pneg %p3326_p9 }
  0x4a   : > { %p3332_p3 = pnand %p3330_p1, %p3327_p4 }
  0x4c   : > { %3335 = shalt.err (!%p3332_p3)
}
  0x4d   : > { %s3336_s1 = scalar_lea.vmem %s4063_s21, 256  ;;  %p3344_p13 = scmp.lt.s32.totalorder %s4063_s21, %s4063_s21 }
  0x4e   : > { %p3337_p10 = scmp.ne.s32.totalorder %s4063_s21, %s3336_s1  ;;  %p3345_p0 = scmp.lt.s32.totalorder %s3336_s1, %s3336_s1 }
  0x50   : > { %p3339_p11 = pnand %p3337_p10, %p4075_p8  ;;  %p3346_p2 = por %p3345_p0, %p3344_p13 }
  0x52   : > { %p3340_p12 = pneg %p3339_p11 }
  0x54   : > { %p3347_p5 = pnand %p3346_p2, %p3340_p12 }
  0x56   : > { %3350 = shalt.err (!%p3347_p5)
}
  0x57   : > { %s3892_s26 = smov 64   ;;  %s3893_s28 = smov 4  }
  0x58   : > { %3082 = dma.hbm_to_vmem [thread:$0]  (!%p4059_p6), %s4907_s3, 256, %s4063_s21, [#allocation14], %s3892_s26, %s3892_s26, %s3893_s28  }
  0x59   : > { %s4908_s5 = sld [smem:[#allocation58_spill]] }
  0x5f   : > { %s3351_s23 = scalar_lea.hbm %s4908_s5, 256 }
  0x60   : > { %p3352_p7 = scmp.ne.s32.totalorder %s4908_s5, %s3351_s23  ;;  %p3358_p1 = scmp.lt.u32.totalorder %s3351_s23, %s4908_s5 }
  0x62   : > { %p3354_p9 = pnand %p3352_p7, %p4075_p8 }
  0x64   : > { %p3355_p4 = pneg %p3354_p9 }
  0x66   : > { %p3360_p3 = pnand %p3358_p1, %p3355_p4 }
  0x68   : > { %3363 = shalt.err (!%p3360_p3)
}
  0x69   : > { %s3364_s27 = scalar_lea.vmem %s507_s0, 256  ;;  %p3372_p13 = scmp.lt.s32.totalorder %s507_s0, %s507_s0 }
  0x6a   : > { %p3365_p10 = scmp.ne.s32.totalorder %s507_s0, %s3364_s27  ;;  %p3373_p0 = scmp.lt.s32.totalorder %s3364_s27, %s3364_s27 }
  0x6c   : > { %p3367_p11 = pnand %p3365_p10, %p4075_p8  ;;  %p3374_p2 = por %p3373_p0, %p3372_p13 }
  0x6e   : > { %p3368_p12 = pneg %p3367_p11 }
  0x70   : > { %p3375_p5 = pnand %p3374_p2, %p3368_p12 }
  0x72   : > { %3378 = shalt.err (!%p3375_p5)
}
  0x73   : > { %3088 = dma.hbm_to_vmem [thread:$0]  (!%p4059_p6), %s4908_s5, 256, %s507_s0, [#allocation17], %s3892_s26, %s3892_s26, %s3893_s28  }
  0x74   : > { %s3894_s18 = smov [#allocation19]   ;;  %s3895_s30 = smov [#allocation22]  }
  0x75   : > { %s530_s24 = sshll.u32 %s3894_s18, 4  ;;  %s554_s23 = sshll.u32 %s3895_s30, 4  ;;  %s531_s24 = int_to_ptr.vmem [resolvable:$true] %s530_s24  ;;  %s555_s23 = int_to_ptr.vmem [resolvable:$true] %s554_s23 }
  0x76   : > { %s3379_s1 = scalar_lea.hbm %s4858_s7, 256 }
  0x77   : > { %p3380_p7 = scmp.ne.s32.totalorder %s4858_s7, %s3379_s1  ;;  %p3386_p1 = scmp.lt.u32.totalorder %s3379_s1, %s4858_s7 }
  0x79   : > { %p3382_p9 = pnand %p3380_p7, %p4075_p8 }
  0x7b   : > { %p3383_p4 = pneg %p3382_p9 }
  0x7d   : > { %p3388_p3 = pnand %p3386_p1, %p3383_p4 }
  0x7f   : > { %3391 = shalt.err (!%p3388_p3)
}
  0x80   : > { %s3392_s0 = scalar_lea.vmem %s531_s24, 256  ;;  %p3400_p13 = scmp.lt.s32.totalorder %s531_s24, %s531_s24 }
  0x81   : > { %p3393_p10 = scmp.ne.s32.totalorder %s531_s24, %s3392_s0  ;;  %p3401_p0 = scmp.lt.s32.totalorder %s3392_s0, %s3392_s0 }
  0x83   : > { %p3395_p11 = pnand %p3393_p10, %p4075_p8  ;;  %p3402_p2 = por %p3401_p0, %p3400_p13 }
  0x85   : > { %p3396_p12 = pneg %p3395_p11 }
  0x87   : > { %p3403_p5 = pnand %p3402_p2, %p3396_p12 }
  0x89   : > { %3406 = shalt.err (!%p3403_p5)
}
  0x8a   : > { %3094 = dma.hbm_to_vmem [thread:$0]  (!%p4059_p6), %s4858_s7, 256, %s531_s24, [#allocation20], %s3892_s26, %s3892_s26, %s3893_s28  }
  0x8b   : > { %s3407_s30 = scalar_lea.hbm %s4860_s9, 256 }
  0x8c   : > { %p3408_p7 = scmp.ne.s32.totalorder %s4860_s9, %s3407_s30  ;;  %p3414_p1 = scmp.lt.u32.totalorder %s3407_s30, %s4860_s9 }
  0x8e   : > { %p3410_p9 = pnand %p3408_p7, %p4075_p8 }
  0x90   : > { %p3411_p4 = pneg %p3410_p9 }
  0x92   : > { %p3416_p3 = pnand %p3414_p1, %p3411_p4 }
  0x94   : > { %3419 = shalt.err (!%p3416_p3)
}
  0x95   : > { %s3420_s21 = scalar_lea.vmem %s555_s23, 256  ;;  %p3428_p13 = scmp.lt.s32.totalorder %s555_s23, %s555_s23 }
  0x96   : > { %p3421_p10 = scmp.ne.s32.totalorder %s555_s23, %s3420_s21  ;;  %p3429_p0 = scmp.lt.s32.totalorder %s3420_s21, %s3420_s21 }
  0x98   : > { %p3423_p11 = pnand %p3421_p10, %p4075_p8  ;;  %p3430_p2 = por %p3429_p0, %p3428_p13 }
  0x9a   : > { %p3424_p12 = pneg %p3423_p11 }
  0x9c   : > { %p3431_p5 = pnand %p3430_p2, %p3424_p12 }
  0x9e   : > { %3434 = shalt.err (!%p3431_p5)
}
  0x9f   : > { %3100 = dma.hbm_to_vmem [thread:$0]  (!%p4059_p6), %s4860_s9, 256, %s555_s23, [#allocation23], %s3892_s26, %s3892_s26, %s3893_s28  }
  0xa0   : > { %s3896_s3 = smov [#allocation25]   ;;  %s3897_s19 = smov [#allocation28]  }
  0xa1   : > { %s579_s29 = sshll.u32 %s3896_s3, 4  ;;  %s600_s18 = sshll.u32 %s3897_s19, 4  ;;  %s580_s29 = int_to_ptr.vmem [resolvable:$true] %s579_s29  ;;  %s601_s18 = int_to_ptr.vmem [resolvable:$true] %s600_s18 }
  0xa2   : > { %s3435_s25 = scalar_lea.hbm %s4862_s11, 16 }
  0xa3   : > { %p3436_p7 = scmp.ne.s32.totalorder %s4862_s11, %s3435_s25  ;;  %p3442_p1 = scmp.lt.u32.totalorder %s3435_s25, %s4862_s11 }
  0xa5   : > { %p3438_p9 = pnand %p3436_p7, %p4075_p8 }
  0xa7   : > { %p3439_p4 = pneg %p3438_p9 }
  0xa9   : > { %p3444_p3 = pnand %p3442_p1, %p3439_p4 }
  0xab   : > { %3447 = shalt.err (!%p3444_p3)
}
  0xac   : > { %s3448_s23 = scalar_lea.vmem %s580_s29, 16  ;;  %s3455_s0 = scalar_lea.vmem %s580_s29, 32 }
  0xad   : > { %p3449_p10 = scmp.ne.s32.totalorder %s580_s29, %s3448_s23  ;;  %p3456_p13 = scmp.lt.s32.totalorder %s580_s29, %s580_s29 }
  0xae   : > { %p3457_p0 = scmp.lt.s32.totalorder %s3455_s0, %s3448_s23 }
  0xaf   : > { %p3451_p11 = pnand %p3449_p10, %p4075_p8 }
  0xb0   : > { %p3458_p2 = por %p3457_p0, %p3456_p13 }
  0xb1   : > { %p3452_p12 = pneg %p3451_p11 }
  0xb3   : > { %p3459_p5 = pnand %p3458_p2, %p3452_p12 }
  0xb5   : > { %3462 = shalt.err (!%p3459_p5)
}
  0xb6   : > { %3106 = dma.hbm_to_vmem [thread:$0]  (!%p4059_p6), %s4862_s11, 16, %s580_s29, [#allocation26]  }
  0xb7   : > { %s3463_s25 = scalar_lea.hbm %s4864_s13, 256 }
  0xb8   : > { %p3464_p7 = scmp.ne.s32.totalorder %s4864_s13, %s3463_s25  ;;  %p3470_p1 = scmp.lt.u32.totalorder %s3463_s25, %s4864_s13 }
  0xba   : > { %p3466_p9 = pnand %p3464_p7, %p4075_p8 }
  0xbc   : > { %p3467_p4 = pneg %p3466_p9 }
  0xbe   : > { %p3472_p3 = pnand %p3470_p1, %p3467_p4 }
  0xc0   : > { %3475 = shalt.err (!%p3472_p3)
}
  0xc1   : > { %s3476_s23 = scalar_lea.vmem %s601_s18, 256  ;;  %p3484_p13 = scmp.lt.s32.totalorder %s601_s18, %s601_s18 }
  0xc2   : > { %p3477_p10 = scmp.ne.s32.totalorder %s601_s18, %s3476_s23  ;;  %p3485_p0 = scmp.lt.s32.totalorder %s3476_s23, %s3476_s23 }
  0xc4   : > { %p3479_p11 = pnand %p3477_p10, %p4075_p8  ;;  %p3486_p2 = por %p3485_p0, %p3484_p13 }
  0xc6   : > { %p3480_p12 = pneg %p3479_p11 }
  0xc8   : > { %p3487_p5 = pnand %p3486_p2, %p3480_p12 }
  0xca   : > { %3490 = shalt.err (!%p3487_p5)
}
  0xcb   : > { %3112 = dma.hbm_to_vmem [thread:$0]  (!%p4059_p6), %s4864_s13, 256, %s601_s18, [#allocation29], %s3892_s26, %s3892_s26, %s3893_s28  }
  0xcc   : > { %s3898_s3 = smov [#allocation31]   ;;  %s3899_s30 = smov [#allocation12]  }
  0xcd   : > { %s624_s19 = sshll.u32 %s3898_s3, 4  ;;  %s472_s17 = sshll.u32 %s3899_s30, 4  ;;  %s625_s19 = int_to_ptr.vmem [resolvable:$true] %s624_s19  ;;  %s473_s17 = int_to_ptr.vmem [resolvable:$true] %s472_s17 }
  0xce   : > { %s3491_s27 = scalar_lea.hbm %s4866_s15, 1024 }
  0xcf   : > { %p3492_p7 = scmp.ne.s32.totalorder %s4866_s15, %s3491_s27  ;;  %p3498_p1 = scmp.lt.u32.totalorder %s3491_s27, %s4866_s15 }
  0xd1   : > { %p3494_p9 = pnand %p3492_p7, %p4075_p8 }
  0xd3   : > { %p3495_p4 = pneg %p3494_p9 }
  0xd5   : > { %p3500_p3 = pnand %p3498_p1, %p3495_p4 }
  0xd7   : > { %3503 = shalt.err (!%p3500_p3)
}
  0xd8   : > { %s3504_s18 = scalar_lea.vmem %s625_s19, 1024  ;;  %p3512_p13 = scmp.lt.s32.totalorder %s625_s19, %s625_s19 }
  0xd9   : > { %p3505_p10 = scmp.ne.s32.totalorder %s625_s19, %s3504_s18  ;;  %p3513_p0 = scmp.lt.s32.totalorder %s3504_s18, %s3504_s18 }
  0xdb   : > { %p3507_p11 = pnand %p3505_p10, %p4075_p8  ;;  %p3514_p2 = por %p3513_p0, %p3512_p13 }
  0xdd   : > { %p3508_p12 = pneg %p3507_p11 }
  0xdf   : > { %p3515_p5 = pnand %p3514_p2, %p3508_p12 }
  0xe1   : > { %3518 = shalt.err (!%p3515_p5)
}
  0xe2   : > { %3118 = dma.hbm_to_vmem [thread:$0]  (!%p4059_p6), %s4866_s15, 1024, %s625_s19, [#allocation32], %s3892_s26, %s3892_s26, %s3893_s28  }
  0xe3   : > { %s4909_s2 = sld [smem:[#allocation55_spill]] }
  0xe9   : > { %s3519_s1 = scalar_lea.hbm %s4909_s2, 16 }
  0xea   : > { %p3520_p7 = scmp.ne.s32.totalorder %s4909_s2, %s3519_s1  ;;  %p3526_p1 = scmp.lt.u32.totalorder %s3519_s1, %s4909_s2 }
  0xec   : > { %p3522_p9 = pnand %p3520_p7, %p4075_p8 }
  0xee   : > { %p3523_p4 = pneg %p3522_p9 }
  0xf0   : > { %p3528_p3 = pnand %p3526_p1, %p3523_p4 }
  0xf2   : > { %3531 = shalt.err (!%p3528_p3)
}
  0xf3   : > { %s3532_s29 = scalar_lea.vmem %s473_s17, 16  ;;  %s3539_s26 = scalar_lea.vmem %s473_s17, 32 }
  0xf4   : > { %p3533_p10 = scmp.ne.s32.totalorder %s473_s17, %s3532_s29  ;;  %p3540_p13 = scmp.lt.s32.totalorder %s473_s17, %s473_s17 }
  0xf5   : > { %p3541_p0 = scmp.lt.s32.totalorder %s3539_s26, %s3532_s29 }
  0xf6   : > { %p3535_p11 = pnand %p3533_p10, %p4075_p8 }
  0xf7   : > { %p3542_p2 = por %p3541_p0, %p3540_p13 }
  0xf8   : > { %p3536_p12 = pneg %p3535_p11 }
  0xfa   : > { %p3543_p5 = pnand %p3542_p2, %p3536_p12 }
  0xfc   : > { %3546 = shalt.err (!%p3543_p5)
}
  0xfd   : > { %3079 = dma.hbm_to_vmem [thread:$0]  (!%p4059_p6), %s4909_s2, 16, %s473_s17, [#allocation11]  }
  0xfe   : > { %s3900_s18 = smov [#allocation15]   ;;  %s3901_s3 = smov [#allocation18]  }
  0xff   : > { %s496_s0 = sshll.u32 %s3900_s18, 4  ;;  %s520_s30 = sshll.u32 %s3901_s3, 4  ;;  %s497_s0 = int_to_ptr.vmem [resolvable:$true] %s496_s0  ;;  %s521_s30 = int_to_ptr.vmem [resolvable:$true] %s520_s30 }
 0x100   : > { %s4910_s4 = sld [smem:[#allocation57_spill]] }
 0x106   : > { %s3547_s27 = scalar_lea.hbm %s4910_s4, 16 }
 0x107   : > { %p3548_p7 = scmp.ne.s32.totalorder %s4910_s4, %s3547_s27  ;;  %p3554_p1 = scmp.lt.u32.totalorder %s3547_s27, %s4910_s4 }
 0x109   : > { %p3550_p9 = pnand %p3548_p7, %p4075_p8 }
 0x10b   : > { %p3551_p4 = pneg %p3550_p9 }
 0x10d   : > { %p3556_p3 = pnand %p3554_p1, %p3551_p4 }
 0x10f   : > { %3559 = shalt.err (!%p3556_p3)
}
 0x110   : > { %s3560_s17 = scalar_lea.vmem %s497_s0, 16  ;;  %s3567_s26 = scalar_lea.vmem %s497_s0, 32 }
 0x111   : > { %p3561_p10 = scmp.ne.s32.totalorder %s497_s0, %s3560_s17  ;;  %p3568_p13 = scmp.lt.s32.totalorder %s497_s0, %s497_s0 }
 0x112   : > { %p3569_p0 = scmp.lt.s32.totalorder %s3567_s26, %s3560_s17 }
 0x113   : > { %p3563_p11 = pnand %p3561_p10, %p4075_p8 }
 0x114   : > { %p3570_p2 = por %p3569_p0, %p3568_p13 }
 0x115   : > { %p3564_p12 = pneg %p3563_p11 }
 0x117   : > { %p3571_p5 = pnand %p3570_p2, %p3564_p12 }
 0x119   : > { %3574 = shalt.err (!%p3571_p5)
}
 0x11a   : > { %3085 = dma.hbm_to_vmem [thread:$0]  (!%p4059_p6), %s4910_s4, 16, %s497_s0, [#allocation14]  }
 0x11b   : > { %s3575_s25 = scalar_lea.hbm %s4857_s6, 16 }
 0x11c   : > { %p3576_p7 = scmp.ne.s32.totalorder %s4857_s6, %s3575_s25  ;;  %p3582_p1 = scmp.lt.u32.totalorder %s3575_s25, %s4857_s6 }
 0x11e   : > { %p3578_p9 = pnand %p3576_p7, %p4075_p8 }
 0x120   : > { %p3579_p4 = pneg %p3578_p9 }
 0x122   : > { %p3584_p3 = pnand %p3582_p1, %p3579_p4 }
 0x124   : > { %3587 = shalt.err (!%p3584_p3)
}
 0x125   : > { %s3588_s23 = scalar_lea.vmem %s521_s30, 16  ;;  %s3595_s0 = scalar_lea.vmem %s521_s30, 32 }
 0x126   : > { %p3589_p10 = scmp.ne.s32.totalorder %s521_s30, %s3588_s23  ;;  %p3596_p13 = scmp.lt.s32.totalorder %s521_s30, %s521_s30 }
 0x127   : > { %p3597_p0 = scmp.lt.s32.totalorder %s3595_s0, %s3588_s23 }
 0x128   : > { %p3591_p11 = pnand %p3589_p10, %p4075_p8 }
 0x129   : > { %p3598_p2 = por %p3597_p0, %p3596_p13 }
 0x12a   : > { %p3592_p12 = pneg %p3591_p11 }
 0x12c   : > { %p3599_p5 = pnand %p3598_p2, %p3592_p12 }
 0x12e   : > { %3602 = shalt.err (!%p3599_p5)
}
 0x12f   : > { %3091 = dma.hbm_to_vmem [thread:$0]  (!%p4059_p6), %s4857_s6, 16, %s521_s30, [#allocation17]  }
 0x130   : > { %s3902_s26 = smov [#allocation21]   ;;  %s3903_s19 = smov [#allocation24]  }
 0x131   : > { %s544_s28 = sshll.u32 %s3902_s26, 4  ;;  %s568_s18 = sshll.u32 %s3903_s19, 4  ;;  %s545_s28 = int_to_ptr.vmem [resolvable:$true] %s544_s28  ;;  %s569_s18 = int_to_ptr.vmem [resolvable:$true] %s568_s18 }
 0x132   : > { %s3603_s1 = scalar_lea.hbm %s4859_s8, 16 }
 0x133   : > { %p3604_p7 = scmp.ne.s32.totalorder %s4859_s8, %s3603_s1  ;;  %p3610_p1 = scmp.lt.u32.totalorder %s3603_s1, %s4859_s8 }
 0x135   : > { %p3606_p9 = pnand %p3604_p7, %p4075_p8 }
 0x137   : > { %p3607_p4 = pneg %p3606_p9 }
 0x139   : > { %p3612_p3 = pnand %p3610_p1, %p3607_p4 }
 0x13b   : > { %3615 = shalt.err (!%p3612_p3)
}
 0x13c   : > { %s3616_s30 = scalar_lea.vmem %s545_s28, 16  ;;  %s3623_s0 = scalar_lea.vmem %s545_s28, 32 }
 0x13d   : > { %p3617_p10 = scmp.ne.s32.totalorder %s545_s28, %s3616_s30  ;;  %p3624_p13 = scmp.lt.s32.totalorder %s545_s28, %s545_s28 }
 0x13e   : > { %p3625_p0 = scmp.lt.s32.totalorder %s3623_s0, %s3616_s30 }
 0x13f   : > { %p3619_p11 = pnand %p3617_p10, %p4075_p8 }
 0x140   : > { %p3626_p2 = por %p3625_p0, %p3624_p13 }
 0x141   : > { %p3620_p12 = pneg %p3619_p11 }
 0x143   : > { %p3627_p5 = pnand %p3626_p2, %p3620_p12 }
 0x145   : > { %3630 = shalt.err (!%p3627_p5)
}
 0x146   : > { %3097 = dma.hbm_to_vmem [thread:$0]  (!%p4059_p6), %s4859_s8, 16, %s545_s28, [#allocation20]  }
 0x147   : > { %s3631_s3 = scalar_lea.hbm %s4861_s10, 16 }
 0x148   : > { %p3632_p7 = scmp.ne.s32.totalorder %s4861_s10, %s3631_s3  ;;  %p3638_p1 = scmp.lt.u32.totalorder %s3631_s3, %s4861_s10 }
 0x14a   : > { %p3634_p9 = pnand %p3632_p7, %p4075_p8 }
 0x14c   : > { %p3635_p4 = pneg %p3634_p9 }
 0x14e   : > { %p3640_p3 = pnand %p3638_p1, %p3635_p4 }
 0x150   : > { %3643 = shalt.err (!%p3640_p3)
}
 0x151   : > { %s3644_s24 = scalar_lea.vmem %s569_s18, 16  ;;  %s3651_s28 = scalar_lea.vmem %s569_s18, 32 }
 0x152   : > { %p3645_p10 = scmp.ne.s32.totalorder %s569_s18, %s3644_s24  ;;  %p3652_p13 = scmp.lt.s32.totalorder %s569_s18, %s569_s18 }
 0x153   : > { %p3653_p0 = scmp.lt.s32.totalorder %s3651_s28, %s3644_s24 }
 0x154   : > { %p3647_p11 = pnand %p3645_p10, %p4075_p8 }
 0x155   : > { %p3654_p2 = por %p3653_p0, %p3652_p13 }
 0x156   : > { %p3648_p12 = pneg %p3647_p11 }
 0x158   : > { %p3655_p5 = pnand %p3654_p2, %p3648_p12 }
 0x15a   : > { %3658 = shalt.err (!%p3655_p5)
}
 0x15b   : > { %3103 = dma.hbm_to_vmem [thread:$0]  (!%p4059_p6), %s4861_s10, 16, %s569_s18, [#allocation23]  }
 0x15c   : > { %s3904_s0 = smov [#allocation27]   ;;  %s3905_s17 = smov [#allocation30]  }
 0x15d   : > { %s590_s29 = sshll.u32 %s3904_s0, 4  ;;  %s614_s26 = sshll.u32 %s3905_s17, 4  ;;  %s591_s29 = int_to_ptr.vmem [resolvable:$true] %s590_s29  ;;  %s615_s26 = int_to_ptr.vmem [resolvable:$true] %s614_s26 }
 0x15e   : > { %s3659_s25 = scalar_lea.hbm %s4863_s12, 16 }
 0x15f   : > { %p3660_p7 = scmp.ne.s32.totalorder %s4863_s12, %s3659_s25  ;;  %p3666_p1 = scmp.lt.u32.totalorder %s3659_s25, %s4863_s12 }
 0x161   : > { %p3662_p9 = pnand %p3660_p7, %p4075_p8 }
 0x163   : > { %p3663_p4 = pneg %p3662_p9 }
 0x165   : > { %p3668_p3 = pnand %p3666_p1, %p3663_p4 }
 0x167   : > { %3671 = shalt.err (!%p3668_p3)
}
 0x168   : > { %s3672_s18 = scalar_lea.vmem %s591_s29, 16  ;;  %s3679_s28 = scalar_lea.vmem %s591_s29, 32 }
 0x169   : > { %p3673_p10 = scmp.ne.s32.totalorder %s591_s29, %s3672_s18  ;;  %p3680_p13 = scmp.lt.s32.totalorder %s591_s29, %s591_s29 }
 0x16a   : > { %p3681_p0 = scmp.lt.s32.totalorder %s3679_s28, %s3672_s18 }
 0x16b   : > { %p3675_p11 = pnand %p3673_p10, %p4075_p8 }
 0x16c   : > { %p3682_p2 = por %p3681_p0, %p3680_p13 }
 0x16d   : > { %p3676_p12 = pneg %p3675_p11 }
 0x16f   : > { %p3683_p5 = pnand %p3682_p2, %p3676_p12 }
 0x171   : > { %3686 = shalt.err (!%p3683_p5)
}
 0x172   : > { %3109 = dma.hbm_to_vmem [thread:$0]  (!%p4059_p6), %s4863_s12, 16, %s591_s29, [#allocation26]  }
 0x173   : > { %s3687_s19 = scalar_lea.hbm %s4865_s14, 16 }
 0x174   : > { %p3688_p7 = scmp.ne.s32.totalorder %s4865_s14, %s3687_s19  ;;  %p3694_p1 = scmp.lt.u32.totalorder %s3687_s19, %s4865_s14 }
 0x176   : > { %p3690_p9 = pnand %p3688_p7, %p4075_p8 }
 0x178   : > { %p3691_p4 = pneg %p3690_p9 }
 0x17a   : > { %p3696_p3 = pnand %p3694_p1, %p3691_p4 }
 0x17c   : > { %3699 = shalt.err (!%p3696_p3)
}
 0x17d   : > { %s3700_s21 = scalar_lea.vmem %s615_s26, 16  ;;  %s3707_s29 = scalar_lea.vmem %s615_s26, 32 }
 0x17e   : > { %p3701_p10 = scmp.ne.s32.totalorder %s615_s26, %s3700_s21  ;;  %p3708_p13 = scmp.lt.s32.totalorder %s615_s26, %s615_s26 }
 0x17f   : > { %p3709_p0 = scmp.lt.s32.totalorder %s3707_s29, %s3700_s21 }
 0x180   : > { %p3703_p11 = pnand %p3701_p10, %p4075_p8 }
 0x181   : > { %p3710_p2 = por %p3709_p0, %p3708_p13 }
 0x182   : > { %p3704_p12 = pneg %p3703_p11 }
 0x184   : > { %p3711_p5 = pnand %p3710_p2, %p3704_p12 }
 0x186   : > { %3714 = shalt.err (!%p3711_p5)
}
 0x187   : > { %3115 = dma.hbm_to_vmem [thread:$0]  (!%p4059_p6), %s4865_s14, 16, %s615_s26, [#allocation29]  }
 0x188   : > { %s3906_s28 = smov [#allocation33]   ;;  %s3715_s17 = scalar_lea.hbm %s4867_s16, 16 }
 0x189   : > { %s638_s23 = sshll.u32 %s3906_s28, 4  ;;  %p3716_p7 = scmp.ne.s32.totalorder %s4867_s16, %s3715_s17  ;;  %s639_s23 = int_to_ptr.vmem [resolvable:$true] %s638_s23 }
 0x18a   : > { %p3722_p1 = scmp.lt.u32.totalorder %s3715_s17, %s4867_s16 }
 0x18b   : > { %p3718_p9 = pnand %p3716_p7, %p4075_p8 }
 0x18d   : > { %p3719_p4 = pneg %p3718_p9 }
 0x18f   : > { %p3724_p3 = pnand %p3722_p1, %p3719_p4 }
 0x191   : > { %3727 = shalt.err (!%p3724_p3)
}
 0x192   : > { %s3728_s26 = scalar_lea.vmem %s639_s23, 16  ;;  %s3735_s27 = scalar_lea.vmem %s639_s23, 32 }
 0x193   : > { %p3729_p10 = scmp.ne.s32.totalorder %s639_s23, %s3728_s26  ;;  %p3736_p13 = scmp.lt.s32.totalorder %s639_s23, %s639_s23 }
 0x194   : > { %p3737_p0 = scmp.lt.s32.totalorder %s3735_s27, %s3728_s26 }
 0x195   : > { %p3731_p11 = pnand %p3729_p10, %p4075_p8 }
 0x196   : > { %p3738_p2 = por %p3737_p0, %p3736_p13 }
 0x197   : > { %p3732_p12 = pneg %p3731_p11 }
 0x199   : > { %p3739_p5 = pnand %p3738_p2, %p3732_p12 }
 0x19b   : > { %3742 = shalt.err (!%p3739_p5)
}
 0x19c   : > { %s4911_s24 = sld [smem:[#allocation50_spill]]  ;;  %s4912_s18 = sld [smem:[#allocation49_spill]] }
 0x19d   : > { %s4913_s28 = sld [smem:[#allocation47_spill]]  ;;  %s4914_s30 = sld [smem:[#allocation46_spill]] }
 0x19e   : > { %s4915_s20 = sld [smem:[#allocation45_spill]]  ;;  %s4916_s0 = sld [smem:[#allocation51_spill]] }
 0x19f   : > { %3121 = dma.hbm_to_vmem [thread:$0]  (!%p4059_p6), %s4867_s16, 16, %s639_s23, [#allocation32]  }
 0x1a2   : > { %s2764_s17 = sadd.s32 4294967294, %s4911_s24   ;;  %s53_s19 = sadd.s32 1, %s4912_s18 }
 0x1a3   : > { %p55_p8 = scmp.ge.s32.totalorder %s53_s19, 2  ;;  %s60_s22 = sadd.s32 1, %s4913_s28 }
 0x1a4   : > { %p67_p7 = scmp.ne.s32.totalorder %s4913_s28, %s4914_s30  ;;  %p68_p9 = scmp.eq.s32.totalorder %s4911_s24, 0 }
 0x1a5   : > { %s4945_s19 = smov (%p55_p8, %s53_s19), 0  ;;  %p73_p1 = scmp.ne.s32.totalorder %s4914_s30, %s4915_s20 }
 0x1a6   : > { %p4393_p4 = por %p68_p9, %p67_p7  ;;  %s57_s23 = ssub.s32 %s4912_s18, %s4945_s19 }
 0x1a7   : > { %s4918_s25 = sadd.s32 4294967295, %s4911_s24   ;;  %p58_p3 = scmp.eq.s32.totalorder %s57_s23, 0 }
 0x1a8   : > { %p435_p6 = scmp.eq.s32.totalorder %s4918_s25, 1  ;;  %p4919_p10 = scmp.ne.s32.totalorder %s4916_s0, 0 }
 0x1a9   : > { %p441_p13 = scmp.eq.s32.totalorder %s2764_s17, 1  ;;  %p3146_p2 = scmp.lt.s32.totalorder %s4911_s24, 2 }
 0x1aa   : > { %p4405_p11 = por %p4919_p10, %p73_p1  ;;  %p4409_p12 = por %p435_p6, %p67_p7 }
 0x1ab   : > { %s4414_s27 = scalar_select %p58_p3, %s4913_s28, %s60_s22  }
 0x1ac   : > { %s4921_s26 = scalar_select %p4409_p12, 1, 0 }
 0x1ad   : > { %p4416_p0 = por %p441_p13, %p73_p1  ;;  %s649_s29 = sand.u32 1, %s4913_s28  }
 0x1ae   : > { %s2784_s30 = sshll.u32 %s4912_s18, 7  ;;  %s2783_s20 = sshll.u32 %s649_s29, 3 }
 0x1af   : > { %s4922_s21 = scalar_select %p4416_p0, 1, 0 }
 0x1b0   : > { %s4923_s25 = sld [smem:[#allocation53_spill]]  ;;  %s653_s17 = scalar_lea.vmem [#allocation7], %s2783_s20 }
 0x1b1   : > { %s660_s22 = sshll.u32 %s653_s17, 4  ;;  %p4430_p5 = pnand %p3146_p2, %p4393_p4  ;;  %s4434_s22 = int_to_ptr.vmem [resolvable:$true] %s660_s22 }
 0x1b2   : > { %s650_s24 = scalar_lea.sflag [#allocation8], %s649_s29 }
 0x1b3   : > { %p3745_p7 = pneg %p4430_p5 }
 0x1b6   : > { %s4924_s2 = smov %s4923_s25  ;;  %s4426_s4 = scalar_lea.hbm %s4923_s25, %s2784_s30 }
 0x1b7   : > { %s3743_s18 = scalar_lea.hbm %s4426_s4, 128  ;;  %s3748_s3 = scalar_lea.hbm %s4924_s2, 256 }
 0x1b8   : > { %p3744_p8 = scmp.ne.s32.totalorder %s4426_s4, %s3743_s18  ;;  %p3749_p4 = scmp.lt.u32.totalorder %s4426_s4, %s4924_s2 }
 0x1b9   : > { %p3750_p6 = scmp.lt.u32.totalorder %s3748_s3, %s3743_s18  ;;  %p3752_p10 = scmp.lt.u32.totalorder %s3743_s18, %s4426_s4 }
 0x1ba   : > { %p3746_p9 = pnand %p3745_p7, %p3744_p8 }
 0x1bb   : > { %p3751_p3 = por %p3750_p6, %p3749_p4 }
 0x1bc   : > { %p3747_p1 = pneg %p3746_p9 }
 0x1bd   : > { %p3753_p13 = por %p3752_p10, %p3751_p3 }
 0x1bf   : > { %p3754_p2 = pnand %p3753_p13, %p3747_p1 }
 0x1c1   : > { %3757 = shalt.err (!%p3754_p2)
}
 0x1c2   : > { %s3758_s29 = scalar_lea.vmem %s4434_s22, 128  ;;  %s3907_s23 = smov [#allocation7]  }
 0x1c3   : > { %p3759_p8 = scmp.ne.s32.totalorder %s4434_s22, %s3758_s29  ;;  %s3763_s25 = sshll.u32 %s3907_s23, 4  ;;  %s3764_s25 = int_to_ptr.vmem [resolvable:$false] %s3763_s25 }
 0x1c4   : > { %s3765_s17 = scalar_lea.vmem %s3764_s25, 256  ;;  %p3766_p12 = scmp.lt.s32.totalorder %s4434_s22, %s3764_s25 }
 0x1c5   : > { %p3761_p9 = pnand %p3759_p8, %p3745_p7  ;;  %p3767_p4 = scmp.lt.s32.totalorder %s3765_s17, %s3758_s29 }
 0x1c7   : > { %p3762_p0 = pneg %p3761_p9  ;;  %p3768_p6 = por %p3767_p4, %p3766_p12 }
 0x1c9   : > { %p3769_p3 = pnand %p3768_p6, %p3762_p0 }
 0x1cb   : > { %3772 = shalt.err (!%p3769_p3)
}
 0x1cc   : > { %3125 = dma.hbm_to_vmem [thread:$0]  (!%p4430_p5), %s4426_s4, 128, %s4434_s22, %s650_s24  }
 0x1cd   : > { %s4926_s18 = sld [smem:[#allocation52_spill]] }
 0x1d3   : > { %p4927_p1 = scmp.ne.s32.totalorder %s4926_s18, 0 }
 0x1d4   : > { %s4928_s28 = sld [smem:[#allocation46_spill]] (!%p4927_p1) }
 0x1d5   : > { %669 = sbr.rel (%p4927_p1) target bundleno = 3129 (0xc39), region = 88 }
 0x1da   : > { %s4464_s30 = sand.u32 (!%p4927_p1), 1, %s4928_s28  }
 0x1db   : > { %s2786_s3 = sshll.u32 (!%p4927_p1), %s4464_s30, 3  ;;  %s672_s20 = scalar_lea.sflag (!%p4927_p1), [#allocation8], %s4464_s30 }
 0x1dc   : > { %s4470_s0 = scalar_lea.vmem [#allocation7], %s2786_s3 }
 0x1dd   : > { %3826 = dma.done.wait (%p4405_p11), %s672_s20, 128  }
 0x1de   : > { %3828 = vsyncadd (%p4405_p11), %s672_s20, 4294967168  ;;  %s4929_s4 = sld [smem:[#allocation51_spill]] }
 0x1e4   : > { %p4930_p12 = scmp.ne.s32.totalorder %s4929_s4, 0 }
 0x1e6   : > { %3830 = dma.done.wait (%p4930_p12), [#allocation11], 32  }
 0x1e7   : > { %3832 = vsyncadd (%p4930_p12), [#allocation11], 4294967264 }
 0x1e8   : > { %3834 = dma.done.wait (%p4930_p12), [#allocation14], 272  }
 0x1e9   : > { %3836 = vsyncadd (%p4930_p12), [#allocation14], 4294967024 }
 0x1ea   : > { %3838 = dma.done.wait (%p4930_p12), [#allocation17], 272  }
 0x1eb   : > { %3840 = vsyncadd (%p4930_p12), [#allocation17], 4294967024 }
 0x1ec   : > { %3842 = dma.done.wait (%p4930_p12), [#allocation20], 272  }
 0x1ed   : > { %3844 = vsyncadd (%p4930_p12), [#allocation20], 4294967024 }
 0x1ee   : > { %3846 = dma.done.wait (%p4930_p12), [#allocation23], 272  }
 0x1ef   : > { %3848 = vsyncadd (%p4930_p12), [#allocation23], 4294967024 }
 0x1f0   : > { %3850 = dma.done.wait (%p4930_p12), [#allocation26], 32  }
 0x1f1   : > { %3852 = vsyncadd (%p4930_p12), [#allocation26], 4294967264 }
 0x1f2   : > { %3854 = dma.done.wait (%p4930_p12), [#allocation29], 272  }
 0x1f3   : > { %3856 = vsyncadd (%p4930_p12), [#allocation29], 4294967024 }
 0x1f4   : > { %3858 = dma.done.wait (%p4930_p12), [#allocation32], 1040  }
 0x1f5   : > { %3860 = vsyncadd (%p4930_p12), [#allocation32], 4294966256  ;;  %vm798_vm0 = vcmask 261120   ;;  %v797_v0 = vld [vmem:[%s4470_s0] sm:$0xff]  ;;  %v3908_v13 = vmov 0.0   ;;  %vm3909_vm1 = vmmov 0   ;;  %v814_v54 = vlaneseq }
 0x1f6   : > { %v799_v1 = vsel %vm798_vm0, %v797_v0, 0.0  ;;  %v3244_v12 = vld [vmem:[#allocation16] sm:$0xff]   ;;  %2897 = vmatprep.subr.bf16.mxu0 %v3908_v13  ;;  %2921 = vmatprep.subr.bf16.mxu1 %v3908_v13  ;;  %v3245_v14 = vld [vmem:[#allocation16 + $0x8] sm:$0xff]   ;;  %v3246_v27 = vld [vmem:[#allocation19] sm:$0xff]   ;;  %s3910_s5 = smov 112   ;;  %s3911_s1 = smov 120  }
 0x1f7   : > { %800 = vadd.xlane.f32.xlu0 %v799_v1  ;;  %2898 = vmatpush3.bf16.msra.mxu0 %v3244_v12  ;;  %v2855_v22 = vld [vmem:[#allocation10] ss:$0 sm:$0xff]  ;;  %v2856_v24 = vld [vmem:[#allocation12] ss:$0 sm:$0xff]  ;;  %v3247_v30 = vld [vmem:[#allocation19 + $0x8] sm:$0xff]   ;;  %s3912_s22 = smov 104  }
 0x1f8   : > { %2899 = vmatprep.subr.bf16.mxu0 %v3908_v13  ;;  %2901 = vmatprep.mubr.msk.bf16.mxu0 %vm3909_vm1, %v3908_v13  ;;  %v3248_v32 = vld [vmem:[#allocation13] sm:$0xff]   ;;  %v3249_v34 = vld [vmem:[#allocation13 + $0x8] sm:$0xff]   ;;  %v2816_v47 = vld [vmem:[#allocation15] ss:$0 sm:$0xff]  ;;  %vm1525_vm2 = vcmask 64512   ;;  %v815_v59 = vshrl.u32 %v814_v54, 7 }
 0x1f9   : > { %2923 = vmatprep.mubr.msk.bf16.mxu1 %vm3909_vm1, %v3908_v13  ;;  %v2804_v37 = vld [vmem:[#allocation18] ss:$0 sm:$0xff]  ;;  %1526 = vst.msk [vmem:[#allocation6] sm:$0xff] %vm1525_vm2, %v3908_v13  ;;  %1527 = vst.msk [vmem:[#allocation6 + $0x8] sm:$0xff] %vm1525_vm2, %v3908_v13  ;;  %v3913_v55 = vmov 1983009808  }
 0x1fa   : > { %1528 = vst.msk [vmem:[#allocation6 + $0x10] sm:$0xff] %vm1525_vm2, %v3908_v13  ;;  %1529 = vst.msk [vmem:[#allocation6 + $0x18] sm:$0xff] %vm1525_vm2, %v3908_v13  ;;  %v970_v56 = vunpack.c.l.s4 %v3913_v55  ;;  %v3914_v57 = vmov 1934713408   ;;  %vm1107_vm3 = vcmask 60416   ;;  %vm1516_vm4 = vcmask 7168  }
 0x1fb   : > { %1271 = vadd.xlane.f32.xlu0 %v799_v1  ;;  %2900 = vmatpush3.bf16.msra.mxu0 %v3245_v14  ;;  %v1002_v58 = vunpack.c.l.s4 %v3914_v57  ;;  %1521 = vst.msk [vmem:[#allocation5] sm:$0xff] %vm1516_vm4, %v3908_v13  ;;  %1522 = vst.msk [vmem:[#allocation5 + $0x8] sm:$0xff] %vm1516_vm4, %v3908_v13  ;;  %vm1821_vm5 = vcmask 1043456   ;;  %s3917_s24 = smov 16   ;;  %s3918_s29 = smov 8   ;;  %vm2228_vm6 = vcmask 130048  }
 0x1fc   : > { %2905 = vmatprep.subr.bf16.mxu0 %v3908_v13  ;;  %v971_v60 = vunpack.c.0.s8 %v970_v56  ;;  %1523 = vst.msk [vmem:[#allocation5 + $0x10] sm:$0xff] %vm1516_vm4, %v3908_v13  ;;  %1524 = vst.msk [vmem:[#allocation5 + $0x18] sm:$0xff] %vm1516_vm4, %v3908_v13  ;;  %s3919_s23 = smov 24   ;;  %vm2230_vm7 = vcmask 195584   ;;  %s4931_s25 = sld [smem:[#allocation48_spill]] }
 0x1fd   : > { %v1003_v62 = vunpack.c.0.s8 %v1002_v58  ;;  %s789_s18 = scalar_lea.vmem [#allocation34], %s2786_s3  ;;  %s4932_s4 = sld [smem:[#allocation59_spill]] }
 0x1fe   : > { %v4554_v63 = vsub.s32 %v971_v60, %v815_v59  ;;  %s2530_s28 = sshll.u32 %s789_s18, 4  ;;  %s2516_s3 = scalar_lea.sflag [#allocation9], %s4464_s30  ;;  %s4803_s28 = int_to_ptr.vmem [resolvable:$true] %s2530_s28 }
 0x1ff   : > { %p4933_p0 = scmp.ne.s32.totalorder %s4921_s26, 0 }
 0x202   : > { %s2852_s17 = sshll.u32 %s4931_s25, 7 }
 0x284   : > { %v801_v2 = vpop.xlane.xlu0 %800 }
 0x285   : > { %v803_v3 = vmul.f32 0.03125, %v801_v2 }
 0x287   : > { %v804_v4 = vsub.f32 %v797_v0, %v803_v3 }
 0x288   : > { %v1272_v5 = vpop.xlane.xlu0 %1271 }
 0x289   : > { %v1274_v6 = vmul.f32 0.03125, %v1272_v5  ;;  %v805_v7 = vmul.f32 %v804_v4, %v804_v4 }
 0x28b   : > { %v1275_v8 = vsub.f32 %v797_v0, %v1274_v6  ;;  %v806_v9 = vsel %vm798_vm0, %v805_v7, 0.0  ;;  %v4556_v6 = vsub.s32 %v1003_v62, %v815_v59 }
 0x28c   : > { %807 = vadd.xlane.f32.xlu1 %v806_v9 }
 0x28d   : > { %v1276_v10 = vmul.f32 %v1275_v8, %v1275_v8 }
 0x28f   : > { %v1277_v11 = vsel %vm798_vm0, %v1276_v10, 0.0 }
 0x290   : > { %1278 = vadd.xlane.f32.xlu1 %v1277_v11 }
 0x319   : > { %v808_v15 = vpop.xlane.xlu1 %807 }
 0x31a   : > { %v809_v16 = vmul.f32 0.03125, %v808_v15 }
 0x31c   : > { %v810_v17 = vadd.f32 1e-05, %v809_v16 }
 0x31d   : > { %v1279_v18 = vpop.xlane.xlu1 %1278 }
 0x31e   : > { %3262 = vrsqrt.f32 %v810_v17  ;;  %v1280_v19 = vmul.f32 0.03125, %v1279_v18 }
 0x320   : > { %v1281_v20 = vadd.f32 1e-05, %v1280_v19 }
 0x322   : > { %3264 = vrsqrt.f32 %v1281_v20 }
 0x328   : > { %v3263_v21 = vpop.eup %3262 }
 0x329   : > { %v812_v23 = vmul.f32 %v3263_v21, %v804_v4 }
 0x32b   : > { %v819_v25 = vmul.f32 %v2855_v22, %v812_v23 }
 0x32c   : > { %v3265_v29 = vpop.eup %3264 }
 0x32d   : > { %v826_v26 = vadd.f32 %v2856_v24, %v819_v25  ;;  %v1283_v31 = vmul.f32 %v3265_v29, %v1275_v8 }
 0x32f   : > { %v827_v28 = vpack.c.bf16 %v826_v26, %v826_v26  ;;  %v1290_v33 = vmul.f32 %v2855_v22, %v1283_v31 }
 0x331   : > { %2902 = vmatmul.mubr.msk.bf16.vlgmr.msra.gmra.mrb[0].mxu0 %vm798_vm0, %v827_v28  ;;  %v1297_v35 = vadd.f32 %v2856_v24, %v1290_v33 }
 0x332   : > { %2906 = vmatpush3.bf16.msra.mxu0 %v3246_v27  ;;  %2909 = vmatprep.mubr.msk.bf16.mxu0 %vm3909_vm1, %v3908_v13 }
 0x333   : > { %2907 = vmatprep.subr.bf16.mxu0 %v3908_v13  ;;  %v1298_v36 = vpack.c.bf16 %v1297_v35, %v1297_v35 }
 0x336   : > { %2908 = vmatpush3.bf16.msra.mxu0 %v3247_v30 }
 0x337   : > { %2913 = vmatprep.subr.bf16.mxu0 %v3908_v13 }
 0x339   : > { %2910 = vmatmul.mubr.msk.bf16.vlgmr.msra.gmra.mrb[4].mxu0 %vm798_vm0, %v827_v28 }
 0x33a   : > { %2914 = vmatpush3.bf16.msra.mxu0 %v3248_v32  ;;  %2917 = vmatprep.mubr.msk.bf16.mxu0 %vm3909_vm1, %v3908_v13 }
 0x33b   : > { %2915 = vmatprep.subr.bf16.mxu0 %v3908_v13 }
 0x33e   : > { %2916 = vmatpush3.bf16.msra.mxu0 %v3249_v34 }
 0x33f   : > { %2927 = vmatprep.subr.bf16.mxu0 %v3908_v13 }
 0x341   : > { %2918 = vmatmul.mubr.msk.bf16.vlgmr.msra.gmra.mrb[8].mxu0 %vm798_vm0, %v1298_v36 }
 0x342   : > { %2929 = vmatprep.mubr.msk.bf16.mxu0 %vm3909_vm1, %v3908_v13 }
 0x404   : > { %v888_v38 = vpop.f32.mrb[0].mxu0 }
 0x405   : > { %v889_v39 = vadd.f32 %v2804_v37, %v888_v38  ;;  %v2903_v40 = vpop.f32.mrb[1].mxu0 }
 0x406   : > { %v891_v41 = vpop.f32.mrb[2].mxu0 }
 0x407   : > { %961 = vrot.lane.b32.xlu1 %v889_v39, %s3910_s5  ;;  %958 = vrot.lane.b32.xlu0 %v889_v39, %s3911_s1  ;;  %v2904_v42 = vpop.f32.mrb[3].mxu0 }
 0x40b   : > { %964 = vrot.lane.b32.xlu1 %v889_v39, %s3912_s22 }
 0x40c   : > { %v4536_v43 = vpop.f32.mrb[4].mxu0 }
 0x40d   : > { %v2911_v44 = vpop.f32.mrb[5].mxu0 }
 0x40e   : > { %v954_v45 = vpop.f32.mrb[6].mxu0 }
 0x40f   : > { %v2912_v46 = vpop.f32.mrb[7].mxu0 }
 0x414   : > { %v1359_v48 = vpop.f32.mrb[8].mxu0 }
 0x415   : > { %v1360_v49 = vadd.f32 %v2816_v47, %v1359_v48  ;;  %v2919_v50 = vpop.f32.mrb[9].mxu0 }
 0x416   : > { %v1362_v51 = vpop.f32.mrb[10].mxu0 }
 0x417   : > { %v4538_v52 = vmul.f32 0.35355338, %v1360_v49  ;;  %v2920_v53 = vpop.f32.mrb[11].mxu0 }
 0x419   : > { %1370 = vrot.lane.b32.xlu0 %v4538_v52, %s3910_s5  ;;  %1367 = vrot.lane.b32.xlu1 %v4538_v52, %s3911_s1 }
 0x41d   : > { %1373 = vrot.lane.b32.xlu1 %v4538_v52, %s3912_s22 }
 0x479   : > { %v962_v61 = vpop.permute.xlu1 %961  ;;  %v959_v2 = vpop.permute.xlu0 %958 }
 0x47a   : > { %v967_v0 = vcombine.low %v889_v39, %v962_v61  ;;  %v968_v1 = vcombine.high %v889_v39, %v962_v61 }
 0x47c   : > { %v975_v7 = vrot.slane %v967_v0, %v4554_v63  ;;  %v982_v8 = vrot.slane %v968_v1, %v4554_v63 }
 0x47d   : > { %v965_v3 = vpop.permute.xlu1 %964 }
 0x47e   : > { %v983_v4 = vcombine.low %v959_v2, %v965_v3  ;;  %v984_v5 = vcombine.high %v959_v2, %v965_v3 }
 0x480   : > { %v991_v9 = vrot.slane %v983_v4, %v4554_v63  ;;  %v998_v10 = vrot.slane %v984_v5, %v4554_v63 }
 0x482   : > { %v999_v11 = vcombine.low %v975_v7, %v991_v9  ;;  %v1000_v12 = vcombine.high %v975_v7, %v991_v9  ;;  %v1015_v14 = vcombine.low %v982_v8, %v998_v10  ;;  %v1016_v15 = vcombine.high %v982_v8, %v998_v10 }
 0x484   : > { %v1007_v16 = vrot.slane %v999_v11, %v4556_v6  ;;  %v1014_v17 = vrot.slane %v1000_v12, %v4556_v6  ;;  %v1023_v18 = vrot.slane %v1015_v14, %v4556_v6  ;;  %v1030_v19 = vrot.slane %v1016_v15, %v4556_v6 }
 0x486   : > { %v1035_v20 = vcombine.low %v1007_v16, %v1014_v17  ;;  %v2812_v21 = vcombine.high %v1007_v16, %v1014_v17  ;;  %v1051_v22 = vcombine.low %v1023_v18, %v1030_v19  ;;  %v2813_v23 = vcombine.high %v1023_v18, %v1030_v19 }
 0x488   : > { %v1042_v24 = vrot.slane %v1035_v20, %v4554_v63  ;;  %v1050_v25 = vrot.slane %v2812_v21, %v4554_v63  ;;  %v1058_v26 = vrot.slane %v1051_v22, %v4554_v63  ;;  %v1066_v27 = vrot.slane %v2813_v23, %v4554_v63 }
 0x48a   : > { %v1067_v28 = vcombine.low %v1042_v24, %v1050_v25  ;;  %v1068_v29 = vcombine.high %v1042_v24, %v1050_v25  ;;  %v1083_v30 = vcombine.low %v1058_v26, %v1066_v27  ;;  %v1084_v31 = vcombine.high %v1058_v26, %v1066_v27 }
 0x48b   : > { %v1368_v32 = vpop.permute.xlu1 %1367  ;;  %v1371_v37 = vpop.permute.xlu0 %1370 }
 0x48c   : > { %v1075_v33 = vrot.slane %v1067_v28, %v4556_v6  ;;  %v1082_v34 = vrot.slane %v1068_v29, %v4556_v6  ;;  %v1091_v35 = vrot.slane %v1083_v30, %v4556_v6  ;;  %v1098_v36 = vrot.slane %v1084_v31, %v4556_v6 }
 0x48d   : > { %v1376_v42 = vcombine.low %v4538_v52, %v1371_v37  ;;  %v1377_v44 = vcombine.high %v4538_v52, %v1371_v37 }
 0x48e   : > { %v1099_v38 = vcombine.low %v1075_v33, %v1091_v35  ;;  %v1100_v39 = vcombine.high %v1075_v33, %v1091_v35  ;;  %v1101_v40 = vcombine.low %v1082_v34, %v1098_v36  ;;  %v1102_v41 = vcombine.high %v1082_v34, %v1098_v36 }
 0x48f   : > { %v1374_v45 = vpop.permute.xlu1 %1373  ;;  %v1384_v53 = vrot.slane %v1376_v42, %v4554_v63  ;;  %v1391_v54 = vrot.slane %v1377_v44, %v4554_v63  ;;  %v3915_v35 = vmov -inf  }
 0x490   : > { %v1103_v46 = vpack.c.bf16 %v1099_v38, %v1099_v38  ;;  %v1104_v47 = vpack.c.bf16 %v1100_v39, %v1100_v39  ;;  %v1105_v48 = vpack.c.bf16 %v1101_v40, %v1101_v40  ;;  %v1106_v49 = vpack.c.bf16 %v1102_v41, %v1102_v41  ;;  %1517 = vst.msk [vmem:[#allocation4] sm:$0xff] %vm1516_vm4, %v3915_v35 }
 0x491   : > { %v1392_v50 = vcombine.low %v1368_v32, %v1374_v45  ;;  %v1393_v51 = vcombine.high %v1368_v32, %v1374_v45  ;;  %1518 = vst.msk [vmem:[#allocation4 + $0x8] sm:$0xff] %vm1516_vm4, %v3915_v35  ;;  %1519 = vst.msk [vmem:[#allocation4 + $0x10] sm:$0xff] %vm1516_vm4, %v3915_v35 }
 0x492   : > { %1108 = vst.msk [vmem:[#allocation2] sm:$0xf] %vm1107_vm3, %v1103_v46  ;;  %1109 = vst.msk [vmem:[#allocation2 + $0x4] sm:$0xf] %vm1107_vm3, %v1104_v47 }
 0x493   : > { %1110 = vst.msk [vmem:[#allocation2 + $0x8] sm:$0xf] %vm1107_vm3, %v1105_v48  ;;  %1111 = vst.msk [vmem:[#allocation2 + $0xc] sm:$0xf] %vm1107_vm3, %v1106_v49  ;;  %v1400_v52 = vrot.slane %v1392_v50, %v4554_v63  ;;  %v1407_v55 = vrot.slane %v1393_v51, %v4554_v63 }
 0x494   : > { %1520 = vst.msk [vmem:[#allocation4 + $0x18] sm:$0xff] %vm1516_vm4, %v3915_v35 }
 0x495   : > { %v1408_v56 = vcombine.low %v1384_v53, %v1400_v52  ;;  %v1409_v57 = vcombine.high %v1384_v53, %v1400_v52  ;;  %v1424_v58 = vcombine.low %v1391_v54, %v1407_v55  ;;  %v1425_v59 = vcombine.high %v1391_v54, %v1407_v55 }
 0x497   : > { %v1416_v60 = vrot.slane %v1408_v56, %v4556_v6  ;;  %v1423_v61 = vrot.slane %v1409_v57, %v4556_v6  ;;  %v1432_v62 = vrot.slane %v1424_v58, %v4556_v6  ;;  %v1439_v0 = vrot.slane %v1425_v59, %v4556_v6  ;;  %v2808_v57 = vld [vmem:[#allocation21] ss:$0 sm:$0xff] }
 0x498   : > { %v952_v58 = vadd.f32 %v2808_v57, %v4536_v43  ;;  %v3916_v59 = vmov 0  }
 0x499   : > { %v1444_v1 = vcombine.low %v1416_v60, %v1423_v61  ;;  %v2820_v2 = vcombine.high %v1416_v60, %v1423_v61  ;;  %v1460_v3 = vcombine.low %v1432_v62, %v1439_v0  ;;  %v2821_v4 = vcombine.high %v1432_v62, %v1439_v0  ;;  %v1530_v5 = vld [vmem:[#allocation2] sm:$0xf]  ;;  %v1531_v7 = vld [vmem:[#allocation2 + $0x4] sm:$0xf]  ;;  %3243 = vset.pattern.permute.xlu0 %v3916_v59  ;;  %v4650_v61 = vld [vmem:[#allocation4 + $0x8] sm:$0xff] }
 0x49a   : > { %v1542_v8 = vsel %vm1525_vm2, %v1530_v5, 0  ;;  %v1588_v9 = vsel %vm1525_vm2, %v1531_v7, 0  ;;  %v1532_v23 = vld [vmem:[#allocation2 + $0x8] sm:$0xf]  ;;  %v1533_v24 = vld [vmem:[#allocation2 + $0xc] sm:$0xf]  ;;  %3242 = vset.pattern.permute.xlu1 %v3916_v59 }
 0x49b   : > { %v1451_v10 = vrot.slane %v1444_v1, %v4554_v63  ;;  %v1459_v11 = vrot.slane %v2820_v2, %v4554_v63  ;;  %v1467_v12 = vrot.slane %v1460_v3, %v4554_v63  ;;  %v1475_v14 = vrot.slane %v2821_v4, %v4554_v63  ;;  %2922 = vmatpush3.bf16.xpose.msra.mxu1 %v1542_v8  ;;  %v4648_v60 = vld [vmem:[#allocation4] sm:$0xff]  ;;  %v4668_v4 = vld [vmem:[#allocation4 + $0x10] sm:$0xff] }
 0x49c   : > { %2928 = vmatpush3.bf16.xpose.msra.mxu0 %v1588_v9  ;;  %2933 = vmatprep.subr.bf16.mxu1 %v3908_v13  ;;  %v1634_v29 = vsel %vm1525_vm2, %v1532_v23, 0  ;;  %v1680_v30 = vsel %vm1525_vm2, %v1533_v24, 0  ;;  %v4673_v9 = vld [vmem:[#allocation4 + $0x18] sm:$0xff] }
 0x49d   : > { %2939 = vmatprep.subr.bf16.mxu0 %v3908_v13  ;;  %v1476_v15 = vcombine.low %v1451_v10, %v1459_v11  ;;  %v1492_v16 = vcombine.low %v1467_v12, %v1475_v14  ;;  %v1477_v17 = vcombine.high %v1451_v10, %v1459_v11  ;;  %v1493_v18 = vcombine.high %v1467_v12, %v1475_v14 }
 0x49f   : > { %v1484_v19 = vrot.slane %v1476_v15, %v4556_v6  ;;  %v1500_v20 = vrot.slane %v1492_v16, %v4556_v6  ;;  %v1491_v27 = vrot.slane %v1477_v17, %v4556_v6  ;;  %v1507_v28 = vrot.slane %v1493_v18, %v4556_v6 }
 0x4a1   : > { %v1508_v21 = vcombine.low %v1484_v19, %v1500_v20  ;;  %v1509_v22 = vcombine.high %v1484_v19, %v1500_v20  ;;  %v1510_v31 = vcombine.low %v1491_v27, %v1507_v28  ;;  %v1511_v32 = vcombine.high %v1491_v27, %v1507_v28 }
 0x4a3   : > { %v1512_v25 = vpack.c.bf16 %v1508_v21, %v1508_v21  ;;  %v1513_v26 = vpack.c.bf16 %v1509_v22, %v1509_v22  ;;  %v1514_v33 = vpack.c.bf16 %v1510_v31, %v1510_v31  ;;  %v1515_v34 = vpack.c.bf16 %v1511_v32, %v1511_v32 }
 0x4a5   : > { %2924 = vmatmul.mubr.msk.bf16.vlgmr.msra.gmra.mrb[0].mxu1 %vm1525_vm2, %v1512_v25  ;;  %2930 = vmatmul.mubr.msk.bf16.vlgmr.msra.gmra.mrb[12].mxu0 %vm1525_vm2, %v1513_v26 }
 0x4a6   : > { %2934 = vmatpush3.bf16.xpose.msra.mxu1 %v1634_v29  ;;  %2940 = vmatpush3.bf16.xpose.msra.mxu0 %v1680_v30 }
 0x4a7   : > { %2935 = vmatprep.mubr.msk.bf16.mxu1 %vm3909_vm1, %v3908_v13  ;;  %2941 = vmatprep.mubr.msk.bf16.mxu0 %vm3909_vm1, %v3908_v13 }
 0x4a8   : > { %2945 = vmatprep.subr.bf16.mxu1 %v3908_v13  ;;  %2951 = vmatprep.subr.bf16.mxu0 %v3908_v13 }
 0x4ad   : > { %2936 = vmatmul.mubr.msk.bf16.vlgmr.msra.gmra.mrb[4].mxu1 %vm1525_vm2, %v1514_v33  ;;  %2942 = vmatmul.mubr.msk.bf16.vlgmr.msra.gmra.mrb[16].mxu0 %vm1525_vm2, %v1515_v34 }
 0x4ae   : > { %2947 = vmatprep.mubr.msk.bf16.mxu1 %vm3909_vm1, %v3908_v13  ;;  %2953 = vmatprep.mubr.msk.bf16.mxu0 %vm3909_vm1, %v3908_v13 }
 0x578   : > { %v4628_v36 = vpop.f32.mrb[0].mxu1  ;;  %v4630_v37 = vpop.f32.mrb[12].mxu0 }
 0x579   : > { %v2925_v38 = vpop.f32.mrb[1].mxu1  ;;  %v2931_v39 = vpop.f32.mrb[13].mxu0  ;;  %v1726_v40 = vsel %vm1525_vm2, %v4628_v36, -inf  ;;  %v1729_v41 = vsel %vm1525_vm2, %v4630_v37, -inf }
 0x57a   : > { %1727 = vmax.xlane.f32.xlu0 %v1726_v40  ;;  %v1581_v42 = vpop.f32.mrb[2].mxu1  ;;  %1730 = vmax.xlane.f32.xlu1 %v1729_v41  ;;  %v1627_v44 = vpop.f32.mrb[14].mxu0 }
 0x57b   : > { %v2926_v45 = vpop.f32.mrb[3].mxu1  ;;  %v2932_v46 = vpop.f32.mrb[15].mxu0 }
 0x580   : > { %v4636_v47 = vpop.f32.mrb[4].mxu1  ;;  %v4638_v48 = vpop.f32.mrb[16].mxu0 }
 0x581   : > { %v2937_v49 = vpop.f32.mrb[5].mxu1  ;;  %v2943_v50 = vpop.f32.mrb[17].mxu0  ;;  %v1732_v51 = vsel %vm1525_vm2, %v4636_v47, -inf  ;;  %v1735_v56 = vsel %vm1525_vm2, %v4638_v48, -inf }
 0x582   : > { %1733 = vmax.xlane.f32.xlu0 %v1732_v51  ;;  %v1673_v53 = vpop.f32.mrb[6].mxu1  ;;  %v1719_v54 = vpop.f32.mrb[18].mxu0 }
 0x583   : > { %v2938_v52 = vpop.f32.mrb[7].mxu1  ;;  %v2944_v55 = vpop.f32.mrb[19].mxu0 }
 0x586   : > { %1736 = vmax.xlane.f32.xlu0 %v1735_v56 }
 0x58b   : > { %1116 = vrot.lane.b32.xlu1 %v952_v58, %s3910_s5  ;;  %s4801_s5 = scalar_lea.hbm %s4932_s4, %s2852_s17 }
 0x58f   : > { %1119 = vrot.lane.b32.xlu1 %v952_v58, %s3912_s22  ;;  %s3920_s22 = smov [#allocation34]  }
 0x59c   : > { %1113 = vrot.lane.b32.xlu0 %v952_v58, %s3911_s1  ;;  %s3773_s1 = scalar_lea.vmem %s4803_s28, 128 }
 0x59d   : > { %p3774_p11 = scmp.ne.s32.totalorder %s4803_s28, %s3773_s1 }
 0x59f   : > { %p3775_p5 = pnand %p3774_p11, %p4933_p0 }
 0x5a1   : > { %p3776_p7 = pneg %p3775_p5 }
 0x607   : > { %v1728_v62 = vpop.xlane.xlu0 %1727  ;;  %v1731_v0 = vpop.xlane.xlu1 %1730 }
 0x608   : > { %v4653_v1 = vmax.f32 %v4648_v60, %v1728_v62  ;;  %v4656_v43 = vmax.f32 %v4650_v61, %v1731_v0 }
 0x60a   : > { %v1742_v2 = vsub.f32 %v4648_v60, %v4653_v1  ;;  %2039 = vst.msk [vmem:[#allocation4] sm:$0xff] %vm1516_vm4, %v4653_v1  ;;  %v1743_v3 = vsub.f32 %v4650_v61, %v4656_v43  ;;  %2040 = vst.msk [vmem:[#allocation4 + $0x8] sm:$0xff] %vm1516_vm4, %v4656_v43  ;;  %1756 = vperm.xlu1 %3242, %v4653_v1   ;;  %1761 = vperm.xlu0 %3243, %v4656_v43   ;;  %v1788_v60 = vld [vmem:[#allocation5 + $0x10] sm:$0xff] }
 0x60b   : > { %v1117_v8 = vpop.permute.xlu1 %1116 }
 0x60c   : > { %v1122_v14 = vcombine.low %v952_v58, %v1117_v8  ;;  %v1123_v15 = vcombine.high %v952_v58, %v1117_v8 }
 0x60e   : > { %v1130_v21 = vrot.slane %v1122_v14, %v4554_v63  ;;  %v1137_v22 = vrot.slane %v1123_v15, %v4554_v63 }
 0x60f   : > { %v1734_v5 = vpop.xlane.xlu0 %1733  ;;  %v1120_v17 = vpop.permute.xlu1 %1119 }
 0x610   : > { %v4671_v7 = vmax.f32 %v4668_v4, %v1734_v5 }
 0x612   : > { %v1744_v10 = vsub.f32 %v4668_v4, %v4671_v7  ;;  %2041 = vst.msk [vmem:[#allocation4 + $0x10] sm:$0xff] %vm1516_vm4, %v4671_v7  ;;  %1766 = vperm.xlu1 %3242, %v4671_v7   ;;  %v1746_v7 = vmul.f32 1.442695, %v1742_v2 }
 0x613   : > { %v1737_v11 = vpop.xlane.xlu0 %1736 }
 0x614   : > { %v4681_v12 = vmax.f32 %v4673_v9, %v1737_v11 }
 0x616   : > { %v1745_v16 = vsub.f32 %v4673_v9, %v4681_v12  ;;  %2042 = vst.msk [vmem:[#allocation4 + $0x18] sm:$0xff] %vm1516_vm4, %v4681_v12  ;;  %1771 = vperm.xlu1 %3242, %v4681_v12  }
 0x617   : > { %v1114_v18 = vpop.permute.xlu0 %1113 }
 0x618   : > { %v1138_v19 = vcombine.low %v1114_v18, %v1120_v17  ;;  %v1139_v20 = vcombine.high %v1114_v18, %v1120_v17 }
 0x61a   : > { %v1146_v23 = vrot.slane %v1138_v19, %v4554_v63  ;;  %v1153_v24 = vrot.slane %v1139_v20, %v4554_v63 }
 0x61c   : > { %v1154_v25 = vcombine.low %v1130_v21, %v1146_v23  ;;  %v1155_v26 = vcombine.high %v1130_v21, %v1146_v23  ;;  %v1170_v27 = vcombine.low %v1137_v22, %v1153_v24  ;;  %v1171_v28 = vcombine.high %v1137_v22, %v1153_v24 }
 0x61e   : > { %v1162_v29 = vrot.slane %v1154_v25, %v4556_v6  ;;  %v1169_v30 = vrot.slane %v1155_v26, %v4556_v6  ;;  %v1178_v31 = vrot.slane %v1170_v27, %v4556_v6  ;;  %v1185_v32 = vrot.slane %v1171_v28, %v4556_v6 }
 0x620   : > { %v1190_v33 = vcombine.low %v1162_v29, %v1169_v30  ;;  %v2814_v34 = vcombine.high %v1162_v29, %v1169_v30  ;;  %v1206_v35 = vcombine.low %v1178_v31, %v1185_v32  ;;  %v2815_v38 = vcombine.high %v1178_v31, %v1185_v32 }
 0x622   : > { %v1197_v39 = vrot.slane %v1190_v33, %v4554_v63  ;;  %v1205_v40 = vrot.slane %v2814_v34, %v4554_v63  ;;  %v1213_v41 = vrot.slane %v1206_v35, %v4554_v63  ;;  %v1221_v42 = vrot.slane %v2815_v38, %v4554_v63 }
 0x623   : > { %v1748_v34 = vmul.f32 1.442695, %v1743_v3  ;;  %v1750_v38 = vmul.f32 1.442695, %v1744_v10 }
 0x624   : > { %v1222_v44 = vcombine.low %v1197_v39, %v1205_v40  ;;  %v1223_v45 = vcombine.high %v1197_v39, %v1205_v40  ;;  %v1238_v46 = vcombine.low %v1213_v41, %v1221_v42  ;;  %v1239_v49 = vcombine.high %v1213_v41, %v1221_v42  ;;  %v1787_v42 = vld [vmem:[#allocation5 + $0x8] sm:$0xff] }
 0x625   : > { %v1752_v39 = vmul.f32 1.442695, %v1745_v16  ;;  %v1786_v16 = vld [vmem:[#allocation5] sm:$0xff] }
 0x626   : > { %v1230_v50 = vrot.slane %v1222_v44, %v4556_v6  ;;  %v1237_v51 = vrot.slane %v1223_v45, %v4556_v6  ;;  %v1246_v53 = vrot.slane %v1238_v46, %v4556_v6  ;;  %v1253_v54 = vrot.slane %v1239_v49, %v4556_v6 }
 0x628   : > { %v1254_v52 = vcombine.low %v1230_v50, %v1246_v53  ;;  %v1255_v55 = vcombine.high %v1230_v50, %v1246_v53  ;;  %v1256_v56 = vcombine.low %v1237_v51, %v1253_v54  ;;  %v1257_v57 = vcombine.high %v1237_v51, %v1253_v54  ;;  %v1789_v53 = vld [vmem:[#allocation5 + $0x18] sm:$0xff] }
 0x62a   : > { %v1258_v58 = vpack.c.bf16 %v1254_v52, %v1254_v52  ;;  %v1259_v59 = vpack.c.bf16 %v1255_v55, %v1255_v55  ;;  %v1260_v62 = vpack.c.bf16 %v1256_v56, %v1256_v56  ;;  %v1261_v0 = vpack.c.bf16 %v1257_v57, %v1257_v57 }
 0x62c   : > { %1262 = vst.msk [vmem:[#allocation3] sm:$0xf] %vm1107_vm3, %v1258_v58  ;;  %1263 = vst.msk [vmem:[#allocation3 + $0x4] sm:$0xf] %vm1107_vm3, %v1259_v59 }
 0x62d   : > { %1264 = vst.msk [vmem:[#allocation3 + $0x8] sm:$0xf] %vm1107_vm3, %v1260_v62  ;;  %1265 = vst.msk [vmem:[#allocation3 + $0xc] sm:$0xf] %vm1107_vm3, %v1261_v0 }
 0x633   : > { %v1534_v5 = vld [vmem:[#allocation3] sm:$0xf]  ;;  %v1535_v8 = vld [vmem:[#allocation3 + $0x4] sm:$0xf] }
 0x634   : > { %v1823_v11 = vsel %vm1821_vm5, %v1534_v5, 0  ;;  %v1869_v14 = vsel %vm1821_vm5, %v1535_v8, 0  ;;  %v1536_v29 = vld [vmem:[#allocation3 + $0x8] sm:$0xf] }
 0x635   : > { %2946 = vmatpush3.bf16.msra.mxu1 %v1823_v11  ;;  %2952 = vmatpush3.bf16.msra.mxu0 %v1869_v14  ;;  %v3250_v14 = vld [vmem:[#allocation22] sm:$0xff]  }
 0x636   : > { %2957 = vmatprep.subr.bf16.mxu1 %v3908_v13  ;;  %2963 = vmatprep.subr.bf16.mxu0 %v3908_v13 }
 0x689   : > { %v1757_v15 = vpop.permute.xlu1 %1756  ;;  %v1762_v17 = vpop.permute.xlu0 %1761 }
 0x68a   : > { %v1774_v18 = vsub.f32 %v4628_v36, %v1757_v15  ;;  %v1775_v19 = vsub.f32 %v4630_v37, %v1762_v17  ;;  %v1537_v37 = vld [vmem:[#allocation3 + $0xc] sm:$0xf]  ;;  %v2003_v17 = vld [vmem:[#allocation6] sm:$0xff] }
 0x68c   : > { %v1778_v20 = vmul.f32 1.442695, %v1774_v18  ;;  %v1780_v21 = vmul.f32 1.442695, %v1775_v19  ;;  %v2004_v19 = vld [vmem:[#allocation6 + $0x8] sm:$0xff] }
 0x68e   : > { %3266 = vpow2.f32 %v1778_v20 }
 0x68f   : > { %3268 = vpow2.f32 %v1780_v21 }
 0x691   : > { %v1767_v22 = vpop.permute.xlu1 %1766 }
 0x692   : > { %v1776_v23 = vsub.f32 %v4636_v47, %v1767_v22  ;;  %v1915_v47 = vsel %vm1821_vm5, %v1536_v29, 0 }
 0x694   : > { %v1782_v24 = vmul.f32 1.442695, %v1776_v23 }
 0x695   : > { %v1772_v25 = vpop.permute.xlu1 %1771 }
 0x696   : > { %3270 = vpow2.f32 %v1782_v24  ;;  %v1777_v26 = vsub.f32 %v4638_v48, %v1772_v25  ;;  %v1961_v48 = vsel %vm1821_vm5, %v1537_v37, 0 }
 0x698   : > { %v3267_v27 = vpop.eup %3266  ;;  %v1784_v28 = vmul.f32 1.442695, %v1777_v26 }
 0x699   : > { %v3269_v30 = vpop.eup %3268  ;;  %v1794_v36 = vsel %vm1525_vm2, %v3267_v27, 0.0  ;;  %v1814_v31 = vpack.c.bf16 %v3267_v27, %v3267_v27 }
 0x69a   : > { %3272 = vpow2.f32 %v1784_v28  ;;  %1795 = vadd.xlane.f32.xlu0 %v1794_v36  ;;  %v1797_v32 = vsel %vm1525_vm2, %v3269_v30, 0.0  ;;  %v1815_v33 = vpack.c.bf16 %v3269_v30, %v3269_v30 }
 0x69b   : > { %1798 = vadd.xlane.f32.xlu1 %v1797_v32  ;;  %2948 = vmatmul.mubr.msk.bf16.vlgmr.msra.gmra.mrb[8].mxu1 %vm1525_vm2, %v1814_v31  ;;  %3274 = vpow2.f32 %v1748_v34  ;;  %v2005_v31 = vld [vmem:[#allocation6 + $0x10] sm:$0xff] }
 0x69c   : > { %2954 = vmatmul.mubr.msk.bf16.vlgmr.msra.gmra.mrb[20].mxu0 %vm1525_vm2, %v1815_v33  ;;  %2958 = vmatpush3.bf16.msra.mxu1 %v1915_v47  ;;  %3276 = vpow2.f32 %v1750_v38  ;;  %v2006_v33 = vld [vmem:[#allocation6 + $0x18] sm:$0xff] }
 0x69d   : > { %2964 = vmatpush3.bf16.msra.mxu0 %v1961_v48  ;;  %2959 = vmatprep.mubr.msk.bf16.mxu1 %vm3909_vm1, %v3908_v13  ;;  %3278 = vpow2.f32 %v1752_v39 }
 0x69e   : > { %2965 = vmatprep.mubr.msk.bf16.mxu0 %vm3909_vm1, %v3908_v13  ;;  %2969 = vmatprep.subr.bf16.mxu1 %v3908_v13  ;;  %3280 = vpow2.f32 %v1746_v7 }
 0x69f   : > { %2977 = vmatprep.subr.bf16.mxu0 %v3908_v13 }
 0x6a0   : > { %v3271_v35 = vpop.eup %3270 }
 0x6a1   : > { %v1800_v61 = vsel %vm1525_vm2, %v3271_v35, 0.0  ;;  %v1816_v43 = vpack.c.bf16 %v3271_v35, %v3271_v35 }
 0x6a2   : > { %1801 = vadd.xlane.f32.xlu0 %v1800_v61 }
 0x6a3   : > { %2960 = vmatmul.mubr.msk.bf16.vlgmr.msra.gmra.mrb[12].mxu1 %vm1525_vm2, %v1816_v43 }
 0x6a4   : > { %v3273_v3 = vpop.eup %3272  ;;  %2973 = vmatprep.mubr.msk.bf16.mxu1 %vm3909_vm1, %v3908_v13  ;;  %2970 = vmatpush3.bf16.msra.mxu1 %v3250_v14 }
 0x6a5   : > { %v1803_v40 = vsel %vm1525_vm2, %v3273_v3, 0.0  ;;  %v1817_v41 = vpack.c.bf16 %v3273_v3, %v3273_v3  ;;  %v3275_v4 = vpop.eup %3274  ;;  %2971 = vmatprep.subr.bf16.mxu1 %v3908_v13 }
 0x6a6   : > { %1804 = vadd.xlane.f32.xlu0 %v1803_v40  ;;  %v3277_v10 = vpop.eup %3276  ;;  %v1791_v45 = vmul.f32 %v3275_v4, %v1787_v42 }
 0x6a7   : > { %2966 = vmatmul.mubr.msk.bf16.vlgmr.msra.gmra.mrb[24].mxu0 %vm1525_vm2, %v1817_v41  ;;  %v3279_v9 = vpop.eup %3278  ;;  %v1792_v1 = vmul.f32 %v3277_v10, %v1788_v60 }
 0x6a8   : > { %2981 = vmatprep.mubr.msk.bf16.mxu0 %vm3909_vm1, %v3908_v13  ;;  %v3281_v12 = vpop.eup %3280  ;;  %v1793_v55 = vmul.f32 %v3279_v9, %v1789_v53 }
 0x6a9   : > { %v1790_v44 = vmul.f32 %v3281_v12, %v1786_v16 }
 0x6ac   : > { %2014 = vperm.xlu1 %3242, %v3275_v4  }
 0x6b0   : > { %2019 = vperm.xlu1 %3242, %v3277_v10  }
 0x6b4   : > { %2024 = vperm.xlu1 %3242, %v3279_v9  }
 0x6bc   : > { %2009 = vperm.xlu0 %3243, %v3281_v12  }
 0x727   : > { %v1796_v46 = vpop.xlane.xlu0 %1795 }
 0x728   : > { %v1799_v49 = vpop.xlane.xlu1 %1798  ;;  %v1806_v50 = vadd.f32 %v1796_v46, %v1790_v44 }
 0x729   : > { %v1807_v51 = vadd.f32 %v1799_v49, %v1791_v45 }
 0x72a   : > { %1810 = vst.msk [vmem:[#allocation5] sm:$0xff] %vm1516_vm4, %v1806_v50 }
 0x72b   : > { %1811 = vst.msk [vmem:[#allocation5 + $0x8] sm:$0xff] %vm1516_vm4, %v1807_v51 }
 0x72c   : > { %v2015_v15 = vpop.permute.xlu1 %2014 }
 0x72d   : > { %v2028_v21 = vmul.f32 %v2015_v15, %v2004_v19 }
 0x72f   : > { %v1802_v2 = vpop.xlane.xlu0 %1801 }
 0x730   : > { %v1808_v54 = vadd.f32 %v1802_v2, %v1792_v1  ;;  %v2020_v22 = vpop.permute.xlu1 %2019 }
 0x731   : > { %v2047_v52 = vld [vmem:[#allocation5] sm:$0xff]  ;;  %v2029_v32 = vmul.f32 %v2020_v22, %v2005_v31 }
 0x732   : > { %1812 = vst.msk [vmem:[#allocation5 + $0x10] sm:$0xff] %vm1516_vm4, %v1808_v54  ;;  %v2048_v56 = vld [vmem:[#allocation5 + $0x8] sm:$0xff]  ;;  %3282 = vrcp.f32 %v2047_v52 }
 0x733   : > { %v1805_v57 = vpop.xlane.xlu0 %1804  ;;  %3284 = vrcp.f32 %v2048_v56 }
 0x734   : > { %v1809_v58 = vadd.f32 %v1805_v57, %v1793_v55  ;;  %v2025_v47 = vpop.permute.xlu1 %2024 }
 0x735   : > { %v2030_v61 = vmul.f32 %v2025_v47, %v2006_v33 }
 0x736   : > { %1813 = vst.msk [vmem:[#allocation5 + $0x18] sm:$0xff] %vm1516_vm4, %v1809_v58 }
 0x739   : > { %v2049_v59 = vld [vmem:[#allocation5 + $0x10] sm:$0xff] }
 0x73a   : > { %3286 = vrcp.f32 %v2049_v59 }
 0x73b   : > { %v2010_v18 = vpop.permute.xlu0 %2009 }
 0x73c   : > { %v3283_v62 = vpop.eup %3282  ;;  %v2027_v20 = vmul.f32 %v2010_v18, %v2003_v17 }
 0x73d   : > { %v3285_v0 = vpop.eup %3284  ;;  %2057 = vperm.xlu0 %3243, %v3283_v62   ;;  %v2050_v5 = vld [vmem:[#allocation5 + $0x18] sm:$0xff] }
 0x73e   : > { %2062 = vperm.xlu1 %3242, %v3285_v0   ;;  %3288 = vrcp.f32 %v2050_v5  ;;  %v3251_v0 = vld [vmem:[#allocation22 + $0x8] sm:$0xff]  }
 0x73f   : > { %2972 = vmatpush3.bf16.msra.mxu1 %v3251_v0  ;;  %v3259_v0 = vld [vmem:[#allocation31 + $0x28] sm:$0xff]  }
 0x740   : > { %2985 = vmatprep.subr.bf16.mxu1 %v3908_v13 }
 0x744   : > { %v3287_v8 = vpop.eup %3286 }
 0x745   : > { %2067 = vperm.xlu0 %3243, %v3287_v8  }
 0x748   : > { %v3289_v11 = vpop.eup %3288 }
 0x749   : > { %2072 = vperm.xlu1 %3242, %v3289_v11  }
 0x76e   : > { %v1859_v23 = vpop.f32.mrb[8].mxu1 }
 0x76f   : > { %v2031_v24 = vadd.f32 %v2027_v20, %v1859_v23  ;;  %v1905_v25 = vpop.f32.mrb[20].mxu0  ;;  %v2949_v26 = vpop.f32.mrb[9].mxu1 }
 0x770   : > { %v2032_v27 = vadd.f32 %v2028_v21, %v1905_v25  ;;  %v2955_v28 = vpop.f32.mrb[21].mxu0  ;;  %v1862_v29 = vpop.f32.mrb[10].mxu1 }
 0x771   : > { %2035 = vst.msk [vmem:[#allocation6] sm:$0xff] %vm1525_vm2, %v2031_v24  ;;  %v1908_v30 = vpop.f32.mrb[22].mxu0  ;;  %v2950_v36 = vpop.f32.mrb[11].mxu1 }
 0x772   : > { %2036 = vst.msk [vmem:[#allocation6 + $0x8] sm:$0xff] %vm1525_vm2, %v2032_v27  ;;  %v2956_v37 = vpop.f32.mrb[23].mxu0 }
 0x776   : > { %v1951_v48 = vpop.f32.mrb[12].mxu1 }
 0x777   : > { %v2033_v34 = vadd.f32 %v2029_v32, %v1951_v48  ;;  %v2961_v35 = vpop.f32.mrb[13].mxu1 }
 0x778   : > { %v1954_v38 = vpop.f32.mrb[14].mxu1  ;;  %v2043_v42 = vld [vmem:[#allocation6] sm:$0xff] }
 0x779   : > { %2037 = vst.msk [vmem:[#allocation6 + $0x10] sm:$0xff] %vm1525_vm2, %v2033_v34  ;;  %v2962_v43 = vpop.f32.mrb[15].mxu1  ;;  %v2044_v45 = vld [vmem:[#allocation6 + $0x8] sm:$0xff] }
 0x77a   : > { %v1997_v3 = vpop.f32.mrb[24].mxu0 }
 0x77b   : > { %v2034_v39 = vadd.f32 %v2030_v61, %v1997_v3  ;;  %v2967_v40 = vpop.f32.mrb[25].mxu0  ;;  %v2832_v61 = vld [vmem:[#allocation24] ss:$0 sm:$0xff] }
 0x77c   : > { %v2000_v41 = vpop.f32.mrb[26].mxu0 }
 0x77d   : > { %2038 = vst.msk [vmem:[#allocation6 + $0x18] sm:$0xff] %vm1525_vm2, %v2034_v39  ;;  %v2968_v4 = vpop.f32.mrb[27].mxu0  ;;  %v3294_v41 = vld [vmem:[%s4470_s0] sm:$0xff] }
 0x780   : > { %v2045_v9 = vld [vmem:[#allocation6 + $0x10] sm:$0xff] }
 0x784   : > { %v2046_v49 = vld [vmem:[#allocation6 + $0x18] sm:$0xff] }
 0x7bc   : > { %v2058_v7 = vpop.permute.xlu0 %2057 }
 0x7bd   : > { %v2063_v10 = vpop.permute.xlu1 %2062  ;;  %v2075_v44 = vmul.f32 %v2058_v7, %v2043_v42 }
 0x7be   : > { %v2076_v50 = vmul.f32 %v2063_v10, %v2044_v45  ;;  %v3252_v45 = vld [vmem:[#allocation28] sm:$0xff]  }
 0x7bf   : > { %2978 = vmatpush3.bf16.msra.mxu0 %v3252_v45 }
 0x7c0   : > { %2979 = vmatprep.subr.bf16.mxu0 %v3908_v13 }
 0x7c4   : > { %v2068_v12 = vpop.permute.xlu0 %2067 }
 0x7c5   : > { %v2077_v16 = vmul.f32 %v2068_v12, %v2045_v9 }
 0x7c7   : > { %v2079_v51 = vcombine.low %v2075_v44, %v2077_v16  ;;  %v2080_v60 = vcombine.high %v2075_v44, %v2077_v16 }
 0x7c8   : > { %v2073_v46 = vpop.permute.xlu1 %2072 }
 0x7c9   : > { %v2078_v1 = vmul.f32 %v2073_v46, %v2046_v49  ;;  %v2087_v54 = vrot.slane %v2079_v51, %v4554_v63  ;;  %v2094_v52 = vrot.slane %v2080_v60, %v4554_v63  ;;  %v3253_v46 = vld [vmem:[#allocation28 + $0x8] sm:$0xff]   ;;  %v3254_v49 = vld [vmem:[#allocation31] sm:$0xff]  }
 0x7ca   : > { %2980 = vmatpush3.bf16.msra.mxu0 %v3253_v46  ;;  %v3256_v51 = vld [vmem:[#allocation31 + $0x10] sm:$0xff]  }
 0x7cb   : > { %v2095_v2 = vcombine.low %v2076_v50, %v2078_v1  ;;  %v2096_v53 = vcombine.high %v2076_v50, %v2078_v1  ;;  %v3255_v50 = vld [vmem:[#allocation31 + $0x8] sm:$0xff]  }
 0x7cd   : > { %v2103_v55 = vrot.slane %v2095_v2, %v4554_v63  ;;  %v2110_v56 = vrot.slane %v2096_v53, %v4554_v63 }
 0x7cf   : > { %v2111_v57 = vcombine.low %v2087_v54, %v2103_v55  ;;  %v2112_v58 = vcombine.high %v2087_v54, %v2103_v55  ;;  %v2127_v59 = vcombine.low %v2094_v52, %v2110_v56  ;;  %v2128_v62 = vcombine.high %v2094_v52, %v2110_v56  ;;  %v2836_v54 = vld [vmem:[#allocation25] ss:$0 sm:$0xff]  ;;  %v2837_v55 = vld [vmem:[#allocation27] ss:$0 sm:$0xff] }
 0x7d1   : > { %v2119_v5 = vrot.slane %v2111_v57, %v4556_v6  ;;  %v2126_v8 = vrot.slane %v2112_v58, %v4556_v6  ;;  %v2135_v11 = vrot.slane %v2127_v59, %v4556_v6  ;;  %v2142_v14 = vrot.slane %v2128_v62, %v4556_v6  ;;  %v3257_v59 = vld [vmem:[#allocation31 + $0x18] sm:$0xff]   ;;  %v3258_v62 = vld [vmem:[#allocation31 + $0x20] sm:$0xff]  }
 0x7d3   : > { %v2147_v15 = vcombine.low %v2119_v5, %v2126_v8  ;;  %v2830_v17 = vcombine.high %v2119_v5, %v2126_v8  ;;  %v2163_v18 = vcombine.low %v2135_v11, %v2142_v14  ;;  %v2831_v19 = vcombine.high %v2135_v11, %v2142_v14  ;;  %v3260_v5 = vld [vmem:[#allocation31 + $0x30] sm:$0xff]   ;;  %v3261_v8 = vld [vmem:[#allocation31 + $0x38] sm:$0xff]  }
 0x7d4   : > { %v2838_v11 = vld [vmem:[#allocation30] ss:$0 sm:$0xff] }
 0x7d5   : > { %v2154_v20 = vrot.slane %v2147_v15, %v4554_v63  ;;  %v2162_v21 = vrot.slane %v2830_v17, %v4554_v63  ;;  %v2170_v22 = vrot.slane %v2163_v18, %v4554_v63  ;;  %v2178_v23 = vrot.slane %v2831_v19, %v4554_v63 }
 0x7d7   : > { %v2180_v24 = vcombine.high %v2154_v20, %v2162_v21  ;;  %v2196_v25 = vcombine.high %v2170_v22, %v2178_v23  ;;  %v2179_v26 = vcombine.low %v2154_v20, %v2162_v21  ;;  %v2195_v27 = vcombine.low %v2170_v22, %v2178_v23 }
 0x7d9   : > { %v2194_v28 = vrot.slane %v2180_v24, %v4556_v6  ;;  %v2210_v29 = vrot.slane %v2196_v25, %v4556_v6  ;;  %v2187_v30 = vrot.slane %v2179_v26, %v4556_v6  ;;  %v2203_v36 = vrot.slane %v2195_v27, %v4556_v6 }
 0x7db   : > { %v2213_v31 = vcombine.low %v2194_v28, %v2210_v29  ;;  %v2212_v37 = vcombine.high %v2187_v30, %v2203_v36  ;;  %v2211_v32 = vcombine.low %v2187_v30, %v2203_v36  ;;  %v2214_v63 = vcombine.high %v2194_v28, %v2210_v29 }
 0x7dd   : > { %2220 = vrot.lane.b32.xlu1 %v2213_v31, %s3917_s24  ;;  %2216 = vrot.lane.b32.xlu0 %v2212_v37, %s3918_s29  ;;  %s3777_s24 = sshll.u32 %s3920_s22, 4  ;;  %s3778_s24 = int_to_ptr.vmem [resolvable:$false] %s3777_s24 }
 0x7de   : > { %s3779_s29 = scalar_lea.vmem %s3778_s24, 256  ;;  %p3780_p10 = scmp.lt.s32.totalorder %s4803_s28, %s3778_s24 }
 0x7df   : > { %p3781_p13 = scmp.lt.s32.totalorder %s3779_s29, %s3773_s1 }
 0x7e1   : > { %2224 = vrot.lane.b32.xlu0 %v2214_v63, %s3919_s23  ;;  %p3782_p2 = por %p3781_p13, %p3780_p10 }
 0x7e3   : > { %p3783_p8 = pnand %p3782_p2, %p3776_p7 }
 0x84f   : > { %v2217_v33 = vpop.permute.xlu0 %2216  ;;  %v2221_v47 = vpop.permute.xlu1 %2220 }
 0x850   : > { %v2227_v48 = vsel %vm1525_vm2, %v2211_v32, %v2217_v33 }
 0x851   : > { %v2229_v35 = vsel %vm2228_vm6, %v2227_v48, %v2221_v47 }
 0x853   : > { %v2225_v34 = vpop.permute.xlu0 %2224 }
 0x854   : > { %v2231_v6 = vsel %vm2230_vm7, %v2229_v35, %v2225_v34 }
 0x855   : > { %v2232_v38 = vpack.c.bf16 %v2231_v6, %v2231_v6 }
 0x857   : > { %2974 = vmatmul.mubr.msk.bf16.vlgmr.msra.gmra.mrb[16].mxu1 %vm798_vm0, %v2232_v38 }
 0x858   : > { %3001 = vmatprep.mubr.msk.bf16.mxu1 %vm3909_vm1, %v3908_v13  ;;  %2986 = vmatpush3.bf16.msra.mxu1 %v3254_v49 }
 0x859   : > { %2987 = vmatprep.subr.bf16.mxu1 %v3908_v13 }
 0x85c   : > { %2988 = vmatpush3.bf16.msra.mxu1 %v3255_v50 }
 0x85d   : > { %2989 = vmatprep.subr.bf16.mxu1 %v3908_v13 }
 0x860   : > { %2990 = vmatpush3.bf16.msra.mxu1 %v3256_v51 }
 0x861   : > { %2991 = vmatprep.subr.bf16.mxu1 %v3908_v13 }
 0x864   : > { %2992 = vmatpush3.bf16.msra.mxu1 %v3257_v59 }
 0x865   : > { %2993 = vmatprep.subr.bf16.mxu1 %v3908_v13 }
 0x868   : > { %2994 = vmatpush3.bf16.msra.mxu1 %v3258_v62 }
 0x869   : > { %2995 = vmatprep.subr.bf16.mxu1 %v3908_v13 }
 0x86c   : > { %2996 = vmatpush3.bf16.msra.mxu1 %v3259_v0 }
 0x86d   : > { %2997 = vmatprep.subr.bf16.mxu1 %v3908_v13 }
 0x870   : > { %2998 = vmatpush3.bf16.msra.mxu1 %v3260_v5 }
 0x871   : > { %2999 = vmatprep.subr.bf16.mxu1 %v3908_v13  ;;  %v2842_v13 = vld [vmem:[#allocation33] ss:$0 sm:$0xff] }
 0x874   : > { %3000 = vmatpush3.bf16.msra.mxu1 %v3261_v8 }
 0x92a   : > { %v2293_v43 = vpop.f32.mrb[16].mxu1 }
 0x92b   : > { %v2294_v3 = vadd.f32 %v2832_v61, %v2293_v43  ;;  %v2975_v39 = vpop.f32.mrb[17].mxu1 }
 0x92c   : > { %v2296_v40 = vpop.f32.mrb[18].mxu1 }
 0x92d   : > { %v4779_v4 = vadd.f32 %v3294_v41, %v2294_v3  ;;  %v2976_v7 = vpop.f32.mrb[19].mxu1 }
 0x92f   : > { %v2302_v10 = vsel %vm798_vm0, %v4779_v4, 0.0 }
 0x930   : > { %2303 = vadd.xlane.f32.xlu1 %v2302_v10 }
 0x9bd   : > { %v2304_v9 = vpop.xlane.xlu1 %2303 }
 0x9be   : > { %v2305_v12 = vmul.f32 0.03125, %v2304_v9 }
 0x9c0   : > { %v2306_v16 = vsub.f32 %v4779_v4, %v2305_v12 }
 0x9c2   : > { %v2307_v42 = vmul.f32 %v2306_v16, %v2306_v16 }
 0x9c4   : > { %v2308_v44 = vsel %vm798_vm0, %v2307_v42, 0.0 }
 0x9c5   : > { %2309 = vadd.xlane.f32.xlu0 %v2308_v44 }
 0xa52   : > { %v2310_v60 = vpop.xlane.xlu0 %2309 }
 0xa53   : > { %v2311_v1 = vmul.f32 0.03125, %v2310_v60 }
 0xa55   : > { %v2312_v2 = vadd.f32 1e-05, %v2311_v1 }
 0xa57   : > { %3290 = vrsqrt.f32 %v2312_v2 }
 0xa61   : > { %v3291_v53 = vpop.eup %3290 }
 0xa62   : > { %v2314_v52 = vmul.f32 %v3291_v53, %v2306_v16 }
 0xa64   : > { %v2321_v56 = vmul.f32 %v2836_v54, %v2314_v52 }
 0xa66   : > { %v2328_v57 = vadd.f32 %v2837_v55, %v2321_v56 }
 0xa68   : > { %v2329_v58 = vpack.c.bf16 %v2328_v57, %v2328_v57 }
 0xa6a   : > { %2982 = vmatmul.mubr.msk.bf16.vlgmr.msra.gmra.mrb[28].mxu0 %vm798_vm0, %v2329_v58 }
 0xb3d   : > { %v2390_v14 = vpop.f32.mrb[28].mxu0 }
 0xb3e   : > { %v2391_v15 = vadd.f32 %v2838_v11, %v2390_v14  ;;  %v2983_v17 = vpop.f32.mrb[29].mxu0 }
 0xb3f   : > { %v2393_v18 = vpop.f32.mrb[30].mxu0 }
 0xb40   : > { %v2397_v19 = vmul.f32 0.70710677, %v2391_v15  ;;  %v2984_v20 = vpop.f32.mrb[31].mxu0  ;;  %v2396_v22 = vmul.f32 0.5, %v2391_v15 }
 0xb42   : > { %3292 = verf.f32 %v2397_v19 }
 0xb4c   : > { %v3293_v21 = vpop.eup %3292 }
 0xb4d   : > { %v2399_v23 = vadd.f32 1.0, %v3293_v21 }
 0xb4f   : > { %v2400_v24 = vmul.f32 %v2399_v23, %v2396_v22 }
 0xb51   : > { %v2401_v25 = vpack.c.bf16 %v2400_v24, %v2400_v24 }
 0xb53   : > { %3002 = vmatmul.mubr.bf16.vlgmr.msra.gmra.mrb[20].mxu1 %v2401_v25 }
 0xc26   : > { %v2507_v26 = vpop.f32.mrb[20].mxu1 }
 0xc27   : > { %v2508_v27 = vadd.f32 %v2842_v13, %v2507_v26  ;;  %v3003_v28 = vpop.f32.mrb[21].mxu1 }
 0xc28   : > { %v2510_v29 = vpop.f32.mrb[22].mxu1 }
 0xc29   : > { %v2513_v30 = vadd.f32 %v2508_v27, %v4779_v4  ;;  %v3004_v36 = vpop.f32.mrb[23].mxu1 }
 0xc2b   : > { %2514 = vst.msk [vmem:[%s789_s18] sm:$0xff] %vm798_vm0, %v2513_v30 }
 0xc2c   : > { %3786 = shalt.err (!%p3783_p8)
}
 0xc2d   : > { %s3787_s30 = scalar_lea.hbm %s4801_s5, 128  ;;  %s3791_s17 = scalar_lea.hbm %s4932_s4, 256 }
 0xc2e   : > { %p3788_p9 = scmp.ne.s32.totalorder %s4801_s5, %s3787_s30  ;;  %p3792_p3 = scmp.lt.u32.totalorder %s4801_s5, %s4932_s4 }
 0xc2f   : > { %p3793_p1 = scmp.lt.u32.totalorder %s3791_s17, %s3787_s30  ;;  %p3795_p11 = scmp.lt.u32.totalorder %s3787_s30, %s4801_s5 }
 0xc30   : > { %p3789_p4 = pnand %p3788_p9, %p4933_p0 }
 0xc31   : > { %p3794_p12 = por %p3793_p1, %p3792_p3 }
 0xc32   : > { %p3790_p6 = pneg %p3789_p4 }
 0xc33   : > { %p3796_p5 = por %p3795_p11, %p3794_p12 }
 0xc35   : > { %p3797_p7 = pnand %p3796_p5, %p3790_p6 }
 0xc37   : > { %3800 = shalt.err (!%p3797_p7)
}
 0xc38   : > { %3071 = dma.vmem_to_hbm [thread:$0]  (%p4933_p0), %s4803_s28, 128, %s4801_s5, %s2516_s3  }
 0xc39 PF: > { %s4934_s0 = sld [smem:[#allocation45_spill]]  ;;  %s4935_s1 = sld [smem:[#allocation50_spill]] }
 0xc3a   : > { %p4936_p10 = scmp.ne.s32.totalorder %s4922_s21, 0 }
 0xc3f   : > { %s2542_s22 = sand.u32 1, %s4934_s0   ;;  %p4937_p13 = scmp.ge.s32.totalorder %s4935_s1, 2 }
 0xc40   : > { %s2543_s24 = scalar_lea.sflag [#allocation9], %s2542_s22 }
 0xc41   : > { %p3127_p2 = pnand %p4937_p13, %p4936_p10 }
 0xc43   : > { %3862 = dma.done.wait (!%p3127_p2), %s2543_s24, 128  }
 0xc44   : > { %3864 = vsyncadd (!%p3127_p2), %s2543_s24, 4294967168  ;;  %s41_s29 = sadd.s32 1, %s4935_s1   ;;  %s4938_s24 = sld [smem:[#allocation46_spill]] }
 0xc45   : > { %p38_p8 = scmp.ge.s32.totalorder %s41_s29, 4   ;;  %s4939_s25 = sld [smem:[#allocation47_spill]] }
 0xc46   : > { %s4940_s30 = sld [smem:[#allocation49_spill]]  ;;  %s4941_s26 = smov %s4414_s27 }
 0xc47   : > { %s4943_s28 = smov %s4945_s19  ;;  %40 = sbr.rel (!%p38_p8) target bundleno = 22 (0x16), region = 202 }
 0xc4c   : > { %s4942_s27 = smov %s4940_s30 }
 0xc4e   :  { %2548 = vsyncpa [#allocation8], 1 }
 0xc4f   :  { %2550 = vsyncpa [#allocation8 + $0x1], 1 }
 0xc50   :  { %2551 = vsyncpa [#allocation11], 1 }
 0xc51   :  { %2552 = vsyncpa [#allocation14], 1 }
 0xc52   :  { %2553 = vsyncpa [#allocation17], 1 }
 0xc53   :  { %2554 = vsyncpa [#allocation20], 1 }
 0xc54   :  { %2555 = vsyncpa [#allocation23], 1 }
 0xc55   :  { %2556 = vsyncpa [#allocation26], 1 }
 0xc56   :  { %2557 = vsyncpa [#allocation29], 1 }
 0xc57   :  { %2558 = vsyncpa [#allocation32], 1 }
 0xc58   :  { %2559 = vsyncpa [#allocation9], 1 }
 0xc59   :  { %2561 = vsyncpa [#allocation9 + $0x1], 1 }

// kernel: tpu_custom_call.1
= control target key start
LH: loop header
LB: loop body
LE: loop exit
PB: predicated region body
PF: predicated region fallthrough
CT: control target
= control target key end

     0   :  { %s4851_s0 = inlined_call_operand.hbm [shape: f32[2,8,32], index: 0, kind: input, shape index: {}]   ;;  %s4852_s1 = inlined_call_operand.hbm [shape: f32[1,32], index: 1, kind: input, shape index: {}]   ;;  %s4853_s2 = inlined_call_operand.hbm [shape: f32[1,32], index: 2, kind: input, shape index: {}]   ;;  %s4854_s3 = inlined_call_operand.hbm [shape: bf16[32,32], index: 3, kind: input, shape index: {}]   ;;  %s4855_s4 = inlined_call_operand.hbm [shape: f32[1,32], index: 4, kind: input, shape index: {}]   ;;  %s4856_s5 = inlined_call_operand.hbm [shape: bf16[32,32], index: 5, kind: input, shape index: {}]   ;;  %s4857_s6 = inlined_call_operand.hbm [shape: f32[1,32], index: 6, kind: input, shape index: {}]   ;;  %s4858_s7 = inlined_call_operand.hbm [shape: bf16[32,32], index: 7, kind: input, shape index: {}]   ;;  %s4859_s8 = inlined_call_operand.hbm [shape: f32[1,32], index: 8, kind: input, shape index: {}]   ;;  %s4860_s9 = inlined_call_operand.hbm [shape: bf16[32,32], index: 9, kind: input, shape index: {}]   ;;  %s4861_s10 = inlined_call_operand.hbm [shape: f32[1,32], index: 10, kind: input, shape index: {}]   ;;  %s4862_s11 = inlined_call_operand.hbm [shape: f32[1,32], index: 11, kind: input, shape index: {}]   ;;  %s4863_s12 = inlined_call_operand.hbm [shape: f32[1,32], index: 12, kind: input, shape index: {}]   ;;  %s4864_s13 = inlined_call_operand.hbm [shape: bf16[32,128], index: 13, kind: input, shape index: {}]   ;;  %s4865_s14 = inlined_call_operand.hbm [shape: f32[1,128], index: 14, kind: input, shape index: {}]   ;;  %s4866_s15 = inlined_call_operand.hbm [shape: bf16[128,32], index: 15, kind: input, shape index: {}]   ;;  %s4867_s16 = inlined_call_operand.hbm [shape: f32[1,32], index: 16, kind: input, shape index: {}]   ;;  %s4868_s17 = inlined_call_operand.hbm [shape: f32[2,8,32], index: 17, kind: output, shape index: {}]  }
   0x1   :  { %4887 = sst [smem:[#allocation53_spill]] %s4851_s0 }
   0x2   :  { %4888 = sst [smem:[#allocation54_spill]] %s4852_s1 }
   0x3   :  { %4889 = sst [smem:[#allocation55_spill]] %s4853_s2 }
   0x4   :  { %4890 = sst [smem:[#allocation56_spill]] %s4854_s3 }
   0x5   :  { %4891 = sst [smem:[#allocation57_spill]] %s4855_s4 }
   0x6   :  { %4892 = sst [smem:[#allocation58_spill]] %s4856_s5 }
   0x7   :  { %4893 = sst [smem:[#allocation59_spill]] %s4868_s17 }
   0x8   :  { %22 = vsyncpa [#allocation8], 0 }
   0x9   :  { %24 = vsyncpa [#allocation8 + $0x1], 0 }
   0xa   :  { %25 = vsyncpa [#allocation11], 0 }
   0xb   :  { %26 = vsyncpa [#allocation14], 0 }
   0xc   :  { %27 = vsyncpa [#allocation17], 0 }
   0xd   :  { %28 = vsyncpa [#allocation20], 0 }
   0xe   :  { %29 = vsyncpa [#allocation23], 0 }
   0xf   :  { %30 = vsyncpa [#allocation26], 0 }
  0x10   :  { %31 = vsyncpa [#allocation29], 0 }
  0x11   :  { %32 = vsyncpa [#allocation32], 0 }
  0x12   :  { %33 = vsyncpa [#allocation9], 0 }
  0x13   :  { %35 = vsyncpa [#allocation9 + $0x1], 0  ;;  %s4011_s24 = smov 0   ;;  %s4013_s25 = smov 0  }
  0x14   :  { %s4015_s26 = smov 0   ;;  %s4017_s27 = smov 0  }
  0x15   :  { %s4019_s28 = smov 0   ;;  %s4021_s29 = smov 0  }
  0x16 LB: > { %4894 = sst [smem:[#allocation45_spill]] %s3867_s24  ;;  %s4871_s0 = sadd.s32 4294967295, %s3887_s29   ;;  %s3887_s29 = sphi %s4021_s29, %s41_s29   ;;  %s3883_s28 = sphi %s4019_s28, %s4943_s28   ;;  %s3879_s27 = sphi %s4017_s27, %s4942_s27   ;;  %s3875_s26 = sphi %s4015_s26, %s4941_s26   ;;  %s3871_s25 = sphi %s4013_s25, %s4939_s25   ;;  %s3867_s24 = sphi %s4011_s24, %s4938_s24  }
  0x17   : > { %4895 = sst [smem:[#allocation46_spill]] %s3871_s25  ;;  %p2765_p0 = scmp.ge.s32.totalorder %s3887_s29, 1 }
  0x18   : > { %4896 = sst [smem:[#allocation47_spill]] %s3875_s26  ;;  %p4045_p1 = scmp.eq.s32.totalorder %s4871_s0, 0 }
  0x19   : > { %4897 = sst [smem:[#allocation48_spill]] %s3879_s27  ;;  %p448_p2 = scmp.lt.s32.totalorder %s3887_s29, 3 }
  0x1a   : > { %4898 = sst [smem:[#allocation49_spill]] %s3883_s28  ;;  %s3889_s19 = smov [#allocation10]  }
  0x1b   : > { %4899 = sst [smem:[#allocation50_spill]] %s3887_s29  ;;  %p4050_p3 = pnand %p2765_p0, %p448_p2 }
  0x1c   : > { %s4900_s30 = scalar_select %p4045_p1, 1, 0 }
  0x1d   : > { %s4902_s18 = scalar_select %p4050_p3, 1, 0 }
  0x1e   : > { %4901 = sst [smem:[#allocation51_spill]] %s4900_s30  ;;  %s461_s1 = sshll.u32 %s3889_s19, 4  ;;  %s462_s1 = int_to_ptr.vmem [resolvable:$true] %s461_s1 }
  0x1f   : > { %4903 = sst [smem:[#allocation52_spill]] %s4902_s18  ;;  %p3073_p5 = pneg %p4050_p3 }
  0x20   : > { %s3890_s20 = smov [#allocation13]   ;;  %s3891_s23 = smov [#allocation16]  }
  0x21   : > { %s482_s21 = sshll.u32 %s3890_s20, 4  ;;  %p4059_p6 = pnand %p3073_p5, %p4045_p1  ;;  %s4063_s21 = int_to_ptr.vmem [resolvable:$true] %s482_s21 }
  0x22   : > { %s4065_s0 = sshll.u32 %s3891_s23, 4  ;;  %s4905_s19 = sld [smem:[#allocation54_spill]]  ;;  %s507_s0 = int_to_ptr.vmem [resolvable:$true] %s4065_s0 }
  0x23   : > { %p4075_p8 = pneg %p4059_p6 }
  0x28   : > { %s3295_s24 = scalar_lea.hbm %s4905_s19, 16 }
  0x29   : > { %p3296_p7 = scmp.ne.s32.totalorder %s4905_s19, %s3295_s24  ;;  %p3302_p11 = scmp.lt.u32.totalorder %s3295_s24, %s4905_s19 }
  0x2b   : > { %p3298_p9 = pnand %p4075_p8, %p3296_p7 }
  0x2d   : > { %p3299_p10 = pneg %p3298_p9 }
  0x2f   : > { %p3304_p12 = pnand %p3302_p11, %p3299_p10 }
  0x31   : > { %3307 = shalt.err (!%p3304_p12)
}
  0x32   : > { %s3308_s17 = scalar_lea.vmem %s462_s1, 16  ;;  %s3315_s25 = scalar_lea.vmem %s462_s1, 32 }
  0x33   : > { %p3309_p13 = scmp.ne.s32.totalorder %s462_s1, %s3308_s17  ;;  %p3316_p5 = scmp.lt.s32.totalorder %s462_s1, %s462_s1 }
  0x34   : > { %p3317_p4 = scmp.lt.s32.totalorder %s3315_s25, %s3308_s17 }
  0x35   : > { %p3311_p0 = pnand %p3309_p13, %p4075_p8 }
  0x36   : > { %p3318_p3 = por %p3317_p4, %p3316_p5 }
  0x37   : > { %p3312_p2 = pneg %p3311_p0 }
  0x39   : > { %p3319_p1 = pnand %p3318_p3, %p3312_p2 }
  0x3b   : > { %3322 = shalt.err (!%p3319_p1)
}
  0x3c   : > { %3076 = dma.hbm_to_vmem [thread:$0]  (!%p4059_p6), %s4905_s19, 16, %s462_s1, [#allocation11]  }
  0x3d   : > { %s4907_s3 = sld [smem:[#allocation56_spill]] }
  0x43   : > { %s3323_s23 = scalar_lea.hbm %s4907_s3, 256 }
  0x44   : > { %p3324_p7 = scmp.ne.s32.totalorder %s4907_s3, %s3323_s23  ;;  %p3330_p1 = scmp.lt.u32.totalorder %s3323_s23, %s4907_s3 }
  0x46   : > { %p3326_p9 = pnand %p3324_p7, %p4075_p8 }
  0x48   : > { %p3327_p4 = pneg %p3326_p9 }
  0x4a   : > { %p3332_p3 = pnand %p3330_p1, %p3327_p4 }
  0x4c   : > { %3335 = shalt.err (!%p3332_p3)
}
  0x4d   : > { %s3336_s1 = scalar_lea.vmem %s4063_s21, 256  ;;  %p3344_p13 = scmp.lt.s32.totalorder %s4063_s21, %s4063_s21 }
  0x4e   : > { %p3337_p10 = scmp.ne.s32.totalorder %s4063_s21, %s3336_s1  ;;  %p3345_p0 = scmp.lt.s32.totalorder %s3336_s1, %s3336_s1 }
  0x50   : > { %p3339_p11 = pnand %p3337_p10, %p4075_p8  ;;  %p3346_p2 = por %p3345_p0, %p3344_p13 }
  0x52   : > { %p3340_p12 = pneg %p3339_p11 }
  0x54   : > { %p3347_p5 = pnand %p3346_p2, %p3340_p12 }
  0x56   : > { %3350 = shalt.err (!%p3347_p5)
}
  0x57   : > { %s3892_s26 = smov 64   ;;  %s3893_s28 = smov 4  }
  0x58   : > { %3082 = dma.hbm_to_vmem [thread:$0]  (!%p4059_p6), %s4907_s3, 256, %s4063_s21, [#allocation14], %s3892_s26, %s3892_s26, %s3893_s28  }
  0x59   : > { %s4908_s5 = sld [smem:[#allocation58_spill]] }
  0x5f   : > { %s3351_s23 = scalar_lea.hbm %s4908_s5, 256 }
  0x60   : > { %p3352_p7 = scmp.ne.s32.totalorder %s4908_s5, %s3351_s23  ;;  %p3358_p1 = scmp.lt.u32.totalorder %s3351_s23, %s4908_s5 }
  0x62   : > { %p3354_p9 = pnand %p3352_p7, %p4075_p8 }
  0x64   : > { %p3355_p4 = pneg %p3354_p9 }
  0x66   : > { %p3360_p3 = pnand %p3358_p1, %p3355_p4 }
  0x68   : > { %3363 = shalt.err (!%p3360_p3)
}
  0x69   : > { %s3364_s27 = scalar_lea.vmem %s507_s0, 256  ;;  %p3372_p13 = scmp.lt.s32.totalorder %s507_s0, %s507_s0 }
  0x6a   : > { %p3365_p10 = scmp.ne.s32.totalorder %s507_s0, %s3364_s27  ;;  %p3373_p0 = scmp.lt.s32.totalorder %s3364_s27, %s3364_s27 }
  0x6c   : > { %p3367_p11 = pnand %p3365_p10, %p4075_p8  ;;  %p3374_p2 = por %p3373_p0, %p3372_p13 }
  0x6e   : > { %p3368_p12 = pneg %p3367_p11 }
  0x70   : > { %p3375_p5 = pnand %p3374_p2, %p3368_p12 }
  0x72   : > { %3378 = shalt.err (!%p3375_p5)
}
  0x73   : > { %3088 = dma.hbm_to_vmem [thread:$0]  (!%p4059_p6), %s4908_s5, 256, %s507_s0, [#allocation17], %s3892_s26, %s3892_s26, %s3893_s28  }
  0x74   : > { %s3894_s18 = smov [#allocation19]   ;;  %s3895_s30 = smov [#allocation22]  }
  0x75   : > { %s530_s24 = sshll.u32 %s3894_s18, 4  ;;  %s554_s23 = sshll.u32 %s3895_s30, 4  ;;  %s531_s24 = int_to_ptr.vmem [resolvable:$true] %s530_s24  ;;  %s555_s23 = int_to_ptr.vmem [resolvable:$true] %s554_s23 }
  0x76   : > { %s3379_s1 = scalar_lea.hbm %s4858_s7, 256 }
  0x77   : > { %p3380_p7 = scmp.ne.s32.totalorder %s4858_s7, %s3379_s1  ;;  %p3386_p1 = scmp.lt.u32.totalorder %s3379_s1, %s4858_s7 }
  0x79   : > { %p3382_p9 = pnand %p3380_p7, %p4075_p8 }
  0x7b   : > { %p3383_p4 = pneg %p3382_p9 }
  0x7d   : > { %p3388_p3 = pnand %p3386_p1, %p3383_p4 }
  0x7f   : > { %3391 = shalt.err (!%p3388_p3)
}
  0x80   : > { %s3392_s0 = scalar_lea.vmem %s531_s24, 256  ;;  %p3400_p13 = scmp.lt.s32.totalorder %s531_s24, %s531_s24 }
  0x81   : > { %p3393_p10 = scmp.ne.s32.totalorder %s531_s24, %s3392_s0  ;;  %p3401_p0 = scmp.lt.s32.totalorder %s3392_s0, %s3392_s0 }
  0x83   : > { %p3395_p11 = pnand %p3393_p10, %p4075_p8  ;;  %p3402_p2 = por %p3401_p0, %p3400_p13 }
  0x85   : > { %p3396_p12 = pneg %p3395_p11 }
  0x87   : > { %p3403_p5 = pnand %p3402_p2, %p3396_p12 }
  0x89   : > { %3406 = shalt.err (!%p3403_p5)
}
  0x8a   : > { %3094 = dma.hbm_to_vmem [thread:$0]  (!%p4059_p6), %s4858_s7, 256, %s531_s24, [#allocation20], %s3892_s26, %s3892_s26, %s3893_s28  }
  0x8b   : > { %s3407_s30 = scalar_lea.hbm %s4860_s9, 256 }
  0x8c   : > { %p3408_p7 = scmp.ne.s32.totalorder %s4860_s9, %s3407_s30  ;;  %p3414_p1 = scmp.lt.u32.totalorder %s3407_s30, %s4860_s9 }
  0x8e   : > { %p3410_p9 = pnand %p3408_p7, %p4075_p8 }
  0x90   : > { %p3411_p4 = pneg %p3410_p9 }
  0x92   : > { %p3416_p3 = pnand %p3414_p1, %p3411_p4 }
  0x94   : > { %3419 = shalt.err (!%p3416_p3)
}
  0x95   : > { %s3420_s21 = scalar_lea.vmem %s555_s23, 256  ;;  %p3428_p13 = scmp.lt.s32.totalorder %s555_s23, %s555_s23 }
  0x96   : > { %p3421_p10 = scmp.ne.s32.totalorder %s555_s23, %s3420_s21  ;;  %p3429_p0 = scmp.lt.s32.totalorder %s3420_s21, %s3420_s21 }
  0x98   : > { %p3423_p11 = pnand %p3421_p10, %p4075_p8  ;;  %p3430_p2 = por %p3429_p0, %p3428_p13 }
  0x9a   : > { %p3424_p12 = pneg %p3423_p11 }
  0x9c   : > { %p3431_p5 = pnand %p3430_p2, %p3424_p12 }
  0x9e   : > { %3434 = shalt.err (!%p3431_p5)
}
  0x9f   : > { %3100 = dma.hbm_to_vmem [thread:$0]  (!%p4059_p6), %s4860_s9, 256, %s555_s23, [#allocation23], %s3892_s26, %s3892_s26, %s3893_s28  }
  0xa0   : > { %s3896_s3 = smov [#allocation25]   ;;  %s3897_s19 = smov [#allocation28]  }
  0xa1   : > { %s579_s29 = sshll.u32 %s3896_s3, 4  ;;  %s600_s18 = sshll.u32 %s3897_s19, 4  ;;  %s580_s29 = int_to_ptr.vmem [resolvable:$true] %s579_s29  ;;  %s601_s18 = int_to_ptr.vmem [resolvable:$true] %s600_s18 }
  0xa2   : > { %s3435_s25 = scalar_lea.hbm %s4862_s11, 16 }
  0xa3   : > { %p3436_p7 = scmp.ne.s32.totalorder %s4862_s11, %s3435_s25  ;;  %p3442_p1 = scmp.lt.u32.totalorder %s3435_s25, %s4862_s11 }
  0xa5   : > { %p3438_p9 = pnand %p3436_p7, %p4075_p8 }
  0xa7   : > { %p3439_p4 = pneg %p3438_p9 }
  0xa9   : > { %p3444_p3 = pnand %p3442_p1, %p3439_p4 }
  0xab   : > { %3447 = shalt.err (!%p3444_p3)
}
  0xac   : > { %s3448_s23 = scalar_lea.vmem %s580_s29, 16  ;;  %s3455_s0 = scalar_lea.vmem %s580_s29, 32 }
  0xad   : > { %p3449_p10 = scmp.ne.s32.totalorder %s580_s29, %s3448_s23  ;;  %p3456_p13 = scmp.lt.s32.totalorder %s580_s29, %s580_s29 }
  0xae   : > { %p3457_p0 = scmp.lt.s32.totalorder %s3455_s0, %s3448_s23 }
  0xaf   : > { %p3451_p11 = pnand %p3449_p10, %p4075_p8 }
  0xb0   : > { %p3458_p2 = por %p3457_p0, %p3456_p13 }
  0xb1   : > { %p3452_p12 = pneg %p3451_p11 }
  0xb3   : > { %p3459_p5 = pnand %p3458_p2, %p3452_p12 }
  0xb5   : > { %3462 = shalt.err (!%p3459_p5)
}
  0xb6   : > { %3106 = dma.hbm_to_vmem [thread:$0]  (!%p4059_p6), %s4862_s11, 16, %s580_s29, [#allocation26]  }
  0xb7   : > { %s3463_s25 = scalar_lea.hbm %s4864_s13, 256 }
  0xb8   : > { %p3464_p7 = scmp.ne.s32.totalorder %s4864_s13, %s3463_s25  ;;  %p3470_p1 = scmp.lt.u32.totalorder %s3463_s25, %s4864_s13 }
  0xba   : > { %p3466_p9 = pnand %p3464_p7, %p4075_p8 }
  0xbc   : > { %p3467_p4 = pneg %p3466_p9 }
  0xbe   : > { %p3472_p3 = pnand %p3470_p1, %p3467_p4 }
  0xc0   : > { %3475 = shalt.err (!%p3472_p3)
}
  0xc1   : > { %s3476_s23 = scalar_lea.vmem %s601_s18, 256  ;;  %p3484_p13 = scmp.lt.s32.totalorder %s601_s18, %s601_s18 }
  0xc2   : > { %p3477_p10 = scmp.ne.s32.totalorder %s601_s18, %s3476_s23  ;;  %p3485_p0 = scmp.lt.s32.totalorder %s3476_s23, %s3476_s23 }
  0xc4   : > { %p3479_p11 = pnand %p3477_p10, %p4075_p8  ;;  %p3486_p2 = por %p3485_p0, %p3484_p13 }
  0xc6   : > { %p3480_p12 = pneg %p3479_p11 }
  0xc8   : > { %p3487_p5 = pnand %p3486_p2, %p3480_p12 }
  0xca   : > { %3490 = shalt.err (!%p3487_p5)
}
  0xcb   : > { %3112 = dma.hbm_to_vmem [thread:$0]  (!%p4059_p6), %s4864_s13, 256, %s601_s18, [#allocation29], %s3892_s26, %s3892_s26, %s3893_s28  }
  0xcc   : > { %s3898_s3 = smov [#allocation31]   ;;  %s3899_s30 = smov [#allocation12]  }
  0xcd   : > { %s624_s19 = sshll.u32 %s3898_s3, 4  ;;  %s472_s17 = sshll.u32 %s3899_s30, 4  ;;  %s625_s19 = int_to_ptr.vmem [resolvable:$true] %s624_s19  ;;  %s473_s17 = int_to_ptr.vmem [resolvable:$true] %s472_s17 }
  0xce   : > { %s3491_s27 = scalar_lea.hbm %s4866_s15, 1024 }
  0xcf   : > { %p3492_p7 = scmp.ne.s32.totalorder %s4866_s15, %s3491_s27  ;;  %p3498_p1 = scmp.lt.u32.totalorder %s3491_s27, %s4866_s15 }
  0xd1   : > { %p3494_p9 = pnand %p3492_p7, %p4075_p8 }
  0xd3   : > { %p3495_p4 = pneg %p3494_p9 }
  0xd5   : > { %p3500_p3 = pnand %p3498_p1, %p3495_p4 }
  0xd7   : > { %3503 = shalt.err (!%p3500_p3)
}
  0xd8   : > { %s3504_s18 = scalar_lea.vmem %s625_s19, 1024  ;;  %p3512_p13 = scmp.lt.s32.totalorder %s625_s19, %s625_s19 }
  0xd9   : > { %p3505_p10 = scmp.ne.s32.totalorder %s625_s19, %s3504_s18  ;;  %p3513_p0 = scmp.lt.s32.totalorder %s3504_s18, %s3504_s18 }
  0xdb   : > { %p3507_p11 = pnand %p3505_p10, %p4075_p8  ;;  %p3514_p2 = por %p3513_p0, %p3512_p13 }
  0xdd   : > { %p3508_p12 = pneg %p3507_p11 }
  0xdf   : > { %p3515_p5 = pnand %p3514_p2, %p3508_p12 }
  0xe1   : > { %3518 = shalt.err (!%p3515_p5)
}
  0xe2   : > { %3118 = dma.hbm_to_vmem [thread:$0]  (!%p4059_p6), %s4866_s15, 1024, %s625_s19, [#allocation32], %s3892_s26, %s3892_s26, %s3893_s28  }
  0xe3   : > { %s4909_s2 = sld [smem:[#allocation55_spill]] }
  0xe9   : > { %s3519_s1 = scalar_lea.hbm %s4909_s2, 16 }
  0xea   : > { %p3520_p7 = scmp.ne.s32.totalorder %s4909_s2, %s3519_s1  ;;  %p3526_p1 = scmp.lt.u32.totalorder %s3519_s1, %s4909_s2 }
  0xec   : > { %p3522_p9 = pnand %p3520_p7, %p4075_p8 }
  0xee   : > { %p3523_p4 = pneg %p3522_p9 }
  0xf0   : > { %p3528_p3 = pnand %p3526_p1, %p3523_p4 }
  0xf2   : > { %3531 = shalt.err (!%p3528_p3)
}
  0xf3   : > { %s3532_s29 = scalar_lea.vmem %s473_s17, 16  ;;  %s3539_s26 = scalar_lea.vmem %s473_s17, 32 }
  0xf4   : > { %p3533_p10 = scmp.ne.s32.totalorder %s473_s17, %s3532_s29  ;;  %p3540_p13 = scmp.lt.s32.totalorder %s473_s17, %s473_s17 }
  0xf5   : > { %p3541_p0 = scmp.lt.s32.totalorder %s3539_s26, %s3532_s29 }
  0xf6   : > { %p3535_p11 = pnand %p3533_p10, %p4075_p8 }
  0xf7   : > { %p3542_p2 = por %p3541_p0, %p3540_p13 }
  0xf8   : > { %p3536_p12 = pneg %p3535_p11 }
  0xfa   : > { %p3543_p5 = pnand %p3542_p2, %p3536_p12 }
  0xfc   : > { %3546 = shalt.err (!%p3543_p5)
}
  0xfd   : > { %3079 = dma.hbm_to_vmem [thread:$0]  (!%p4059_p6), %s4909_s2, 16, %s473_s17, [#allocation11]  }
  0xfe   : > { %s3900_s18 = smov [#allocation15]   ;;  %s3901_s3 = smov [#allocation18]  }
  0xff   : > { %s496_s0 = sshll.u32 %s3900_s18, 4  ;;  %s520_s30 = sshll.u32 %s3901_s3, 4  ;;  %s497_s0 = int_to_ptr.vmem [resolvable:$true] %s496_s0  ;;  %s521_s30 = int_to_ptr.vmem [resolvable:$true] %s520_s30 }
 0x100   : > { %s4910_s4 = sld [smem:[#allocation57_spill]] }
 0x106   : > { %s3547_s27 = scalar_lea.hbm %s4910_s4, 16 }
 0x107   : > { %p3548_p7 = scmp.ne.s32.totalorder %s4910_s4, %s3547_s27  ;;  %p3554_p1 = scmp.lt.u32.totalorder %s3547_s27, %s4910_s4 }
 0x109   : > { %p3550_p9 = pnand %p3548_p7, %p4075_p8 }
 0x10b   : > { %p3551_p4 = pneg %p3550_p9 }
 0x10d   : > { %p3556_p3 = pnand %p3554_p1, %p3551_p4 }
 0x10f   : > { %3559 = shalt.err (!%p3556_p3)
}
 0x110   : > { %s3560_s17 = scalar_lea.vmem %s497_s0, 16  ;;  %s3567_s26 = scalar_lea.vmem %s497_s0, 32 }
 0x111   : > { %p3561_p10 = scmp.ne.s32.totalorder %s497_s0, %s3560_s17  ;;  %p3568_p13 = scmp.lt.s32.totalorder %s497_s0, %s497_s0 }
 0x112   : > { %p3569_p0 = scmp.lt.s32.totalorder %s3567_s26, %s3560_s17 }
 0x113   : > { %p3563_p11 = pnand %p3561_p10, %p4075_p8 }
 0x114   : > { %p3570_p2 = por %p3569_p0, %p3568_p13 }
 0x115   : > { %p3564_p12 = pneg %p3563_p11 }
 0x117   : > { %p3571_p5 = pnand %p3570_p2, %p3564_p12 }
 0x119   : > { %3574 = shalt.err (!%p3571_p5)
}
 0x11a   : > { %3085 = dma.hbm_to_vmem [thread:$0]  (!%p4059_p6), %s4910_s4, 16, %s497_s0, [#allocation14]  }
 0x11b   : > { %s3575_s25 = scalar_lea.hbm %s4857_s6, 16 }
 0x11c   : > { %p3576_p7 = scmp.ne.s32.totalorder %s4857_s6, %s3575_s25  ;;  %p3582_p1 = scmp.lt.u32.totalorder %s3575_s25, %s4857_s6 }
 0x11e   : > { %p3578_p9 = pnand %p3576_p7, %p4075_p8 }
 0x120   : > { %p3579_p4 = pneg %p3578_p9 }
 0x122   : > { %p3584_p3 = pnand %p3582_p1, %p3579_p4 }
 0x124   : > { %3587 = shalt.err (!%p3584_p3)
}
 0x125   : > { %s3588_s23 = scalar_lea.vmem %s521_s30, 16  ;;  %s3595_s0 = scalar_lea.vmem %s521_s30, 32 }
 0x126   : > { %p3589_p10 = scmp.ne.s32.totalorder %s521_s30, %s3588_s23  ;;  %p3596_p13 = scmp.lt.s32.totalorder %s521_s30, %s521_s30 }
 0x127   : > { %p3597_p0 = scmp.lt.s32.totalorder %s3595_s0, %s3588_s23 }
 0x128   : > { %p3591_p11 = pnand %p3589_p10, %p4075_p8 }
 0x129   : > { %p3598_p2 = por %p3597_p0, %p3596_p13 }
 0x12a   : > { %p3592_p12 = pneg %p3591_p11 }
 0x12c   : > { %p3599_p5 = pnand %p3598_p2, %p3592_p12 }
 0x12e   : > { %3602 = shalt.err (!%p3599_p5)
}
 0x12f   : > { %3091 = dma.hbm_to_vmem [thread:$0]  (!%p4059_p6), %s4857_s6, 16, %s521_s30, [#allocation17]  }
 0x130   : > { %s3902_s26 = smov [#allocation21]   ;;  %s3903_s19 = smov [#allocation24]  }
 0x131   : > { %s544_s28 = sshll.u32 %s3902_s26, 4  ;;  %s568_s18 = sshll.u32 %s3903_s19, 4  ;;  %s545_s28 = int_to_ptr.vmem [resolvable:$true] %s544_s28  ;;  %s569_s18 = int_to_ptr.vmem [resolvable:$true] %s568_s18 }
 0x132   : > { %s3603_s1 = scalar_lea.hbm %s4859_s8, 16 }
 0x133   : > { %p3604_p7 = scmp.ne.s32.totalorder %s4859_s8, %s3603_s1  ;;  %p3610_p1 = scmp.lt.u32.totalorder %s3603_s1, %s4859_s8 }
 0x135   : > { %p3606_p9 = pnand %p3604_p7, %p4075_p8 }
 0x137   : > { %p3607_p4 = pneg %p3606_p9 }
 0x139   : > { %p3612_p3 = pnand %p3610_p1, %p3607_p4 }
 0x13b   : > { %3615 = shalt.err (!%p3612_p3)
}
 0x13c   : > { %s3616_s30 = scalar_lea.vmem %s545_s28, 16  ;;  %s3623_s0 = scalar_lea.vmem %s545_s28, 32 }
 0x13d   : > { %p3617_p10 = scmp.ne.s32.totalorder %s545_s28, %s3616_s30  ;;  %p3624_p13 = scmp.lt.s32.totalorder %s545_s28, %s545_s28 }
 0x13e   : > { %p3625_p0 = scmp.lt.s32.totalorder %s3623_s0, %s3616_s30 }
 0x13f   : > { %p3619_p11 = pnand %p3617_p10, %p4075_p8 }
 0x140   : > { %p3626_p2 = por %p3625_p0, %p3624_p13 }
 0x141   : > { %p3620_p12 = pneg %p3619_p11 }
 0x143   : > { %p3627_p5 = pnand %p3626_p2, %p3620_p12 }
 0x145   : > { %3630 = shalt.err (!%p3627_p5)
}
 0x146   : > { %3097 = dma.hbm_to_vmem [thread:$0]  (!%p4059_p6), %s4859_s8, 16, %s545_s28, [#allocation20]  }
 0x147   : > { %s3631_s3 = scalar_lea.hbm %s4861_s10, 16 }
 0x148   : > { %p3632_p7 = scmp.ne.s32.totalorder %s4861_s10, %s3631_s3  ;;  %p3638_p1 = scmp.lt.u32.totalorder %s3631_s3, %s4861_s10 }
 0x14a   : > { %p3634_p9 = pnand %p3632_p7, %p4075_p8 }
 0x14c   : > { %p3635_p4 = pneg %p3634_p9 }
 0x14e   : > { %p3640_p3 = pnand %p3638_p1, %p3635_p4 }
 0x150   : > { %3643 = shalt.err (!%p3640_p3)
}
 0x151   : > { %s3644_s24 = scalar_lea.vmem %s569_s18, 16  ;;  %s3651_s28 = scalar_lea.vmem %s569_s18, 32 }
 0x152   : > { %p3645_p10 = scmp.ne.s32.totalorder %s569_s18, %s3644_s24  ;;  %p3652_p13 = scmp.lt.s32.totalorder %s569_s18, %s569_s18 }
 0x153   : > { %p3653_p0 = scmp.lt.s32.totalorder %s3651_s28, %s3644_s24 }
 0x154   : > { %p3647_p11 = pnand %p3645_p10, %p4075_p8 }
 0x155   : > { %p3654_p2 = por %p3653_p0, %p3652_p13 }
 0x156   : > { %p3648_p12 = pneg %p3647_p11 }
 0x158   : > { %p3655_p5 = pnand %p3654_p2, %p3648_p12 }
 0x15a   : > { %3658 = shalt.err (!%p3655_p5)
}
 0x15b   : > { %3103 = dma.hbm_to_vmem [thread:$0]  (!%p4059_p6), %s4861_s10, 16, %s569_s18, [#allocation23]  }
 0x15c   : > { %s3904_s0 = smov [#allocation27]   ;;  %s3905_s17 = smov [#allocation30]  }
 0x15d   : > { %s590_s29 = sshll.u32 %s3904_s0, 4  ;;  %s614_s26 = sshll.u32 %s3905_s17, 4  ;;  %s591_s29 = int_to_ptr.vmem [resolvable:$true] %s590_s29  ;;  %s615_s26 = int_to_ptr.vmem [resolvable:$true] %s614_s26 }
 0x15e   : > { %s3659_s25 = scalar_lea.hbm %s4863_s12, 16 }
 0x15f   : > { %p3660_p7 = scmp.ne.s32.totalorder %s4863_s12, %s3659_s25  ;;  %p3666_p1 = scmp.lt.u32.totalorder %s3659_s25, %s4863_s12 }
 0x161   : > { %p3662_p9 = pnand %p3660_p7, %p4075_p8 }
 0x163   : > { %p3663_p4 = pneg %p3662_p9 }
 0x165   : > { %p3668_p3 = pnand %p3666_p1, %p3663_p4 }
 0x167   : > { %3671 = shalt.err (!%p3668_p3)
}
 0x168   : > { %s3672_s18 = scalar_lea.vmem %s591_s29, 16  ;;  %s3679_s28 = scalar_lea.vmem %s591_s29, 32 }
 0x169   : > { %p3673_p10 = scmp.ne.s32.totalorder %s591_s29, %s3672_s18  ;;  %p3680_p13 = scmp.lt.s32.totalorder %s591_s29, %s591_s29 }
 0x16a   : > { %p3681_p0 = scmp.lt.s32.totalorder %s3679_s28, %s3672_s18 }
 0x16b   : > { %p3675_p11 = pnand %p3673_p10, %p4075_p8 }
 0x16c   : > { %p3682_p2 = por %p3681_p0, %p3680_p13 }
 0x16d   : > { %p3676_p12 = pneg %p3675_p11 }
 0x16f   : > { %p3683_p5 = pnand %p3682_p2, %p3676_p12 }
 0x171   : > { %3686 = shalt.err (!%p3683_p5)
}
 0x172   : > { %3109 = dma.hbm_to_vmem [thread:$0]  (!%p4059_p6), %s4863_s12, 16, %s591_s29, [#allocation26]  }
 0x173   : > { %s3687_s19 = scalar_lea.hbm %s4865_s14, 16 }
 0x174   : > { %p3688_p7 = scmp.ne.s32.totalorder %s4865_s14, %s3687_s19  ;;  %p3694_p1 = scmp.lt.u32.totalorder %s3687_s19, %s4865_s14 }
 0x176   : > { %p3690_p9 = pnand %p3688_p7, %p4075_p8 }
 0x178   : > { %p3691_p4 = pneg %p3690_p9 }
 0x17a   : > { %p3696_p3 = pnand %p3694_p1, %p3691_p4 }
 0x17c   : > { %3699 = shalt.err (!%p3696_p3)
}
 0x17d   : > { %s3700_s21 = scalar_lea.vmem %s615_s26, 16  ;;  %s3707_s29 = scalar_lea.vmem %s615_s26, 32 }
 0x17e   : > { %p3701_p10 = scmp.ne.s32.totalorder %s615_s26, %s3700_s21  ;;  %p3708_p13 = scmp.lt.s32.totalorder %s615_s26, %s615_s26 }
 0x17f   : > { %p3709_p0 = scmp.lt.s32.totalorder %s3707_s29, %s3700_s21 }
 0x180   : > { %p3703_p11 = pnand %p3701_p10, %p4075_p8 }
 0x181   : > { %p3710_p2 = por %p3709_p0, %p3708_p13 }
 0x182   : > { %p3704_p12 = pneg %p3703_p11 }
 0x184   : > { %p3711_p5 = pnand %p3710_p2, %p3704_p12 }
 0x186   : > { %3714 = shalt.err (!%p3711_p5)
}
 0x187   : > { %3115 = dma.hbm_to_vmem [thread:$0]  (!%p4059_p6), %s4865_s14, 16, %s615_s26, [#allocation29]  }
 0x188   : > { %s3906_s28 = smov [#allocation33]   ;;  %s3715_s17 = scalar_lea.hbm %s4867_s16, 16 }
 0x189   : > { %s638_s23 = sshll.u32 %s3906_s28, 4  ;;  %p3716_p7 = scmp.ne.s32.totalorder %s4867_s16, %s3715_s17  ;;  %s639_s23 = int_to_ptr.vmem [resolvable:$true] %s638_s23 }
 0x18a   : > { %p3722_p1 = scmp.lt.u32.totalorder %s3715_s17, %s4867_s16 }
 0x18b   : > { %p3718_p9 = pnand %p3716_p7, %p4075_p8 }
 0x18d   : > { %p3719_p4 = pneg %p3718_p9 }
 0x18f   : > { %p3724_p3 = pnand %p3722_p1, %p3719_p4 }
 0x191   : > { %3727 = shalt.err (!%p3724_p3)
}
 0x192   : > { %s3728_s26 = scalar_lea.vmem %s639_s23, 16  ;;  %s3735_s27 = scalar_lea.vmem %s639_s23, 32 }
 0x193   : > { %p3729_p10 = scmp.ne.s32.totalorder %s639_s23, %s3728_s26  ;;  %p3736_p13 = scmp.lt.s32.totalorder %s639_s23, %s639_s23 }
 0x194   : > { %p3737_p0 = scmp.lt.s32.totalorder %s3735_s27, %s3728_s26 }
 0x195   : > { %p3731_p11 = pnand %p3729_p10, %p4075_p8 }
 0x196   : > { %p3738_p2 = por %p3737_p0, %p3736_p13 }
 0x197   : > { %p3732_p12 = pneg %p3731_p11 }
 0x199   : > { %p3739_p5 = pnand %p3738_p2, %p3732_p12 }
 0x19b   : > { %3742 = shalt.err (!%p3739_p5)
}
 0x19c   : > { %s4911_s24 = sld [smem:[#allocation50_spill]]  ;;  %s4912_s18 = sld [smem:[#allocation49_spill]] }
 0x19d   : > { %s4913_s28 = sld [smem:[#allocation47_spill]]  ;;  %s4914_s30 = sld [smem:[#allocation46_spill]] }
 0x19e   : > { %s4915_s20 = sld [smem:[#allocation45_spill]]  ;;  %s4916_s0 = sld [smem:[#allocation51_spill]] }
 0x19f   : > { %3121 = dma.hbm_to_vmem [thread:$0]  (!%p4059_p6), %s4867_s16, 16, %s639_s23, [#allocation32]  }
 0x1a2   : > { %s2764_s17 = sadd.s32 4294967294, %s4911_s24   ;;  %s53_s19 = sadd.s32 1, %s4912_s18 }
 0x1a3   : > { %p55_p8 = scmp.ge.s32.totalorder %s53_s19, 2  ;;  %s60_s22 = sadd.s32 1, %s4913_s28 }
 0x1a4   : > { %p67_p7 = scmp.ne.s32.totalorder %s4913_s28, %s4914_s30  ;;  %p68_p9 = scmp.eq.s32.totalorder %s4911_s24, 0 }
 0x1a5   : > { %s4945_s19 = smov (%p55_p8, %s53_s19), 0  ;;  %p73_p1 = scmp.ne.s32.totalorder %s4914_s30, %s4915_s20 }
 0x1a6   : > { %p4393_p4 = por %p68_p9, %p67_p7  ;;  %s57_s23 = ssub.s32 %s4912_s18, %s4945_s19 }
 0x1a7   : > { %s4918_s25 = sadd.s32 4294967295, %s4911_s24   ;;  %p58_p3 = scmp.eq.s32.totalorder %s57_s23, 0 }
 0x1a8   : > { %p435_p6 = scmp.eq.s32.totalorder %s4918_s25, 1  ;;  %p4919_p10 = scmp.ne.s32.totalorder %s4916_s0, 0 }
 0x1a9   : > { %p441_p13 = scmp.eq.s32.totalorder %s2764_s17, 1  ;;  %p3146_p2 = scmp.lt.s32.totalorder %s4911_s24, 2 }
 0x1aa   : > { %p4405_p11 = por %p4919_p10, %p73_p1  ;;  %p4409_p12 = por %p435_p6, %p67_p7 }
 0x1ab   : > { %s4414_s27 = scalar_select %p58_p3, %s4913_s28, %s60_s22  }
 0x1ac   : > { %s4921_s26 = scalar_select %p4409_p12, 1, 0 }
 0x1ad   : > { %p4416_p0 = por %p441_p13, %p73_p1  ;;  %s649_s29 = sand.u32 1, %s4913_s28  }
 0x1ae   : > { %s2784_s30 = sshll.u32 %s4912_s18, 7  ;;  %s2783_s20 = sshll.u32 %s649_s29, 3 }
 0x1af   : > { %s4922_s21 = scalar_select %p4416_p0, 1, 0 }
 0x1b0   : > { %s4923_s25 = sld [smem:[#allocation53_spill]]  ;;  %s653_s17 = scalar_lea.vmem [#allocation7], %s2783_s20 }
 0x1b1   : > { %s660_s22 = sshll.u32 %s653_s17, 4  ;;  %p4430_p5 = pnand %p3146_p2, %p4393_p4  ;;  %s4434_s22 = int_to_ptr.vmem [resolvable:$true] %s660_s22 }
 0x1b2   : > { %s650_s24 = scalar_lea.sflag [#allocation8], %s649_s29 }
 0x1b3   : > { %p3745_p7 = pneg %p4430_p5 }
 0x1b6   : > { %s4924_s2 = smov %s4923_s25  ;;  %s4426_s4 = scalar_lea.hbm %s4923_s25, %s2784_s30 }
 0x1b7   : > { %s3743_s18 = scalar_lea.hbm %s4426_s4, 128  ;;  %s3748_s3 = scalar_lea.hbm %s4924_s2, 256 }
 0x1b8   : > { %p3744_p8 = scmp.ne.s32.totalorder %s4426_s4, %s3743_s18  ;;  %p3749_p4 = scmp.lt.u32.totalorder %s4426_s4, %s4924_s2 }
 0x1b9   : > { %p3750_p6 = scmp.lt.u32.totalorder %s3748_s3, %s3743_s18  ;;  %p3752_p10 = scmp.lt.u32.totalorder %s3743_s18, %s4426_s4 }
 0x1ba   : > { %p3746_p9 = pnand %p3745_p7, %p3744_p8 }
 0x1bb   : > { %p3751_p3 = por %p3750_p6, %p3749_p4 }
 0x1bc   : > { %p3747_p1 = pneg %p3746_p9 }
 0x1bd   : > { %p3753_p13 = por %p3752_p10, %p3751_p3 }
 0x1bf   : > { %p3754_p2 = pnand %p3753_p13, %p3747_p1 }
 0x1c1   : > { %3757 = shalt.err (!%p3754_p2)
}
 0x1c2   : > { %s3758_s29 = scalar_lea.vmem %s4434_s22, 128  ;;  %s3907_s23 = smov [#allocation7]  }
 0x1c3   : > { %p3759_p8 = scmp.ne.s32.totalorder %s4434_s22, %s3758_s29  ;;  %s3763_s25 = sshll.u32 %s3907_s23, 4  ;;  %s3764_s25 = int_to_ptr.vmem [resolvable:$false] %s3763_s25 }
 0x1c4   : > { %s3765_s17 = scalar_lea.vmem %s3764_s25, 256  ;;  %p3766_p12 = scmp.lt.s32.totalorder %s4434_s22, %s3764_s25 }
 0x1c5   : > { %p3761_p9 = pnand %p3759_p8, %p3745_p7  ;;  %p3767_p4 = scmp.lt.s32.totalorder %s3765_s17, %s3758_s29 }
 0x1c7   : > { %p3762_p0 = pneg %p3761_p9  ;;  %p3768_p6 = por %p3767_p4, %p3766_p12 }
 0x1c9   : > { %p3769_p3 = pnand %p3768_p6, %p3762_p0 }
 0x1cb   : > { %3772 = shalt.err (!%p3769_p3)
}
 0x1cc   : > { %3125 = dma.hbm_to_vmem [thread:$0]  (!%p4430_p5), %s4426_s4, 128, %s4434_s22, %s650_s24  }
 0x1cd   : > { %s4926_s18 = sld [smem:[#allocation52_spill]] }
 0x1d3   : > { %p4927_p1 = scmp.ne.s32.totalorder %s4926_s18, 0 }
 0x1d4   : > { %s4928_s28 = sld [smem:[#allocation46_spill]] (!%p4927_p1) }
 0x1d5   : > { %669 = sbr.rel (%p4927_p1) target bundleno = 3129 (0xc39), region = 88 }
 0x1da   : > { %s4464_s30 = sand.u32 (!%p4927_p1), 1, %s4928_s28  }
 0x1db   : > { %s2786_s3 = sshll.u32 (!%p4927_p1), %s4464_s30, 3  ;;  %s672_s20 = scalar_lea.sflag (!%p4927_p1), [#allocation8], %s4464_s30 }
 0x1dc   : > { %s4470_s0 = scalar_lea.vmem [#allocation7], %s2786_s3 }
 0x1dd   : > { %3826 = dma.done.wait (%p4405_p11), %s672_s20, 128  }
 0x1de   : > { %3828 = vsyncadd (%p4405_p11), %s672_s20, 4294967168  ;;  %s4929_s4 = sld [smem:[#allocation51_spill]] }
 0x1e4   : > { %p4930_p12 = scmp.ne.s32.totalorder %s4929_s4, 0 }
 0x1e6   : > { %3830 = dma.done.wait (%p4930_p12), [#allocation11], 32  }
 0x1e7   : > { %3832 = vsyncadd (%p4930_p12), [#allocation11], 4294967264 }
 0x1e8   : > { %3834 = dma.done.wait (%p4930_p12), [#allocation14], 272  }
 0x1e9   : > { %3836 = vsyncadd (%p4930_p12), [#allocation14], 4294967024 }
 0x1ea   : > { %3838 = dma.done.wait (%p4930_p12), [#allocation17], 272  }
 0x1eb   : > { %3840 = vsyncadd (%p4930_p12), [#allocation17], 4294967024 }
 0x1ec   : > { %3842 = dma.done.wait (%p4930_p12), [#allocation20], 272  }
 0x1ed   : > { %3844 = vsyncadd (%p4930_p12), [#allocation20], 4294967024 }
 0x1ee   : > { %3846 = dma.done.wait (%p4930_p12), [#allocation23], 272  }
 0x1ef   : > { %3848 = vsyncadd (%p4930_p12), [#allocation23], 4294967024 }
 0x1f0   : > { %3850 = dma.done.wait (%p4930_p12), [#allocation26], 32  }
 0x1f1   : > { %3852 = vsyncadd (%p4930_p12), [#allocation26], 4294967264 }
 0x1f2   : > { %3854 = dma.done.wait (%p4930_p12), [#allocation29], 272  }
 0x1f3   : > { %3856 = vsyncadd (%p4930_p12), [#allocation29], 4294967024 }
 0x1f4   : > { %3858 = dma.done.wait (%p4930_p12), [#allocation32], 1040  }
 0x1f5   : > { %3860 = vsyncadd (%p4930_p12), [#allocation32], 4294966256  ;;  %vm798_vm0 = vcmask 261120   ;;  %v797_v0 = vld [vmem:[%s4470_s0] sm:$0xff]  ;;  %v3908_v13 = vmov 0.0   ;;  %vm3909_vm1 = vmmov 0   ;;  %v814_v54 = vlaneseq }
 0x1f6   : > { %v799_v1 = vsel %vm798_vm0, %v797_v0, 0.0  ;;  %v3244_v12 = vld [vmem:[#allocation16] sm:$0xff]   ;;  %2897 = vmatprep.subr.bf16.mxu0 %v3908_v13  ;;  %2921 = vmatprep.subr.bf16.mxu1 %v3908_v13  ;;  %v3245_v14 = vld [vmem:[#allocation16 + $0x8] sm:$0xff]   ;;  %v3246_v27 = vld [vmem:[#allocation19] sm:$0xff]   ;;  %s3910_s5 = smov 112   ;;  %s3911_s1 = smov 120  }
 0x1f7   : > { %800 = vadd.xlane.f32.xlu0 %v799_v1  ;;  %2898 = vmatpush3.bf16.msra.mxu0 %v3244_v12  ;;  %v2855_v22 = vld [vmem:[#allocation10] ss:$0 sm:$0xff]  ;;  %v2856_v24 = vld [vmem:[#allocation12] ss:$0 sm:$0xff]  ;;  %v3247_v30 = vld [vmem:[#allocation19 + $0x8] sm:$0xff]   ;;  %s3912_s22 = smov 104  }
 0x1f8   : > { %2899 = vmatprep.subr.bf16.mxu0 %v3908_v13  ;;  %2901 = vmatprep.mubr.msk.bf16.mxu0 %vm3909_vm1, %v3908_v13  ;;  %v3248_v32 = vld [vmem:[#allocation13] sm:$0xff]   ;;  %v3249_v34 = vld [vmem:[#allocation13 + $0x8] sm:$0xff]   ;;  %v2816_v47 = vld [vmem:[#allocation15] ss:$0 sm:$0xff]  ;;  %vm1525_vm2 = vcmask 64512   ;;  %v815_v59 = vshrl.u32 %v814_v54, 7 }
 0x1f9   : > { %2923 = vmatprep.mubr.msk.bf16.mxu1 %vm3909_vm1, %v3908_v13  ;;  %v2804_v37 = vld [vmem:[#allocation18] ss:$0 sm:$0xff]  ;;  %1526 = vst.msk [vmem:[#allocation6] sm:$0xff] %vm1525_vm2, %v3908_v13  ;;  %1527 = vst.msk [vmem:[#allocation6 + $0x8] sm:$0xff] %vm1525_vm2, %v3908_v13  ;;  %v3913_v55 = vmov 1983009808  }
 0x1fa   : > { %1528 = vst.msk [vmem:[#allocation6 + $0x10] sm:$0xff] %vm1525_vm2, %v3908_v13  ;;  %1529 = vst.msk [vmem:[#allocation6 + $0x18] sm:$0xff] %vm1525_vm2, %v3908_v13  ;;  %v970_v56 = vunpack.c.l.s4 %v3913_v55  ;;  %v3914_v57 = vmov 1934713408   ;;  %vm1107_vm3 = vcmask 60416   ;;  %vm1516_vm4 = vcmask 7168  }
 0x1fb   : > { %1271 = vadd.xlane.f32.xlu0 %v799_v1  ;;  %2900 = vmatpush3.bf16.msra.mxu0 %v3245_v14  ;;  %v1002_v58 = vunpack.c.l.s4 %v3914_v57  ;;  %1521 = vst.msk [vmem:[#allocation5] sm:$0xff] %vm1516_vm4, %v3908_v13  ;;  %1522 = vst.msk [vmem:[#allocation5 + $0x8] sm:$0xff] %vm1516_vm4, %v3908_v13  ;;  %vm1821_vm5 = vcmask 1043456   ;;  %s3917_s24 = smov 16   ;;  %s3918_s29 = smov 8   ;;  %vm2228_vm6 = vcmask 130048  }
 0x1fc   : > { %2905 = vmatprep.subr.bf16.mxu0 %v3908_v13  ;;  %v971_v60 = vunpack.c.0.s8 %v970_v56  ;;  %1523 = vst.msk [vmem:[#allocation5 + $0x10] sm:$0xff] %vm1516_vm4, %v3908_v13  ;;  %1524 = vst.msk [vmem:[#allocation5 + $0x18] sm:$0xff] %vm1516_vm4, %v3908_v13  ;;  %s3919_s23 = smov 24   ;;  %vm2230_vm7 = vcmask 195584   ;;  %s4931_s25 = sld [smem:[#allocation48_spill]] }
 0x1fd   : > { %v1003_v62 = vunpack.c.0.s8 %v1002_v58  ;;  %s789_s18 = scalar_lea.vmem [#allocation34], %s2786_s3  ;;  %s4932_s4 = sld [smem:[#allocation59_spill]] }
 0x1fe   : > { %v4554_v63 = vsub.s32 %v971_v60, %v815_v59  ;;  %s2530_s28 = sshll.u32 %s789_s18, 4  ;;  %s2516_s3 = scalar_lea.sflag [#allocation9], %s4464_s30  ;;  %s4803_s28 = int_to_ptr.vmem [resolvable:$true] %s2530_s28 }
 0x1ff   : > { %p4933_p0 = scmp.ne.s32.totalorder %s4921_s26, 0 }
 0x202   : > { %s2852_s17 = sshll.u32 %s4931_s25, 7 }
 0x284   : > { %v801_v2 = vpop.xlane.xlu0 %800 }
 0x285   : > { %v803_v3 = vmul.f32 0.03125, %v801_v2 }
 0x287   : > { %v804_v4 = vsub.f32 %v797_v0, %v803_v3 }
 0x288   : > { %v1272_v5 = vpop.xlane.xlu0 %1271 }
 0x289   : > { %v1274_v6 = vmul.f32 0.03125, %v1272_v5  ;;  %v805_v7 = vmul.f32 %v804_v4, %v804_v4 }
 0x28b   : > { %v1275_v8 = vsub.f32 %v797_v0, %v1274_v6  ;;  %v806_v9 = vsel %vm798_vm0, %v805_v7, 0.0  ;;  %v4556_v6 = vsub.s32 %v1003_v62, %v815_v59 }
 0x28c   : > { %807 = vadd.xlane.f32.xlu1 %v806_v9 }
 0x28d   : > { %v1276_v10 = vmul.f32 %v1275_v8, %v1275_v8 }
 0x28f   : > { %v1277_v11 = vsel %vm798_vm0, %v1276_v10, 0.0 }
 0x290   : > { %1278 = vadd.xlane.f32.xlu1 %v1277_v11 }
 0x319   : > { %v808_v15 = vpop.xlane.xlu1 %807 }
 0x31a   : > { %v809_v16 = vmul.f32 0.03125, %v808_v15 }
 0x31c   : > { %v810_v17 = vadd.f32 1e-05, %v809_v16 }
 0x31d   : > { %v1279_v18 = vpop.xlane.xlu1 %1278 }
 0x31e   : > { %3262 = vrsqrt.f32 %v810_v17  ;;  %v1280_v19 = vmul.f32 0.03125, %v1279_v18 }
 0x320   : > { %v1281_v20 = vadd.f32 1e-05, %v1280_v19 }
 0x322   : > { %3264 = vrsqrt.f32 %v1281_v20 }
 0x328   : > { %v3263_v21 = vpop.eup %3262 }
 0x329   : > { %v812_v23 = vmul.f32 %v3263_v21, %v804_v4 }
 0x32b   : > { %v819_v25 = vmul.f32 %v2855_v22, %v812_v23 }
 0x32c   : > { %v3265_v29 = vpop.eup %3264 }
 0x32d   : > { %v826_v26 = vadd.f32 %v2856_v24, %v819_v25  ;;  %v1283_v31 = vmul.f32 %v3265_v29, %v1275_v8 }
 0x32f   : > { %v827_v28 = vpack.c.bf16 %v826_v26, %v826_v26  ;;  %v1290_v33 = vmul.f32 %v2855_v22, %v1283_v31 }
 0x331   : > { %2902 = vmatmul.mubr.msk.bf16.vlgmr.msra.gmra.mrb[0].mxu0 %vm798_vm0, %v827_v28  ;;  %v1297_v35 = vadd.f32 %v2856_v24, %v1290_v33 }
 0x332   : > { %2906 = vmatpush3.bf16.msra.mxu0 %v3246_v27  ;;  %2909 = vmatprep.mubr.msk.bf16.mxu0 %vm3909_vm1, %v3908_v13 }
 0x333   : > { %2907 = vmatprep.subr.bf16.mxu0 %v3908_v13  ;;  %v1298_v36 = vpack.c.bf16 %v1297_v35, %v1297_v35 }
 0x336   : > { %2908 = vmatpush3.bf16.msra.mxu0 %v3247_v30 }
 0x337   : > { %2913 = vmatprep.subr.bf16.mxu0 %v3908_v13 }
 0x339   : > { %2910 = vmatmul.mubr.msk.bf16.vlgmr.msra.gmra.mrb[4].mxu0 %vm798_vm0, %v827_v28 }
 0x33a   : > { %2914 = vmatpush3.bf16.msra.mxu0 %v3248_v32  ;;  %2917 = vmatprep.mubr.msk.bf16.mxu0 %vm3909_vm1, %v3908_v13 }
 0x33b   : > { %2915 = vmatprep.subr.bf16.mxu0 %v3908_v13 }
 0x33e   : > { %2916 = vmatpush3.bf16.msra.mxu0 %v3249_v34 }
 0x33f   : > { %2927 = vmatprep.subr.bf16.mxu0 %v3908_v13 }
 0x341   : > { %2918 = vmatmul.mubr.msk.bf16.vlgmr.msra.gmra.mrb[8].mxu0 %vm798_vm0, %v1298_v36 }
 0x342   : > { %2929 = vmatprep.mubr.msk.bf16.mxu0 %vm3909_vm1, %v3908_v13 }
 0x404   : > { %v888_v38 = vpop.f32.mrb[0].mxu0 }
 0x405   : > { %v889_v39 = vadd.f32 %v2804_v37, %v888_v38  ;;  %v2903_v40 = vpop.f32.mrb[1].mxu0 }
 0x406   : > { %v891_v41 = vpop.f32.mrb[2].mxu0 }
 0x407   : > { %961 = vrot.lane.b32.xlu1 %v889_v39, %s3910_s5  ;;  %958 = vrot.lane.b32.xlu0 %v889_v39, %s3911_s1  ;;  %v2904_v42 = vpop.f32.mrb[3].mxu0 }
 0x40b   : > { %964 = vrot.lane.b32.xlu1 %v889_v39, %s3912_s22 }
 0x40c   : > { %v4536_v43 = vpop.f32.mrb[4].mxu0 }
 0x40d   : > { %v2911_v44 = vpop.f32.mrb[5].mxu0 }
 0x40e   : > { %v954_v45 = vpop.f32.mrb[6].mxu0 }
 0x40f   : > { %v2912_v46 = vpop.f32.mrb[7].mxu0 }
 0x414   : > { %v1359_v48 = vpop.f32.mrb[8].mxu0 }
 0x415   : > { %v1360_v49 = vadd.f32 %v2816_v47, %v1359_v48  ;;  %v2919_v50 = vpop.f32.mrb[9].mxu0 }
 0x416   : > { %v1362_v51 = vpop.f32.mrb[10].mxu0 }
 0x417   : > { %v4538_v52 = vmul.f32 0.35355338, %v1360_v49  ;;  %v2920_v53 = vpop.f32.mrb[11].mxu0 }
 0x419   : > { %1370 = vrot.lane.b32.xlu0 %v4538_v52, %s3910_s5  ;;  %1367 = vrot.lane.b32.xlu1 %v4538_v52, %s3911_s1 }
 0x41d   : > { %1373 = vrot.lane.b32.xlu1 %v4538_v52, %s3912_s22 }
 0x479   : > { %v962_v61 = vpop.permute.xlu1 %961  ;;  %v959_v2 = vpop.permute.xlu0 %958 }
 0x47a   : > { %v967_v0 = vcombine.low %v889_v39, %v962_v61  ;;  %v968_v1 = vcombine.high %v889_v39, %v962_v61 }
 0x47c   : > { %v975_v7 = vrot.slane %v967_v0, %v4554_v63  ;;  %v982_v8 = vrot.slane %v968_v1, %v4554_v63 }
 0x47d   : > { %v965_v3 = vpop.permute.xlu1 %964 }
 0x47e   : > { %v983_v4 = vcombine.low %v959_v2, %v965_v3  ;;  %v984_v5 = vcombine.high %v959_v2, %v965_v3 }
 0x480   : > { %v991_v9 = vrot.slane %v983_v4, %v4554_v63  ;;  %v998_v10 = vrot.slane %v984_v5, %v4554_v63 }
 0x482   : > { %v999_v11 = vcombine.low %v975_v7, %v991_v9  ;;  %v1000_v12 = vcombine.high %v975_v7, %v991_v9  ;;  %v1015_v14 = vcombine.low %v982_v8, %v998_v10  ;;  %v1016_v15 = vcombine.high %v982_v8, %v998_v10 }
 0x484   : > { %v1007_v16 = vrot.slane %v999_v11, %v4556_v6  ;;  %v1014_v17 = vrot.slane %v1000_v12, %v4556_v6  ;;  %v1023_v18 = vrot.slane %v1015_v14, %v4556_v6  ;;  %v1030_v19 = vrot.slane %v1016_v15, %v4556_v6 }
 0x486   : > { %v1035_v20 = vcombine.low %v1007_v16, %v1014_v17  ;;  %v2812_v21 = vcombine.high %v1007_v16, %v1014_v17  ;;  %v1051_v22 = vcombine.low %v1023_v18, %v1030_v19  ;;  %v2813_v23 = vcombine.high %v1023_v18, %v1030_v19 }
 0x488   : > { %v1042_v24 = vrot.slane %v1035_v20, %v4554_v63  ;;  %v1050_v25 = vrot.slane %v2812_v21, %v4554_v63  ;;  %v1058_v26 = vrot.slane %v1051_v22, %v4554_v63  ;;  %v1066_v27 = vrot.slane %v2813_v23, %v4554_v63 }
 0x48a   : > { %v1067_v28 = vcombine.low %v1042_v24, %v1050_v25  ;;  %v1068_v29 = vcombine.high %v1042_v24, %v1050_v25  ;;  %v1083_v30 = vcombine.low %v1058_v26, %v1066_v27  ;;  %v1084_v31 = vcombine.high %v1058_v26, %v1066_v27 }
 0x48b   : > { %v1368_v32 = vpop.permute.xlu1 %1367  ;;  %v1371_v37 = vpop.permute.xlu0 %1370 }
 0x48c   : > { %v1075_v33 = vrot.slane %v1067_v28, %v4556_v6  ;;  %v1082_v34 = vrot.slane %v1068_v29, %v4556_v6  ;;  %v1091_v35 = vrot.slane %v1083_v30, %v4556_v6  ;;  %v1098_v36 = vrot.slane %v1084_v31, %v4556_v6 }
 0x48d   : > { %v1376_v42 = vcombine.low %v4538_v52, %v1371_v37  ;;  %v1377_v44 = vcombine.high %v4538_v52, %v1371_v37 }
 0x48e   : > { %v1099_v38 = vcombine.low %v1075_v33, %v1091_v35  ;;  %v1100_v39 = vcombine.high %v1075_v33, %v1091_v35  ;;  %v1101_v40 = vcombine.low %v1082_v34, %v1098_v36  ;;  %v1102_v41 = vcombine.high %v1082_v34, %v1098_v36 }
 0x48f   : > { %v1374_v45 = vpop.permute.xlu1 %1373  ;;  %v1384_v53 = vrot.slane %v1376_v42, %v4554_v63  ;;  %v1391_v54 = vrot.slane %v1377_v44, %v4554_v63  ;;  %v3915_v35 = vmov -inf  }
 0x490   : > { %v1103_v46 = vpack.c.bf16 %v1099_v38, %v1099_v38  ;;  %v1104_v47 = vpack.c.bf16 %v1100_v39, %v1100_v39  ;;  %v1105_v48 = vpack.c.bf16 %v1101_v40, %v1101_v40  ;;  %v1106_v49 = vpack.c.bf16 %v1102_v41, %v1102_v41  ;;  %1517 = vst.msk [vmem:[#allocation4] sm:$0xff] %vm1516_vm4, %v3915_v35 }
 0x491   : > { %v1392_v50 = vcombine.low %v1368_v32, %v1374_v45  ;;  %v1393_v51 = vcombine.high %v1368_v32, %v1374_v45  ;;  %1518 = vst.msk [vmem:[#allocation4 + $0x8] sm:$0xff] %vm1516_vm4, %v3915_v35  ;;  %1519 = vst.msk [vmem:[#allocation4 + $0x10] sm:$0xff] %vm1516_vm4, %v3915_v35 }
 0x492   : > { %1108 = vst.msk [vmem:[#allocation2] sm:$0xf] %vm1107_vm3, %v1103_v46  ;;  %1109 = vst.msk [vmem:[#allocation2 + $0x4] sm:$0xf] %vm1107_vm3, %v1104_v47 }
 0x493   : > { %1110 = vst.msk [vmem:[#allocation2 + $0x8] sm:$0xf] %vm1107_vm3, %v1105_v48  ;;  %1111 = vst.msk [vmem:[#allocation2 + $0xc] sm:$0xf] %vm1107_vm3, %v1106_v49  ;;  %v1400_v52 = vrot.slane %v1392_v50, %v4554_v63  ;;  %v1407_v55 = vrot.slane %v1393_v51, %v4554_v63 }
 0x494   : > { %1520 = vst.msk [vmem:[#allocation4 + $0x18] sm:$0xff] %vm1516_vm4, %v3915_v35 }
 0x495   : > { %v1408_v56 = vcombine.low %v1384_v53, %v1400_v52  ;;  %v1409_v57 = vcombine.high %v1384_v53, %v1400_v52  ;;  %v1424_v58 = vcombine.low %v1391_v54, %v1407_v55  ;;  %v1425_v59 = vcombine.high %v1391_v54, %v1407_v55 }
 0x497   : > { %v1416_v60 = vrot.slane %v1408_v56, %v4556_v6  ;;  %v1423_v61 = vrot.slane %v1409_v57, %v4556_v6  ;;  %v1432_v62 = vrot.slane %v1424_v58, %v4556_v6  ;;  %v1439_v0 = vrot.slane %v1425_v59, %v4556_v6  ;;  %v2808_v57 = vld [vmem:[#allocation21] ss:$0 sm:$0xff] }
 0x498   : > { %v952_v58 = vadd.f32 %v2808_v57, %v4536_v43  ;;  %v3916_v59 = vmov 0  }
 0x499   : > { %v1444_v1 = vcombine.low %v1416_v60, %v1423_v61  ;;  %v2820_v2 = vcombine.high %v1416_v60, %v1423_v61  ;;  %v1460_v3 = vcombine.low %v1432_v62, %v1439_v0  ;;  %v2821_v4 = vcombine.high %v1432_v62, %v1439_v0  ;;  %v1530_v5 = vld [vmem:[#allocation2] sm:$0xf]  ;;  %v1531_v7 = vld [vmem:[#allocation2 + $0x4] sm:$0xf]  ;;  %3243 = vset.pattern.permute.xlu0 %v3916_v59  ;;  %v4650_v61 = vld [vmem:[#allocation4 + $0x8] sm:$0xff] }
 0x49a   : > { %v1542_v8 = vsel %vm1525_vm2, %v1530_v5, 0  ;;  %v1588_v9 = vsel %vm1525_vm2, %v1531_v7, 0  ;;  %v1532_v23 = vld [vmem:[#allocation2 + $0x8] sm:$0xf]  ;;  %v1533_v24 = vld [vmem:[#allocation2 + $0xc] sm:$0xf]  ;;  %3242 = vset.pattern.permute.xlu1 %v3916_v59 }
 0x49b   : > { %v1451_v10 = vrot.slane %v1444_v1, %v4554_v63  ;;  %v1459_v11 = vrot.slane %v2820_v2, %v4554_v63  ;;  %v1467_v12 = vrot.slane %v1460_v3, %v4554_v63  ;;  %v1475_v14 = vrot.slane %v2821_v4, %v4554_v63  ;;  %2922 = vmatpush3.bf16.xpose.msra.mxu1 %v1542_v8  ;;  %v4648_v60 = vld [vmem:[#allocation4] sm:$0xff]  ;;  %v4668_v4 = vld [vmem:[#allocation4 + $0x10] sm:$0xff] }
 0x49c   : > { %2928 = vmatpush3.bf16.xpose.msra.mxu0 %v1588_v9  ;;  %2933 = vmatprep.subr.bf16.mxu1 %v3908_v13  ;;  %v1634_v29 = vsel %vm1525_vm2, %v1532_v23, 0  ;;  %v1680_v30 = vsel %vm1525_vm2, %v1533_v24, 0  ;;  %v4673_v9 = vld [vmem:[#allocation4 + $0x18] sm:$0xff] }
 0x49d   : > { %2939 = vmatprep.subr.bf16.mxu0 %v3908_v13  ;;  %v1476_v15 = vcombine.low %v1451_v10, %v1459_v11  ;;  %v1492_v16 = vcombine.low %v1467_v12, %v1475_v14  ;;  %v1477_v17 = vcombine.high %v1451_v10, %v1459_v11  ;;  %v1493_v18 = vcombine.high %v1467_v12, %v1475_v14 }
 0x49f   : > { %v1484_v19 = vrot.slane %v1476_v15, %v4556_v6  ;;  %v1500_v20 = vrot.slane %v1492_v16, %v4556_v6  ;;  %v1491_v27 = vrot.slane %v1477_v17, %v4556_v6  ;;  %v1507_v28 = vrot.slane %v1493_v18, %v4556_v6 }
 0x4a1   : > { %v1508_v21 = vcombine.low %v1484_v19, %v1500_v20  ;;  %v1509_v22 = vcombine.high %v1484_v19, %v1500_v20  ;;  %v1510_v31 = vcombine.low %v1491_v27, %v1507_v28  ;;  %v1511_v32 = vcombine.high %v1491_v27, %v1507_v28 }
 0x4a3   : > { %v1512_v25 = vpack.c.bf16 %v1508_v21, %v1508_v21  ;;  %v1513_v26 = vpack.c.bf16 %v1509_v22, %v1509_v22  ;;  %v1514_v33 = vpack.c.bf16 %v1510_v31, %v1510_v31  ;;  %v1515_v34 = vpack.c.bf16 %v1511_v32, %v1511_v32 }
 0x4a5   : > { %2924 = vmatmul.mubr.msk.bf16.vlgmr.msra.gmra.mrb[0].mxu1 %vm1525_vm2, %v1512_v25  ;;  %2930 = vmatmul.mubr.msk.bf16.vlgmr.msra.gmra.mrb[12].mxu0 %vm1525_vm2, %v1513_v26 }
 0x4a6   : > { %2934 = vmatpush3.bf16.xpose.msra.mxu1 %v1634_v29  ;;  %2940 = vmatpush3.bf16.xpose.msra.mxu0 %v1680_v30 }
 0x4a7   : > { %2935 = vmatprep.mubr.msk.bf16.mxu1 %vm3909_vm1, %v3908_v13  ;;  %2941 = vmatprep.mubr.msk.bf16.mxu0 %vm3909_vm1, %v3908_v13 }
 0x4a8   : > { %2945 = vmatprep.subr.bf16.mxu1 %v3908_v13  ;;  %2951 = vmatprep.subr.bf16.mxu0 %v3908_v13 }
 0x4ad   : > { %2936 = vmatmul.mubr.msk.bf16.vlgmr.msra.gmra.mrb[4].mxu1 %vm1525_vm2, %v1514_v33  ;;  %2942 = vmatmul.mubr.msk.bf16.vlgmr.msra.gmra.mrb[16].mxu0 %vm1525_vm2, %v1515_v34 }
 0x4ae   : > { %2947 = vmatprep.mubr.msk.bf16.mxu1 %vm3909_vm1, %v3908_v13  ;;  %2953 = vmatprep.mubr.msk.bf16.mxu0 %vm3909_vm1, %v3908_v13 }
 0x578   : > { %v4628_v36 = vpop.f32.mrb[0].mxu1  ;;  %v4630_v37 = vpop.f32.mrb[12].mxu0 }
 0x579   : > { %v2925_v38 = vpop.f32.mrb[1].mxu1  ;;  %v2931_v39 = vpop.f32.mrb[13].mxu0  ;;  %v1726_v40 = vsel %vm1525_vm2, %v4628_v36, -inf  ;;  %v1729_v41 = vsel %vm1525_vm2, %v4630_v37, -inf }
 0x57a   : > { %1727 = vmax.xlane.f32.xlu0 %v1726_v40  ;;  %v1581_v42 = vpop.f32.mrb[2].mxu1  ;;  %1730 = vmax.xlane.f32.xlu1 %v1729_v41  ;;  %v1627_v44 = vpop.f32.mrb[14].mxu0 }
 0x57b   : > { %v2926_v45 = vpop.f32.mrb[3].mxu1  ;;  %v2932_v46 = vpop.f32.mrb[15].mxu0 }
 0x580   : > { %v4636_v47 = vpop.f32.mrb[4].mxu1  ;;  %v4638_v48 = vpop.f32.mrb[16].mxu0 }
 0x581   : > { %v2937_v49 = vpop.f32.mrb[5].mxu1  ;;  %v2943_v50 = vpop.f32.mrb[17].mxu0  ;;  %v1732_v51 = vsel %vm1525_vm2, %v4636_v47, -inf  ;;  %v1735_v56 = vsel %vm1525_vm2, %v4638_v48, -inf }
 0x582   : > { %1733 = vmax.xlane.f32.xlu0 %v1732_v51  ;;  %v1673_v53 = vpop.f32.mrb[6].mxu1  ;;  %v1719_v54 = vpop.f32.mrb[18].mxu0 }
 0x583   : > { %v2938_v52 = vpop.f32.mrb[7].mxu1  ;;  %v2944_v55 = vpop.f32.mrb[19].mxu0 }
 0x586   : > { %1736 = vmax.xlane.f32.xlu0 %v1735_v56 }
 0x58b   : > { %1116 = vrot.lane.b32.xlu1 %v952_v58, %s3910_s5  ;;  %s4801_s5 = scalar_lea.hbm %s4932_s4, %s2852_s17 }
 0x58f   : > { %1119 = vrot.lane.b32.xlu1 %v952_v58, %s3912_s22  ;;  %s3920_s22 = smov [#allocation34]  }
 0x59c   : > { %1113 = vrot.lane.b32.xlu0 %v952_v58, %s3911_s1  ;;  %s3773_s1 = scalar_lea.vmem %s4803_s28, 128 }
 0x59d   : > { %p3774_p11 = scmp.ne.s32.totalorder %s4803_s28, %s3773_s1 }
 0x59f   : > { %p3775_p5 = pnand %p3774_p11, %p4933_p0 }
 0x5a1   : > { %p3776_p7 = pneg %p3775_p5 }
 0x607   : > { %v1728_v62 = vpop.xlane.xlu0 %1727  ;;  %v1731_v0 = vpop.xlane.xlu1 %1730 }
 0x608   : > { %v4653_v1 = vmax.f32 %v4648_v60, %v1728_v62  ;;  %v4656_v43 = vmax.f32 %v4650_v61, %v1731_v0 }
 0x60a   : > { %v1742_v2 = vsub.f32 %v4648_v60, %v4653_v1  ;;  %2039 = vst.msk [vmem:[#allocation4] sm:$0xff] %vm1516_vm4, %v4653_v1  ;;  %v1743_v3 = vsub.f32 %v4650_v61, %v4656_v43  ;;  %2040 = vst.msk [vmem:[#allocation4 + $0x8] sm:$0xff] %vm1516_vm4, %v4656_v43  ;;  %1756 = vperm.xlu1 %3242, %v4653_v1   ;;  %1761 = vperm.xlu0 %3243, %v4656_v43   ;;  %v1788_v60 = vld [vmem:[#allocation5 + $0x10] sm:$0xff] }
 0x60b   : > { %v1117_v8 = vpop.permute.xlu1 %1116 }
 0x60c   : > { %v1122_v14 = vcombine.low %v952_v58, %v1117_v8  ;;  %v1123_v15 = vcombine.high %v952_v58, %v1117_v8 }
 0x60e   : > { %v1130_v21 = vrot.slane %v1122_v14, %v4554_v63  ;;  %v1137_v22 = vrot.slane %v1123_v15, %v4554_v63 }
 0x60f   : > { %v1734_v5 = vpop.xlane.xlu0 %1733  ;;  %v1120_v17 = vpop.permute.xlu1 %1119 }
 0x610   : > { %v4671_v7 = vmax.f32 %v4668_v4, %v1734_v5 }
 0x612   : > { %v1744_v10 = vsub.f32 %v4668_v4, %v4671_v7  ;;  %2041 = vst.msk [vmem:[#allocation4 + $0x10] sm:$0xff] %vm1516_vm4, %v4671_v7  ;;  %1766 = vperm.xlu1 %3242, %v4671_v7   ;;  %v1746_v7 = vmul.f32 1.442695, %v1742_v2 }
 0x613   : > { %v1737_v11 = vpop.xlane.xlu0 %1736 }
 0x614   : > { %v4681_v12 = vmax.f32 %v4673_v9, %v1737_v11 }
 0x616   : > { %v1745_v16 = vsub.f32 %v4673_v9, %v4681_v12  ;;  %2042 = vst.msk [vmem:[#allocation4 + $0x18] sm:$0xff] %vm1516_vm4, %v4681_v12  ;;  %1771 = vperm.xlu1 %3242, %v4681_v12  }
 0x617   : > { %v1114_v18 = vpop.permute.xlu0 %1113 }
 0x618   : > { %v1138_v19 = vcombine.low %v1114_v18, %v1120_v17  ;;  %v1139_v20 = vcombine.high %v1114_v18, %v1120_v17 }
 0x61a   : > { %v1146_v23 = vrot.slane %v1138_v19, %v4554_v63  ;;  %v1153_v24 = vrot.slane %v1139_v20, %v4554_v63 }
 0x61c   : > { %v1154_v25 = vcombine.low %v1130_v21, %v1146_v23  ;;  %v1155_v26 = vcombine.high %v1130_v21, %v1146_v23  ;;  %v1170_v27 = vcombine.low %v1137_v22, %v1153_v24  ;;  %v1171_v28 = vcombine.high %v1137_v22, %v1153_v24 }
 0x61e   : > { %v1162_v29 = vrot.slane %v1154_v25, %v4556_v6  ;;  %v1169_v30 = vrot.slane %v1155_v26, %v4556_v6  ;;  %v1178_v31 = vrot.slane %v1170_v27, %v4556_v6  ;;  %v1185_v32 = vrot.slane %v1171_v28, %v4556_v6 }
 0x620   : > { %v1190_v33 = vcombine.low %v1162_v29, %v1169_v30  ;;  %v2814_v34 = vcombine.high %v1162_v29, %v1169_v30  ;;  %v1206_v35 = vcombine.low %v1178_v31, %v1185_v32  ;;  %v2815_v38 = vcombine.high %v1178_v31, %v1185_v32 }
 0x622   : > { %v1197_v39 = vrot.slane %v1190_v33, %v4554_v63  ;;  %v1205_v40 = vrot.slane %v2814_v34, %v4554_v63  ;;  %v1213_v41 = vrot.slane %v1206_v35, %v4554_v63  ;;  %v1221_v42 = vrot.slane %v2815_v38, %v4554_v63 }
 0x623   : > { %v1748_v34 = vmul.f32 1.442695, %v1743_v3  ;;  %v1750_v38 = vmul.f32 1.442695, %v1744_v10 }
 0x624   : > { %v1222_v44 = vcombine.low %v1197_v39, %v1205_v40  ;;  %v1223_v45 = vcombine.high %v1197_v39, %v1205_v40  ;;  %v1238_v46 = vcombine.low %v1213_v41, %v1221_v42  ;;  %v1239_v49 = vcombine.high %v1213_v41, %v1221_v42  ;;  %v1787_v42 = vld [vmem:[#allocation5 + $0x8] sm:$0xff] }
 0x625   : > { %v1752_v39 = vmul.f32 1.442695, %v1745_v16  ;;  %v1786_v16 = vld [vmem:[#allocation5] sm:$0xff] }
 0x626   : > { %v1230_v50 = vrot.slane %v1222_v44, %v4556_v6  ;;  %v1237_v51 = vrot.slane %v1223_v45, %v4556_v6  ;;  %v1246_v53 = vrot.slane %v1238_v46, %v4556_v6  ;;  %v1253_v54 = vrot.slane %v1239_v49, %v4556_v6 }
 0x628   : > { %v1254_v52 = vcombine.low %v1230_v50, %v1246_v53  ;;  %v1255_v55 = vcombine.high %v1230_v50, %v1246_v53  ;;  %v1256_v56 = vcombine.low %v1237_v51, %v1253_v54  ;;  %v1257_v57 = vcombine.high %v1237_v51, %v1253_v54  ;;  %v1789_v53 = vld [vmem:[#allocation5 + $0x18] sm:$0xff] }
 0x62a   : > { %v1258_v58 = vpack.c.bf16 %v1254_v52, %v1254_v52  ;;  %v1259_v59 = vpack.c.bf16 %v1255_v55, %v1255_v55  ;;  %v1260_v62 = vpack.c.bf16 %v1256_v56, %v1256_v56  ;;  %v1261_v0 = vpack.c.bf16 %v1257_v57, %v1257_v57 }
 0x62c   : > { %1262 = vst.msk [vmem:[#allocation3] sm:$0xf] %vm1107_vm3, %v1258_v58  ;;  %1263 = vst.msk [vmem:[#allocation3 + $0x4] sm:$0xf] %vm1107_vm3, %v1259_v59 }
 0x62d   : > { %1264 = vst.msk [vmem:[#allocation3 + $0x8] sm:$0xf] %vm1107_vm3, %v1260_v62  ;;  %1265 = vst.msk [vmem:[#allocation3 + $0xc] sm:$0xf] %vm1107_vm3, %v1261_v0 }
 0x633   : > { %v1534_v5 = vld [vmem:[#allocation3] sm:$0xf]  ;;  %v1535_v8 = vld [vmem:[#allocation3 + $0x4] sm:$0xf] }
 0x634   : > { %v1823_v11 = vsel %vm1821_vm5, %v1534_v5, 0  ;;  %v1869_v14 = vsel %vm1821_vm5, %v1535_v8, 0  ;;  %v1536_v29 = vld [vmem:[#allocation3 + $0x8] sm:$0xf] }
 0x635   : > { %2946 = vmatpush3.bf16.msra.mxu1 %v1823_v11  ;;  %2952 = vmatpush3.bf16.msra.mxu0 %v1869_v14  ;;  %v3250_v14 = vld [vmem:[#allocation22] sm:$0xff]  }
 0x636   : > { %2957 = vmatprep.subr.bf16.mxu1 %v3908_v13  ;;  %2963 = vmatprep.subr.bf16.mxu0 %v3908_v13 }
 0x689   : > { %v1757_v15 = vpop.permute.xlu1 %1756  ;;  %v1762_v17 = vpop.permute.xlu0 %1761 }
 0x68a   : > { %v1774_v18 = vsub.f32 %v4628_v36, %v1757_v15  ;;  %v1775_v19 = vsub.f32 %v4630_v37, %v1762_v17  ;;  %v1537_v37 = vld [vmem:[#allocation3 + $0xc] sm:$0xf]  ;;  %v2003_v17 = vld [vmem:[#allocation6] sm:$0xff] }
 0x68c   : > { %v1778_v20 = vmul.f32 1.442695, %v1774_v18  ;;  %v1780_v21 = vmul.f32 1.442695, %v1775_v19  ;;  %v2004_v19 = vld [vmem:[#allocation6 + $0x8] sm:$0xff] }
 0x68e   : > { %3266 = vpow2.f32 %v1778_v20 }
 0x68f   : > { %3268 = vpow2.f32 %v1780_v21 }
 0x691   : > { %v1767_v22 = vpop.permute.xlu1 %1766 }
 0x692   : > { %v1776_v23 = vsub.f32 %v4636_v47, %v1767_v22  ;;  %v1915_v47 = vsel %vm1821_vm5, %v1536_v29, 0 }
 0x694   : > { %v1782_v24 = vmul.f32 1.442695, %v1776_v23 }
 0x695   : > { %v1772_v25 = vpop.permute.xlu1 %1771 }
 0x696   : > { %3270 = vpow2.f32 %v1782_v24  ;;  %v1777_v26 = vsub.f32 %v4638_v48, %v1772_v25  ;;  %v1961_v48 = vsel %vm1821_vm5, %v1537_v37, 0 }
 0x698   : > { %v3267_v27 = vpop.eup %3266  ;;  %v1784_v28 = vmul.f32 1.442695, %v1777_v26 }
 0x699   : > { %v3269_v30 = vpop.eup %3268  ;;  %v1794_v36 = vsel %vm1525_vm2, %v3267_v27, 0.0  ;;  %v1814_v31 = vpack.c.bf16 %v3267_v27, %v3267_v27 }
 0x69a   : > { %3272 = vpow2.f32 %v1784_v28  ;;  %1795 = vadd.xlane.f32.xlu0 %v1794_v36  ;;  %v1797_v32 = vsel %vm1525_vm2, %v3269_v30, 0.0  ;;  %v1815_v33 = vpack.c.bf16 %v3269_v30, %v3269_v30 }
 0x69b   : > { %1798 = vadd.xlane.f32.xlu1 %v1797_v32  ;;  %2948 = vmatmul.mubr.msk.bf16.vlgmr.msra.gmra.mrb[8].mxu1 %vm1525_vm2, %v1814_v31  ;;  %3274 = vpow2.f32 %v1748_v34  ;;  %v2005_v31 = vld [vmem:[#allocation6 + $0x10] sm:$0xff] }
 0x69c   : > { %2954 = vmatmul.mubr.msk.bf16.vlgmr.msra.gmra.mrb[20].mxu0 %vm1525_vm2, %v1815_v33  ;;  %2958 = vmatpush3.bf16.msra.mxu1 %v1915_v47  ;;  %3276 = vpow2.f32 %v1750_v38  ;;  %v2006_v33 = vld [vmem:[#allocation6 + $0x18] sm:$0xff] }
 0x69d   : > { %2964 = vmatpush3.bf16.msra.mxu0 %v1961_v48  ;;  %2959 = vmatprep.mubr.msk.bf16.mxu1 %vm3909_vm1, %v3908_v13  ;;  %3278 = vpow2.f32 %v1752_v39 }
 0x69e   : > { %2965 = vmatprep.mubr.msk.bf16.mxu0 %vm3909_vm1, %v3908_v13  ;;  %2969 = vmatprep.subr.bf16.mxu1 %v3908_v13  ;;  %3280 = vpow2.f32 %v1746_v7 }
 0x69f   : > { %2977 = vmatprep.subr.bf16.mxu0 %v3908_v13 }
 0x6a0   : > { %v3271_v35 = vpop.eup %3270 }
 0x6a1   : > { %v1800_v61 = vsel %vm1525_vm2, %v3271_v35, 0.0  ;;  %v1816_v43 = vpack.c.bf16 %v3271_v35, %v3271_v35 }
 0x6a2   : > { %1801 = vadd.xlane.f32.xlu0 %v1800_v61 }
 0x6a3   : > { %2960 = vmatmul.mubr.msk.bf16.vlgmr.msra.gmra.mrb[12].mxu1 %vm1525_vm2, %v1816_v43 }
 0x6a4   : > { %v3273_v3 = vpop.eup %3272  ;;  %2973 = vmatprep.mubr.msk.bf16.mxu1 %vm3909_vm1, %v3908_v13  ;;  %2970 = vmatpush3.bf16.msra.mxu1 %v3250_v14 }
 0x6a5   : > { %v1803_v40 = vsel %vm1525_vm2, %v3273_v3, 0.0  ;;  %v1817_v41 = vpack.c.bf16 %v3273_v3, %v3273_v3  ;;  %v3275_v4 = vpop.eup %3274  ;;  %2971 = vmatprep.subr.bf16.mxu1 %v3908_v13 }
 0x6a6   : > { %1804 = vadd.xlane.f32.xlu0 %v1803_v40  ;;  %v3277_v10 = vpop.eup %3276  ;;  %v1791_v45 = vmul.f32 %v3275_v4, %v1787_v42 }
 0x6a7   : > { %2966 = vmatmul.mubr.msk.bf16.vlgmr.msra.gmra.mrb[24].mxu0 %vm1525_vm2, %v1817_v41  ;;  %v3279_v9 = vpop.eup %3278  ;;  %v1792_v1 = vmul.f32 %v3277_v10, %v1788_v60 }
 0x6a8   : > { %2981 = vmatprep.mubr.msk.bf16.mxu0 %vm3909_vm1, %v3908_v13  ;;  %v3281_v12 = vpop.eup %3280  ;;  %v1793_v55 = vmul.f32 %v3279_v9, %v1789_v53 }
 0x6a9   : > { %v1790_v44 = vmul.f32 %v3281_v12, %v1786_v16 }
 0x6ac   : > { %2014 = vperm.xlu1 %3242, %v3275_v4  }
 0x6b0   : > { %2019 = vperm.xlu1 %3242, %v3277_v10  }
 0x6b4   : > { %2024 = vperm.xlu1 %3242, %v3279_v9  }
 0x6bc   : > { %2009 = vperm.xlu0 %3243, %v3281_v12  }
 0x727   : > { %v1796_v46 = vpop.xlane.xlu0 %1795 }
 0x728   : > { %v1799_v49 = vpop.xlane.xlu1 %1798  ;;  %v1806_v50 = vadd.f32 %v1796_v46, %v1790_v44 }
 0x729   : > { %v1807_v51 = vadd.f32 %v1799_v49, %v1791_v45 }
 0x72a   : > { %1810 = vst.msk [vmem:[#allocation5] sm:$0xff] %vm1516_vm4, %v1806_v50 }
 0x72b   : > { %1811 = vst.msk [vmem:[#allocation5 + $0x8] sm:$0xff] %vm1516_vm4, %v1807_v51 }
 0x72c   : > { %v2015_v15 = vpop.permute.xlu1 %2014 }
 0x72d   : > { %v2028_v21 = vmul.f32 %v2015_v15, %v2004_v19 }
 0x72f   : > { %v1802_v2 = vpop.xlane.xlu0 %1801 }
 0x730   : > { %v1808_v54 = vadd.f32 %v1802_v2, %v1792_v1  ;;  %v2020_v22 = vpop.permute.xlu1 %2019 }
 0x731   : > { %v2047_v52 = vld [vmem:[#allocation5] sm:$0xff]  ;;  %v2029_v32 = vmul.f32 %v2020_v22, %v2005_v31 }
 0x732   : > { %1812 = vst.msk [vmem:[#allocation5 + $0x10] sm:$0xff] %vm1516_vm4, %v1808_v54  ;;  %v2048_v56 = vld [vmem:[#allocation5 + $0x8] sm:$0xff]  ;;  %3282 = vrcp.f32 %v2047_v52 }
 0x733   : > { %v1805_v57 = vpop.xlane.xlu0 %1804  ;;  %3284 = vrcp.f32 %v2048_v56 }
 0x734   : > { %v1809_v58 = vadd.f32 %v1805_v57, %v1793_v55  ;;  %v2025_v47 = vpop.permute.xlu1 %2024 }
 0x735   : > { %v2030_v61 = vmul.f32 %v2025_v47, %v2006_v33 }
 0x736   : > { %1813 = vst.msk [vmem:[#allocation5 + $0x18] sm:$0xff] %vm1516_vm4, %v1809_v58 }
 0x739   : > { %v2049_v59 = vld [vmem:[#allocation5 + $0x10] sm:$0xff] }
 0x73a   : > { %3286 = vrcp.f32 %v2049_v59 }
 0x73b   : > { %v2010_v18 = vpop.permute.xlu0 %2009 }
 0x73c   : > { %v3283_v62 = vpop.eup %3282  ;;  %v2027_v20 = vmul.f32 %v2010_v18, %v2003_v17 }
 0x73d   : > { %v3285_v0 = vpop.eup %3284  ;;  %2057 = vperm.xlu0 %3243, %v3283_v62   ;;  %v2050_v5 = vld [vmem:[#allocation5 + $0x18] sm:$0xff] }
 0x73e   : > { %2062 = vperm.xlu1 %3242, %v3285_v0   ;;  %3288 = vrcp.f32 %v2050_v5  ;;  %v3251_v0 = vld [vmem:[#allocation22 + $0x8] sm:$0xff]  }
 0x73f   : > { %2972 = vmatpush3.bf16.msra.mxu1 %v3251_v0  ;;  %v3259_v0 = vld [vmem:[#allocation31 + $0x28] sm:$0xff]  }
 0x740   : > { %2985 = vmatprep.subr.bf16.mxu1 %v3908_v13 }
 0x744   : > { %v3287_v8 = vpop.eup %3286 }
 0x745   : > { %2067 = vperm.xlu0 %3243, %v3287_v8  }
 0x748   : > { %v3289_v11 = vpop.eup %3288 }
 0x749   : > { %2072 = vperm.xlu1 %3242, %v3289_v11  }
 0x76e   : > { %v1859_v23 = vpop.f32.mrb[8].mxu1 }
 0x76f   : > { %v2031_v24 = vadd.f32 %v2027_v20, %v1859_v23  ;;  %v1905_v25 = vpop.f32.mrb[20].mxu0  ;;  %v2949_v26 = vpop.f32.mrb[9].mxu1 }
 0x770   : > { %v2032_v27 = vadd.f32 %v2028_v21, %v1905_v25  ;;  %v2955_v28 = vpop.f32.mrb[21].mxu0  ;;  %v1862_v29 = vpop.f32.mrb[10].mxu1 }
 0x771   : > { %2035 = vst.msk [vmem:[#allocation6] sm:$0xff] %vm1525_vm2, %v2031_v24  ;;  %v1908_v30 = vpop.f32.mrb[22].mxu0  ;;  %v2950_v36 = vpop.f32.mrb[11].mxu1 }
 0x772   : > { %2036 = vst.msk [vmem:[#allocation6 + $0x8] sm:$0xff] %vm1525_vm2, %v2032_v27  ;;  %v2956_v37 = vpop.f32.mrb[23].mxu0 }
 0x776   : > { %v1951_v48 = vpop.f32.mrb[12].mxu1 }
 0x777   : > { %v2033_v34 = vadd.f32 %v2029_v32, %v1951_v48  ;;  %v2961_v35 = vpop.f32.mrb[13].mxu1 }
 0x778   : > { %v1954_v38 = vpop.f32.mrb[14].mxu1  ;;  %v2043_v42 = vld [vmem:[#allocation6] sm:$0xff] }
 0x779   : > { %2037 = vst.msk [vmem:[#allocation6 + $0x10] sm:$0xff] %vm1525_vm2, %v2033_v34  ;;  %v2962_v43 = vpop.f32.mrb[15].mxu1  ;;  %v2044_v45 = vld [vmem:[#allocation6 + $0x8] sm:$0xff] }
 0x77a   : > { %v1997_v3 = vpop.f32.mrb[24].mxu0 }
 0x77b   : > { %v2034_v39 = vadd.f32 %v2030_v61, %v1997_v3  ;;  %v2967_v40 = vpop.f32.mrb[25].mxu0  ;;  %v2832_v61 = vld [vmem:[#allocation24] ss:$0 sm:$0xff] }
 0x77c   : > { %v2000_v41 = vpop.f32.mrb[26].mxu0 }
 0x77d   : > { %2038 = vst.msk [vmem:[#allocation6 + $0x18] sm:$0xff] %vm1525_vm2, %v2034_v39  ;;  %v2968_v4 = vpop.f32.mrb[27].mxu0  ;;  %v3294_v41 = vld [vmem:[%s4470_s0] sm:$0xff] }
 0x780   : > { %v2045_v9 = vld [vmem:[#allocation6 + $0x10] sm:$0xff] }
 0x784   : > { %v2046_v49 = vld [vmem:[#allocation6 + $0x18] sm:$0xff] }
 0x7bc   : > { %v2058_v7 = vpop.permute.xlu0 %2057 }
 0x7bd   : > { %v2063_v10 = vpop.permute.xlu1 %2062  ;;  %v2075_v44 = vmul.f32 %v2058_v7, %v2043_v42 }
 0x7be   : > { %v2076_v50 = vmul.f32 %v2063_v10, %v2044_v45  ;;  %v3252_v45 = vld [vmem:[#allocation28] sm:$0xff]  }
 0x7bf   : > { %2978 = vmatpush3.bf16.msra.mxu0 %v3252_v45 }
 0x7c0   : > { %2979 = vmatprep.subr.bf16.mxu0 %v3908_v13 }
 0x7c4   : > { %v2068_v12 = vpop.permute.xlu0 %2067 }
 0x7c5   : > { %v2077_v16 = vmul.f32 %v2068_v12, %v2045_v9 }
 0x7c7   : > { %v2079_v51 = vcombine.low %v2075_v44, %v2077_v16  ;;  %v2080_v60 = vcombine.high %v2075_v44, %v2077_v16 }
 0x7c8   : > { %v2073_v46 = vpop.permute.xlu1 %2072 }
 0x7c9   : > { %v2078_v1 = vmul.f32 %v2073_v46, %v2046_v49  ;;  %v2087_v54 = vrot.slane %v2079_v51, %v4554_v63  ;;  %v2094_v52 = vrot.slane %v2080_v60, %v4554_v63  ;;  %v3253_v46 = vld [vmem:[#allocation28 + $0x8] sm:$0xff]   ;;  %v3254_v49 = vld [vmem:[#allocation31] sm:$0xff]  }
 0x7ca   : > { %2980 = vmatpush3.bf16.msra.mxu0 %v3253_v46  ;;  %v3256_v51 = vld [vmem:[#allocation31 + $0x10] sm:$0xff]  }
 0x7cb   : > { %v2095_v2 = vcombine.low %v2076_v50, %v2078_v1  ;;  %v2096_v53 = vcombine.high %v2076_v50, %v2078_v1  ;;  %v3255_v50 = vld [vmem:[#allocation31 + $0x8] sm:$0xff]  }
 0x7cd   : > { %v2103_v55 = vrot.slane %v2095_v2, %v4554_v63  ;;  %v2110_v56 = vrot.slane %v2096_v53, %v4554_v63 }
 0x7cf   : > { %v2111_v57 = vcombine.low %v2087_v54, %v2103_v55  ;;  %v2112_v58 = vcombine.high %v2087_v54, %v2103_v55  ;;  %v2127_v59 = vcombine.low %v2094_v52, %v2110_v56  ;;  %v2128_v62 = vcombine.high %v2094_v52, %v2110_v56  ;;  %v2836_v54 = vld [vmem:[#allocation25] ss:$0 sm:$0xff]  ;;  %v2837_v55 = vld [vmem:[#allocation27] ss:$0 sm:$0xff] }
 0x7d1   : > { %v2119_v5 = vrot.slane %v2111_v57, %v4556_v6  ;;  %v2126_v8 = vrot.slane %v2112_v58, %v4556_v6  ;;  %v2135_v11 = vrot.slane %v2127_v59, %v4556_v6  ;;  %v2142_v14 = vrot.slane %v2128_v62, %v4556_v6  ;;  %v3257_v59 = vld [vmem:[#allocation31 + $0x18] sm:$0xff]   ;;  %v3258_v62 = vld [vmem:[#allocation31 + $0x20] sm:$0xff]  }
 0x7d3   : > { %v2147_v15 = vcombine.low %v2119_v5, %v2126_v8  ;;  %v2830_v17 = vcombine.high %v2119_v5, %v2126_v8  ;;  %v2163_v18 = vcombine.low %v2135_v11, %v2142_v14  ;;  %v2831_v19 = vcombine.high %v2135_v11, %v2142_v14  ;;  %v3260_v5 = vld [vmem:[#allocation31 + $0x30] sm:$0xff]   ;;  %v3261_v8 = vld [vmem:[#allocation31 + $0x38] sm:$0xff]  }
 0x7d4   : > { %v2838_v11 = vld [vmem:[#allocation30] ss:$0 sm:$0xff] }
 0x7d5   : > { %v2154_v20 = vrot.slane %v2147_v15, %v4554_v63  ;;  %v2162_v21 = vrot.slane %v2830_v17, %v4554_v63  ;;  %v2170_v22 = vrot.slane %v2163_v18, %v4554_v63  ;;  %v2178_v23 = vrot.slane %v2831_v19, %v4554_v63 }
 0x7d7   : > { %v2180_v24 = vcombine.high %v2154_v20, %v2162_v21  ;;  %v2196_v25 = vcombine.high %v2170_v22, %v2178_v23  ;;  %v2179_v26 = vcombine.low %v2154_v20, %v2162_v21  ;;  %v2195_v27 = vcombine.low %v2170_v22, %v2178_v23 }
 0x7d9   : > { %v2194_v28 = vrot.slane %v2180_v24, %v4556_v6  ;;  %v2210_v29 = vrot.slane %v2196_v25, %v4556_v6  ;;  %v2187_v30 = vrot.slane %v2179_v26, %v4556_v6  ;;  %v2203_v36 = vrot.slane %v2195_v27, %v4556_v6 }
 0x7db   : > { %v2213_v31 = vcombine.low %v2194_v28, %v2210_v29  ;;  %v2212_v37 = vcombine.high %v2187_v30, %v2203_v36  ;;  %v2211_v32 = vcombine.low %v2187_v30, %v2203_v36  ;;  %v2214_v63 = vcombine.high %v2194_v28, %v2210_v29 }
 0x7dd   : > { %2220 = vrot.lane.b32.xlu1 %v2213_v31, %s3917_s24  ;;  %2216 = vrot.lane.b32.xlu0 %v2212_v37, %s3918_s29  ;;  %s3777_s24 = sshll.u32 %s3920_s22, 4  ;;  %s3778_s24 = int_to_ptr.vmem [resolvable:$false] %s3777_s24 }
 0x7de   : > { %s3779_s29 = scalar_lea.vmem %s3778_s24, 256  ;;  %p3780_p10 = scmp.lt.s32.totalorder %s4803_s28, %s3778_s24 }
 0x7df   : > { %p3781_p13 = scmp.lt.s32.totalorder %s3779_s29, %s3773_s1 }
 0x7e1   : > { %2224 = vrot.lane.b32.xlu0 %v2214_v63, %s3919_s23  ;;  %p3782_p2 = por %p3781_p13, %p3780_p10 }
 0x7e3   : > { %p3783_p8 = pnand %p3782_p2, %p3776_p7 }
 0x84f   : > { %v2217_v33 = vpop.permute.xlu0 %2216  ;;  %v2221_v47 = vpop.permute.xlu1 %2220 }
 0x850   : > { %v2227_v48 = vsel %vm1525_vm2, %v2211_v32, %v2217_v33 }
 0x851   : > { %v2229_v35 = vsel %vm2228_vm6, %v2227_v48, %v2221_v47 }
 0x853   : > { %v2225_v34 = vpop.permute.xlu0 %2224 }
 0x854   : > { %v2231_v6 = vsel %vm2230_vm7, %v2229_v35, %v2225_v34 }
 0x855   : > { %v2232_v38 = vpack.c.bf16 %v2231_v6, %v2231_v6 }
 0x857   : > { %2974 = vmatmul.mubr.msk.bf16.vlgmr.msra.gmra.mrb[16].mxu1 %vm798_vm0, %v2232_v38 }
 0x858   : > { %3001 = vmatprep.mubr.msk.bf16.mxu1 %vm3909_vm1, %v3908_v13  ;;  %2986 = vmatpush3.bf16.msra.mxu1 %v3254_v49 }
 0x859   : > { %2987 = vmatprep.subr.bf16.mxu1 %v3908_v13 }
 0x85c   : > { %2988 = vmatpush3.bf16.msra.mxu1 %v3255_v50 }
 0x85d   : > { %2989 = vmatprep.subr.bf16.mxu1 %v3908_v13 }
 0x860   : > { %2990 = vmatpush3.bf16.msra.mxu1 %v3256_v51 }
 0x861   : > { %2991 = vmatprep.subr.bf16.mxu1 %v3908_v13 }
 0x864   : > { %2992 = vmatpush3.bf16.msra.mxu1 %v3257_v59 }
 0x865   : > { %2993 = vmatprep.subr.bf16.mxu1 %v3908_v13 }
 0x868   : > { %2994 = vmatpush3.bf16.msra.mxu1 %v3258_v62 }
 0x869   : > { %2995 = vmatprep.subr.bf16.mxu1 %v3908_v13 }
 0x86c   : > { %2996 = vmatpush3.bf16.msra.mxu1 %v3259_v0 }
 0x86d   : > { %2997 = vmatprep.subr.bf16.mxu1 %v3908_v13 }
 0x870   : > { %2998 = vmatpush3.bf16.msra.mxu1 %v3260_v5 }
 0x871   : > { %2999 = vmatprep.subr.bf16.mxu1 %v3908_v13  ;;  %v2842_v13 = vld [vmem:[#allocation33] ss:$0 sm:$0xff] }
 0x874   : > { %3000 = vmatpush3.bf16.msra.mxu1 %v3261_v8 }
 0x92a   : > { %v2293_v43 = vpop.f32.mrb[16].mxu1 }
 0x92b   : > { %v2294_v3 = vadd.f32 %v2832_v61, %v2293_v43  ;;  %v2975_v39 = vpop.f32.mrb[17].mxu1 }
 0x92c   : > { %v2296_v40 = vpop.f32.mrb[18].mxu1 }
 0x92d   : > { %v4779_v4 = vadd.f32 %v3294_v41, %v2294_v3  ;;  %v2976_v7 = vpop.f32.mrb[19].mxu1 }
 0x92f   : > { %v2302_v10 = vsel %vm798_vm0, %v4779_v4, 0.0 }
 0x930   : > { %2303 = vadd.xlane.f32.xlu1 %v2302_v10 }
 0x9bd   : > { %v2304_v9 = vpop.xlane.xlu1 %2303 }
 0x9be   : > { %v2305_v12 = vmul.f32 0.03125, %v2304_v9 }
 0x9c0   : > { %v2306_v16 = vsub.f32 %v4779_v4, %v2305_v12 }
 0x9c2   : > { %v2307_v42 = vmul.f32 %v2306_v16, %v2306_v16 }
 0x9c4   : > { %v2308_v44 = vsel %vm798_vm0, %v2307_v42, 0.0 }
 0x9c5   : > { %2309 = vadd.xlane.f32.xlu0 %v2308_v44 }
 0xa52   : > { %v2310_v60 = vpop.xlane.xlu0 %2309 }
 0xa53   : > { %v2311_v1 = vmul.f32 0.03125, %v2310_v60 }
 0xa55   : > { %v2312_v2 = vadd.f32 1e-05, %v2311_v1 }
 0xa57   : > { %3290 = vrsqrt.f32 %v2312_v2 }
 0xa61   : > { %v3291_v53 = vpop.eup %3290 }
 0xa62   : > { %v2314_v52 = vmul.f32 %v3291_v53, %v2306_v16 }
 0xa64   : > { %v2321_v56 = vmul.f32 %v2836_v54, %v2314_v52 }
 0xa66   : > { %v2328_v57 = vadd.f32 %v2837_v55, %v2321_v56 }
 0xa68   : > { %v2329_v58 = vpack.c.bf16 %v2328_v57, %v2328_v57 }
 0xa6a   : > { %2982 = vmatmul.mubr.msk.bf16.vlgmr.msra.gmra.mrb[28].mxu0 %vm798_vm0, %v2329_v58 }
 0xb3d   : > { %v2390_v14 = vpop.f32.mrb[28].mxu0 }
 0xb3e   : > { %v2391_v15 = vadd.f32 %v2838_v11, %v2390_v14  ;;  %v2983_v17 = vpop.f32.mrb[29].mxu0 }
 0xb3f   : > { %v2393_v18 = vpop.f32.mrb[30].mxu0 }
 0xb40   : > { %v2397_v19 = vmul.f32 0.70710677, %v2391_v15  ;;  %v2984_v20 = vpop.f32.mrb[31].mxu0  ;;  %v2396_v22 = vmul.f32 0.5, %v2391_v15 }
 0xb42   : > { %3292 = verf.f32 %v2397_v19 }
 0xb4c   : > { %v3293_v21 = vpop.eup %3292 }
 0xb4d   : > { %v2399_v23 = vadd.f32 1.0, %v3293_v21 }
 0xb4f   : > { %v2400_v24 = vmul.f32 %v2399_v23, %v2396_v22 }
 0xb51   : > { %v2401_v25 = vpack.c.bf16 %v2400_v24, %v2400_v24 }
 0xb53   : > { %3002 = vmatmul.mubr.bf16.vlgmr.msra.gmra.mrb[20].mxu1 %v2401_v25 }
 0xc26   : > { %v2507_v26 = vpop.f32.mrb[20].mxu1 }
 0xc27   : > { %v2508_v27 = vadd.f32 %v2842_v13, %v2507_v26  ;;  %v3003_v28 = vpop.f32.mrb[21].mxu1 }
 0xc28   : > { %v2510_v29 = vpop.f32.mrb[22].mxu1 }
 0xc29   : > { %v2513_v30 = vadd.f32 %v2508_v27, %v4779_v4  ;;  %v3004_v36 = vpop.f32.mrb[23].mxu1 }
 0xc2b   : > { %2514 = vst.msk [vmem:[%s789_s18] sm:$0xff] %vm798_vm0, %v2513_v30 }
 0xc2c   : > { %3786 = shalt.err (!%p3783_p8)
}
 0xc2d   : > { %s3787_s30 = scalar_lea.hbm %s4801_s5, 128  ;;  %s3791_s17 = scalar_lea.hbm %s4932_s4, 256 }
 0xc2e   : > { %p3788_p9 = scmp.ne.s32.totalorder %s4801_s5, %s3787_s30  ;;  %p3792_p3 = scmp.lt.u32.totalorder %s4801_s5, %s4932_s4 }
 0xc2f   : > { %p3793_p1 = scmp.lt.u32.totalorder %s3791_s17, %s3787_s30  ;;  %p3795_p11 = scmp.lt.u32.totalorder %s3787_s30, %s4801_s5 }
 0xc30   : > { %p3789_p4 = pnand %p3788_p9, %p4933_p0 }
 0xc31   : > { %p3794_p12 = por %p3793_p1, %p3792_p3 }
 0xc32   : > { %p3790_p6 = pneg %p3789_p4 }
 0xc33   : > { %p3796_p5 = por %p3795_p11, %p3794_p12 }
 0xc35   : > { %p3797_p7 = pnand %p3796_p5, %p3790_p6 }
 0xc37   : > { %3800 = shalt.err (!%p3797_p7)
}
 0xc38   : > { %3071 = dma.vmem_to_hbm [thread:$0]  (%p4933_p0), %s4803_s28, 128, %s4801_s5, %s2516_s3  }
 0xc39 PF: > { %s4934_s0 = sld [smem:[#allocation45_spill]]  ;;  %s4935_s1 = sld [smem:[#allocation50_spill]] }
 0xc3a   : > { %p4936_p10 = scmp.ne.s32.totalorder %s4922_s21, 0 }
 0xc3f   : > { %s2542_s22 = sand.u32 1, %s4934_s0   ;;  %p4937_p13 = scmp.ge.s32.totalorder %s4935_s1, 2 }
 0xc40   : > { %s2543_s24 = scalar_lea.sflag [#allocation9], %s2542_s22 }
 0xc41   : > { %p3127_p2 = pnand %p4937_p13, %p4936_p10 }
 0xc43   : > { %3862 = dma.done.wait (!%p3127_p2), %s2543_s24, 128  }
 0xc44   : > { %3864 = vsyncadd (!%p3127_p2), %s2543_s24, 4294967168  ;;  %s41_s29 = sadd.s32 1, %s4935_s1   ;;  %s4938_s24 = sld [smem:[#allocation46_spill]] }
 0xc45   : > { %p38_p8 = scmp.ge.s32.totalorder %s41_s29, 4   ;;  %s4939_s25 = sld [smem:[#allocation47_spill]] }
 0xc46   : > { %s4940_s30 = sld [smem:[#allocation49_spill]]  ;;  %s4941_s26 = smov %s4414_s27 }
 0xc47   : > { %s4943_s28 = smov %s4945_s19  ;;  %40 = sbr.rel (!%p38_p8) target bundleno = 22 (0x16), region = 202 }
 0xc4c   : > { %s4942_s27 = smov %s4940_s30 }
 0xc4e   :  { %2548 = vsyncpa [#allocation8], 1 }
 0xc4f   :  { %2550 = vsyncpa [#allocation8 + $0x1], 1 }
 0xc50   :  { %2551 = vsyncpa [#allocation11], 1 }
 0xc51   :  { %2552 = vsyncpa [#allocation14], 1 }
 0xc52   :  { %2553 = vsyncpa [#allocation17], 1 }
 0xc53   :  { %2554 = vsyncpa [#allocation20], 1 }
 0xc54   :  { %2555 = vsyncpa [#allocation23], 1 }
 0xc55   :  { %2556 = vsyncpa [#allocation26], 1 }
 0xc56   :  { %2557 = vsyncpa [#allocation29], 1 }
 0xc57   :  { %2558 = vsyncpa [#allocation32], 1 }
 0xc58   :  { %2559 = vsyncpa [#allocation9], 1 }
 0xc59   :  { %2561 = vsyncpa [#allocation9 + $0x1], 1 }

</bundles_post_ra>
